<compile_context>
chip_gen: v6e
topology: v6e:2x2x1
jax: 0.10.0
libtpu: 0.0.40
codegen_flags: <defaults>
</compile_context>

<pallas_src>
import math

import jax
import jax.numpy as jnp
from jax.experimental import pallas as pl
from jax.experimental.pallas import tpu as pltpu


# ----------------------------- small math helpers -----------------------------

def _softplus(x):
    # numerically stable softplus usable both inside and outside the kernel
    return jnp.maximum(x, 0.0) + jnp.log1p(jnp.exp(-jnp.abs(x)))


def _log_dtanh(x):
    # log d/dx tanh(x) = -2 * (x - log 2 + softplus(-2x))
    return -2.0 * (x - math.log(2.0) + _softplus(-2.0 * x))


# ----------------------------- Pallas kernel -----------------------------

def _make_bnaf_block_kernel(n_layers):
    """Kernel for one BNAFModule: [MW, Tanh, (MW, Tanh)*, MW].

    Refs: x, then (w, bias, wpl_exp, m_col) per layer, then outputs (y, grad).
      w        : (in_f, out_f)  effective weight, pre-transposed
      bias     : (1, out_f)
      wpl_exp  : (in_f, out_f)  exp(wpl - m_col) on the diagonal blocks, 0 off-block
      m_col    : (1, out_f)     per-column max used for the shift above
    grad is kept as a single (TB, width) array in block layout throughout.
    """

    def kernel(*refs):
        x_ref = refs[0]
        param_refs = refs[1:1 + 4 * n_layers]
        y_ref = refs[1 + 4 * n_layers]
        g_ref = refs[2 + 4 * n_layers]

        h = x_ref[...]                                   # (TB, dim) f32
        grad = jnp.zeros_like(h)                         # log-Jac blocks, width 1/dim

        for l in range(n_layers):
            w = param_refs[4 * l][...]                   # (in_f, out_f)
            b = param_refs[4 * l + 1][...]               # (1, out_f)
            wpl_exp = param_refs[4 * l + 2][...]         # (in_f, out_f)
            m_col = param_refs[4 * l + 3][...]           # (1, out_f)

            # Block-diagonal log-Jacobian composition as one MXU matmul:
            #   new_grad[b, j] = logsumexp_{a in block(j)} (grad[b, a] + wpl[a, j])
            m_row = jnp.max(grad, axis=1, keepdims=True)            # (TB, 1)
            p = jnp.dot(jnp.exp(grad - m_row), wpl_exp,
                        preferred_element_type=jnp.float32)         # (TB, out_f)
            grad = jnp.log(jnp.maximum(p, 1e-37)) + m_row + m_col

            # affine hot path on the MXU
            h = jnp.dot(h, w, preferred_element_type=jnp.float32) + b

            if l < n_layers - 1:
                # Tanh: single whole-array add of log|tanh'| in block layout.
                grad = grad + _log_dtanh(h)
                h = jnp.tanh(h)

        # single lane-dense store per output (no per-dim masked stores)
        y_ref[...] = h
        g_ref[...] = grad

    return kernel


def _bnaf_block_forward(x, layer_params):
    """Run one BNAFModule through the Pallas kernel.

    layer_params: list of (w (in,out), bias (1,out), wpl_exp (in,out), m_col (1,out)).
    Returns (y (B,dim), grad_bd (B,dim)): y is the stack output, grad_bd the
    per-dimension log of the diagonal Jacobian entries of the pure BNAF stack.
    """
    batch, dim = x.shape
    n_layers = len(layer_params)

    # ---- batch tiling -------------------------------------------------------
    tb = 128
    if batch <= tb:
        tb = max(8, ((batch + 7) // 8) * 8)              # one tile, sublane-aligned
    padded = pl.cdiv(batch, tb) * tb
    if padded != batch:
        x = jnp.pad(x, ((0, padded - batch), (0, 0)))
    grid = (padded // tb,)

    kernel = _make_bnaf_block_kernel(n_layers)

    inputs = [x]
    in_specs = [pl.BlockSpec((tb, dim), lambda i: (i, 0))]
    for params in layer_params:
        for arr in params:
            inputs.append(arr)
            # full-array block, same block index every step -> stays resident
            in_specs.append(pl.BlockSpec(arr.shape, lambda i: (0, 0)))

    out_shape = (jax.ShapeDtypeStruct((padded, dim), jnp.float32),
                 jax.ShapeDtypeStruct((padded, dim), jnp.float32))
    out_specs = (pl.BlockSpec((tb, dim), lambda i: (i, 0)),
                 pl.BlockSpec((tb, dim), lambda i: (i, 0)))

    # Explicit VMEM budget: resident params + double-buffered x/y/g tiles,
    # capped to v7x's 64 MiB physical VMEM.
    # TODO(synk): for large n_neurons, pipeline the weights layer-by-layer
    # (pltpu.emit_pipeline / manual make_async_copy) instead of keeping all
    # layers resident.
    param_bytes = sum(int(a.size) * 4 for p in layer_params for a in p)
    tile_bytes = 3 * 2 * tb * dim * 4                    # x, y, g double-buffered
    vmem_limit = min(param_bytes + tile_bytes + (8 << 20), 64 << 20)

    y, grad_bd = pl.pallas_call(
        kernel,
        grid=grid,
        in_specs=in_specs,
        out_specs=out_specs,
        out_shape=out_shape,
        compiler_params=pltpu.CompilerParams(
            dimension_semantics=("parallel",),
            vmem_limit_bytes=vmem_limit),
    )(*inputs)
    return y[:batch], grad_bd[:batch]


# ----------------------------- parameter setup (glue) -----------------------------

def _build_masks(out_f, in_f, dim):
    kin, kout = in_f // dim, out_f // dim
    mask_d = jnp.zeros((out_f, in_f), jnp.float32)
    mask_o = jnp.ones((out_f, in_f), jnp.float32)
    for i in range(dim):
        mask_d = mask_d.at[i * kout:(i + 1) * kout, i * kin:(i + 1) * kin].set(1.0)
        mask_o = mask_o.at[i * kout:(i + 1) * kout, i * kin:].set(0.0)
    return mask_d, mask_o


def _init_masked_weight(key, in_f, out_f, dim):
    k1, k2, k3 = jax.random.split(key, 3)
    weight = 0.3 * jax.random.normal(k1, (out_f, in_f), jnp.float32)
    diag_weight = jnp.log(jax.random.uniform(k2, (out_f, 1), jnp.float32,
                                             minval=0.05, maxval=1.0))
    bound = 1.0 / math.sqrt(out_f)
    bias = jax.random.uniform(k3, (out_f,), jnp.float32, minval=-bound, maxval=bound)
    return {"weight": weight, "diag_weight": diag_weight, "bias": bias,
            "in_f": in_f, "out_f": out_f, "dim": dim}


def _prepare_masked_weight(p):
    """MaskedWeight.get_weights(), done ONCE outside the forward pass.

    Returns kernel-ready arrays:
      w_T     (in, out)   effective weight (pre-transposed for h @ W)
      bias    (1, out)
      wpl_exp (in, out)   exp(wpl - m_col) on the diagonal blocks, exact 0 off-block
      m_col   (1, out)    per-column (per-block) max of wpl used for the shift
    """
    in_f, out_f, dim = p["in_f"], p["out_f"], p["dim"]
    weight, diag_weight, bias = p["weight"], p["diag_weight"], p["bias"]
    mask_d, mask_o = _build_masks(out_f, in_f, dim)

    w = jnp.exp(weight) * mask_d + weight * mask_o
    w_sq = jnp.sum(w * w, axis=-1, keepdims=True)               # (out, 1)
    w_eff = jnp.exp(diag_weight) * w / jnp.sqrt(w_sq)           # (out, in)
    wpl = diag_weight + weight - 0.5 * jnp.log(w_sq)            # (out, in)

    block_mask = mask_d.T                                       # (in, out)
    wpl_t = wpl.T                                               # (in, out)
    wpl_on = jnp.where(block_mask > 0, wpl_t, -jnp.inf)
    m_col = jnp.max(wpl_on, axis=0, keepdims=True)              # (1, out), exact
    wpl_exp = jnp.exp(jnp.where(block_mask > 0, wpl_t - m_col, -jnp.inf))

    return (w_eff.T.astype(jnp.float32),
            bias.reshape(1, out_f).astype(jnp.float32),
            wpl_exp.astype(jnp.float32),
            m_col.astype(jnp.float32))


def build_bnaf(key, dim, n_neurons, nb_layers, nblocks=1):
    """Deterministic parameter construction mirroring BNAF.__init__."""
    flows = []
    for f in range(nblocks):
        sizes = ([(dim, n_neurons)] +
                 [(n_neurons, n_neurons)] * (nb_layers - 1) +
                 [(n_neurons, dim)])
        layers = []
        for (i_f, o_f) in sizes:
            key, sub = jax.random.split(key)
            layers.append(_init_masked_weight(sub, i_f, o_f, dim))
        gate = None
        if f < nblocks - 1:   # residual = 'gated' for all but the last block
            key, sub = jax.random.split(key)
            gate = jax.random.normal(sub, (1,), jnp.float32)
        flows.append({"layers": layers, "gate": gate,
                      "permute_after": f < nblocks - 1})
    return flows


def prepare_bnaf_params(flows):
    """Hoist all weight-norm / mask / wpl preprocessing out of the forward."""
    prepared = []
    for flow in flows:
        prepared.append({
            "layers": [_prepare_masked_weight(p) for p in flow["layers"]],
            "gate": flow["gate"],
            "permute_after": flow["permute_after"],
        })
    return prepared


def bnaf_forward(prepared_flows, x):
    """Sequential.forward: returns (outputs (B,dim), log_det_jacobian (B,))."""
    log_det = jnp.zeros((x.shape[0],), jnp.float32)
    h = x
    for flow in prepared_flows:
        y, grad_bd = _bnaf_block_forward(h, flow["layers"])
        if flow["gate"] is not None:                       # res == 'gated'
            gate = flow["gate"]
            sig = jax.nn.sigmoid(gate)
            out = sig * y + (1.0 - sig) * h
            ld = jnp.sum(_softplus(grad_bd + gate) - _softplus(gate), axis=-1)
        else:                                              # res is None
            out = y
            ld = jnp.sum(grad_bd, axis=-1)
        log_det = log_det + ld
        h = out
        if flow["permute_after"]:                          # Permutation(dim, 'flip')
            h = h[:, ::-1]
    return h, log_det


# ----------------------------- pure-JAX reference (torch-style) -----------------------------

def _ref_masked_weight(p, inputs, grad):
    in_f, out_f, dim = p["in_f"], p["out_f"], p["dim"]
    kin, kout = in_f // dim, out_f // dim
    weight, diag_weight, bias = p["weight"], p["diag_weight"], p["bias"]
    mask_d, mask_o = _build_masks(out_f, in_f, dim)
    w = jnp.exp(weight) * mask_d + weight * mask_o
    w_sq = jnp.sum(w * w, axis=-1, keepdims=True)
    w_eff = (jnp.exp(diag_weight) * w / jnp.sqrt(w_sq)).T
    wpl = diag_weight + weight - 0.5 * jnp.log(w_sq)
    wpl_t = wpl.T
    wpl_blocks = jnp.stack(
        [wpl_t[i * kin:(i + 1) * kin, i * kout:(i + 1) * kout] for i in range(dim)], axis=0)
    outputs = inputs @ w_eff + bias
    g = jnp.broadcast_to(jnp.transpose(wpl_blocks, (0, 2, 1))[None],
                         (inputs.shape[0], dim, kout, kin))
    if grad is None:
        return outputs, g
    g5 = g[..., None, :]
    gr5 = jnp.swapaxes(grad, -2, -1)[..., None, :, :]
    return outputs, jax.scipy.special.logsumexp(g5 + gr5, axis=-1)


def _ref_tanh(inputs, grad):
    g = -2.0 * (inputs - math.log(2.0) + _softplus(-2.0 * inputs))
    return jnp.tanh(inputs), g.reshape(grad.shape) + grad


def bnaf_forward_ref(flows, x):
    log_det = jnp.zeros((x.shape[0],), jnp.float32)
    h = x
    for flow in flows:
        inputs = h
        outputs, grad = inputs, None
        n = len(flow["layers"])
        for li, p in enumerate(flow["layers"]):
            outputs, grad = _ref_masked_weight(p, outputs, grad)
            if li < n - 1:
                outputs, grad = _ref_tanh(outputs, grad)
        if flow["gate"] is not None:
            gate = flow["gate"]
            sig = jax.nn.sigmoid(gate)
            out = sig * outputs + (1.0 - sig) * inputs
            ld = jnp.sum(_softplus(jnp.squeeze(grad) + gate) - _softplus(gate), axis=-1)
        else:
            out = outputs
            ld = jnp.sum(jnp.squeeze(grad), axis=-1)
        log_det = log_det + ld
        h = out
        if flow["permute_after"]:
            h = h[:, ::-1]
    return h, log_det


# ----------------------------- main -----------------------------

if __name__ == "__main__":
    key = jax.random.PRNGKey(0)
    dim, n_neurons, nb_layers, nblocks = 4, 32, 3, 2
    batch = 256   # 2 batch tiles of 128 -> exercises pipelining + parallel axis

    key, kx, kp = jax.random.split(key, 3)
    x = jax.random.normal(kx, (batch, dim), jnp.float32)
    flows = build_bnaf(kp, dim, n_neurons, nb_layers, nblocks)

    # parameter preprocessing hoisted out of the forward pass (done once)
    prepared = prepare_bnaf_params(flows)
    fwd = jax.jit(lambda xx: bnaf_forward(prepared, xx))

    y, log_det = jax.block_until_ready(fwd(x))

    y_ref, ld_ref = bnaf_forward_ref(flows, x)
    assert y.shape == (batch, dim) and log_det.shape == (batch,)
    assert jnp.allclose(y, y_ref, atol=1e-4, rtol=1e-4)
    assert jnp.allclose(log_det, ld_ref, atol=1e-4, rtol=1e-4)

    print("KERNEL_OK")
</pallas_src>

<mosaic_0001>
module attributes {stable_mosaic.version = 11 : i64} {
  func.func @kernel(%arg0: i32, %arg1: memref<128x4xf32, #tpu.memory_space<vmem>>, %arg2: memref<4x32xf32, #tpu.memory_space<vmem>>, %arg3: memref<1x32xf32, #tpu.memory_space<vmem>>, %arg4: memref<4x32xf32, #tpu.memory_space<vmem>>, %arg5: memref<1x32xf32, #tpu.memory_space<vmem>>, %arg6: memref<32x32xf32, #tpu.memory_space<vmem>>, %arg7: memref<1x32xf32, #tpu.memory_space<vmem>>, %arg8: memref<32x32xf32, #tpu.memory_space<vmem>>, %arg9: memref<1x32xf32, #tpu.memory_space<vmem>>, %arg10: memref<32x32xf32, #tpu.memory_space<vmem>>, %arg11: memref<1x32xf32, #tpu.memory_space<vmem>>, %arg12: memref<32x32xf32, #tpu.memory_space<vmem>>, %arg13: memref<1x32xf32, #tpu.memory_space<vmem>>, %arg14: memref<32x4xf32, #tpu.memory_space<vmem>>, %arg15: memref<1x4xf32, #tpu.memory_space<vmem>>, %arg16: memref<32x4xf32, #tpu.memory_space<vmem>>, %arg17: memref<1x4xf32, #tpu.memory_space<vmem>>, %arg18: memref<128x4xf32, #tpu.memory_space<vmem>>, %arg19: memref<128x4xf32, #tpu.memory_space<vmem>>) attributes {dimension_semantics = [#tpu.dimension_semantics<parallel>], iteration_bounds = array<i64: 2>, scalar_prefetch = 0 : i64, scratch_operands = 0 : i64, tpu.core_type = #tpu.core_type<tc>, window_params = [{transform_indices = @transform_0, window_bounds = array<i64: 128, 4>}, {pipeline_mode = #tpu.pipeline_mode<synchronous>, transform_indices = @transform_1, window_bounds = array<i64: 4, 32>}, {pipeline_mode = #tpu.pipeline_mode<synchronous>, transform_indices = @transform_2, window_bounds = array<i64: 1, 32>}, {pipeline_mode = #tpu.pipeline_mode<synchronous>, transform_indices = @transform_3, window_bounds = array<i64: 4, 32>}, {pipeline_mode = #tpu.pipeline_mode<synchronous>, transform_indices = @transform_4, window_bounds = array<i64: 1, 32>}, {pipeline_mode = #tpu.pipeline_mode<synchronous>, transform_indices = @transform_5, window_bounds = array<i64: 32, 32>}, {pipeline_mode = #tpu.pipeline_mode<synchronous>, transform_indices = @transform_6, window_bounds = array<i64: 1, 32>}, {pipeline_mode = #tpu.pipeline_mode<synchronous>, transform_indices = @transform_7, window_bounds = array<i64: 32, 32>}, {pipeline_mode = #tpu.pipeline_mode<synchronous>, transform_indices = @transform_8, window_bounds = array<i64: 1, 32>}, {pipeline_mode = #tpu.pipeline_mode<synchronous>, transform_indices = @transform_9, window_bounds = array<i64: 32, 32>}, {pipeline_mode = #tpu.pipeline_mode<synchronous>, transform_indices = @transform_10, window_bounds = array<i64: 1, 32>}, {pipeline_mode = #tpu.pipeline_mode<synchronous>, transform_indices = @transform_11, window_bounds = array<i64: 32, 32>}, {pipeline_mode = #tpu.pipeline_mode<synchronous>, transform_indices = @transform_12, window_bounds = array<i64: 1, 32>}, {pipeline_mode = #tpu.pipeline_mode<synchronous>, transform_indices = @transform_13, window_bounds = array<i64: 32, 4>}, {pipeline_mode = #tpu.pipeline_mode<synchronous>, transform_indices = @transform_14, window_bounds = array<i64: 1, 4>}, {pipeline_mode = #tpu.pipeline_mode<synchronous>, transform_indices = @transform_15, window_bounds = array<i64: 32, 4>}, {pipeline_mode = #tpu.pipeline_mode<synchronous>, transform_indices = @transform_16, window_bounds = array<i64: 1, 4>}, {transform_indices = @transform_17, window_bounds = array<i64: 128, 4>}, {transform_indices = @transform_18, window_bounds = array<i64: 128, 4>}]} {
    %c0 = arith.constant 0 : index
    %c0_0 = arith.constant 0 : index
    %0 = vector.load %arg1[%c0, %c0_0] : memref<128x4xf32, #tpu.memory_space<vmem>>, vector<128x4xf32>
    %cst = arith.constant 0.000000e+00 : f32
    %1 = vector.broadcast %cst : f32 to vector<128x4xf32>
    %c0_1 = arith.constant 0 : index
    %c0_2 = arith.constant 0 : index
    %2 = vector.load %arg2[%c0_1, %c0_2] : memref<4x32xf32, #tpu.memory_space<vmem>>, vector<4x32xf32>
    %c0_3 = arith.constant 0 : index
    %c0_4 = arith.constant 0 : index
    %3 = vector.load %arg3[%c0_3, %c0_4] : memref<1x32xf32, #tpu.memory_space<vmem>>, vector<1x32xf32>
    %c0_5 = arith.constant 0 : index
    %c0_6 = arith.constant 0 : index
    %4 = vector.load %arg4[%c0_5, %c0_6] : memref<4x32xf32, #tpu.memory_space<vmem>>, vector<4x32xf32>
    %c0_7 = arith.constant 0 : index
    %c0_8 = arith.constant 0 : index
    %5 = vector.load %arg5[%c0_7, %c0_8] : memref<1x32xf32, #tpu.memory_space<vmem>>, vector<1x32xf32>
    %cst_9 = arith.constant dense<0xFF800000> : vector<128xf32>
    %6 = vector.multi_reduction <maximumf>, %1, %cst_9 [1] : vector<128x4xf32> to vector<128xf32>
    %7 = vector.shape_cast %6 : vector<128xf32> to vector<128x1xf32>
    %8 = vector.broadcast %7 : vector<128x1xf32> to vector<128x4xf32>
    %9 = arith.subf %1, %8 : vector<128x4xf32>
    %10 = math.exp %9 : vector<128x4xf32>
    %cst_10 = arith.constant dense<0.000000e+00> : vector<128x32xf32>
    %11 = tpu.matmul %10, %4, %cst_10 {dimension_numbers = #tpu.dot_dimension_numbers<[1], [0], [0], [1], [0, 0, 1, 1], [], []>} : vector<128x4xf32>, vector<4x32xf32>, vector<128x32xf32> -> vector<128x32xf32>
    %cst_11 = arith.constant 9.99999991E-38 : f32
    %12 = vector.broadcast %cst_11 : f32 to vector<128x32xf32>
    %13 = arith.maximumf %11, %12 : vector<128x32xf32>
    %14 = math.log %13 : vector<128x32xf32>
    %15 = vector.broadcast %7 : vector<128x1xf32> to vector<128x32xf32>
    %16 = arith.addf %14, %15 : vector<128x32xf32>
    %17 = vector.broadcast %5 : vector<1x32xf32> to vector<128x32xf32>
    %18 = arith.addf %16, %17 : vector<128x32xf32>
    %cst_12 = arith.constant dense<0.000000e+00> : vector<128x32xf32>
    %19 = tpu.matmul %0, %2, %cst_12 {dimension_numbers = #tpu.dot_dimension_numbers<[1], [0], [0], [1], [0, 0, 1, 1], [], []>} : vector<128x4xf32>, vector<4x32xf32>, vector<128x32xf32> -> vector<128x32xf32>
    %20 = vector.broadcast %3 : vector<1x32xf32> to vector<128x32xf32>
    %21 = arith.addf %19, %20 : vector<128x32xf32>
    %cst_13 = arith.constant 0.693147182 : f32
    %22 = vector.broadcast %cst_13 : f32 to vector<128x32xf32>
    %23 = arith.subf %21, %22 : vector<128x32xf32>
    %cst_14 = arith.constant -2.000000e+00 : f32
    %24 = vector.broadcast %cst_14 : f32 to vector<128x32xf32>
    %25 = arith.mulf %24, %21 : vector<128x32xf32>
    %cst_15 = arith.constant 0.000000e+00 : f32
    %26 = vector.broadcast %cst_15 : f32 to vector<128x32xf32>
    %27 = arith.maximumf %25, %26 : vector<128x32xf32>
    %28 = math.absf %25 : vector<128x32xf32>
    %cst_16 = arith.constant 0.000000e+00 : f32
    %29 = vector.broadcast %cst_16 : f32 to vector<128x32xf32>
    %30 = arith.subf %29, %28 : vector<128x32xf32>
    %31 = math.exp %30 : vector<128x32xf32>
    %32 = math.log1p %31 : vector<128x32xf32>
    %33 = arith.addf %27, %32 : vector<128x32xf32>
    %34 = arith.addf %23, %33 : vector<128x32xf32>
    %cst_17 = arith.constant -2.000000e+00 : f32
    %35 = vector.broadcast %cst_17 : f32 to vector<128x32xf32>
    %36 = arith.mulf %35, %34 : vector<128x32xf32>
    %37 = arith.addf %18, %36 : vector<128x32xf32>
    %38 = math.tanh %21 : vector<128x32xf32>
    %c0_18 = arith.constant 0 : index
    %c0_19 = arith.constant 0 : index
    %39 = vector.load %arg6[%c0_18, %c0_19] : memref<32x32xf32, #tpu.memory_space<vmem>>, vector<32x32xf32>
    %c0_20 = arith.constant 0 : index
    %c0_21 = arith.constant 0 : index
    %40 = vector.load %arg7[%c0_20, %c0_21] : memref<1x32xf32, #tpu.memory_space<vmem>>, vector<1x32xf32>
    %c0_22 = arith.constant 0 : index
    %c0_23 = arith.constant 0 : index
    %41 = vector.load %arg8[%c0_22, %c0_23] : memref<32x32xf32, #tpu.memory_space<vmem>>, vector<32x32xf32>
    %c0_24 = arith.constant 0 : index
    %c0_25 = arith.constant 0 : index
    %42 = vector.load %arg9[%c0_24, %c0_25] : memref<1x32xf32, #tpu.memory_space<vmem>>, vector<1x32xf32>
    %cst_26 = arith.constant dense<0xFF800000> : vector<128xf32>
    %43 = vector.multi_reduction <maximumf>, %37, %cst_26 [1] : vector<128x32xf32> to vector<128xf32>
    %44 = vector.shape_cast %43 : vector<128xf32> to vector<128x1xf32>
    %45 = vector.broadcast %44 : vector<128x1xf32> to vector<128x32xf32>
    %46 = arith.subf %37, %45 : vector<128x32xf32>
    %47 = math.exp %46 : vector<128x32xf32>
    %cst_27 = arith.constant dense<0.000000e+00> : vector<128x32xf32>
    %48 = tpu.matmul %47, %41, %cst_27 {dimension_numbers = #tpu.dot_dimension_numbers<[1], [0], [0], [1], [0, 0, 1, 1], [], []>} : vector<128x32xf32>, vector<32x32xf32>, vector<128x32xf32> -> vector<128x32xf32>
    %cst_28 = arith.constant 9.99999991E-38 : f32
    %49 = vector.broadcast %cst_28 : f32 to vector<128x32xf32>
    %50 = arith.maximumf %48, %49 : vector<128x32xf32>
    %51 = math.log %50 : vector<128x32xf32>
    %52 = vector.broadcast %44 : vector<128x1xf32> to vector<128x32xf32>
    %53 = arith.addf %51, %52 : vector<128x32xf32>
    %54 = vector.broadcast %42 : vector<1x32xf32> to vector<128x32xf32>
    %55 = arith.addf %53, %54 : vector<128x32xf32>
    %cst_29 = arith.constant dense<0.000000e+00> : vector<128x32xf32>
    %56 = tpu.matmul %38, %39, %cst_29 {dimension_numbers = #tpu.dot_dimension_numbers<[1], [0], [0], [1], [0, 0, 1, 1], [], []>} : vector<128x32xf32>, vector<32x32xf32>, vector<128x32xf32> -> vector<128x32xf32>
    %57 = vector.broadcast %40 : vector<1x32xf32> to vector<128x32xf32>
    %58 = arith.addf %56, %57 : vector<128x32xf32>
    %cst_30 = arith.constant 0.693147182 : f32
    %59 = vector.broadcast %cst_30 : f32 to vector<128x32xf32>
    %60 = arith.subf %58, %59 : vector<128x32xf32>
    %cst_31 = arith.constant -2.000000e+00 : f32
    %61 = vector.broadcast %cst_31 : f32 to vector<128x32xf32>
    %62 = arith.mulf %61, %58 : vector<128x32xf32>
    %cst_32 = arith.constant 0.000000e+00 : f32
    %63 = vector.broadcast %cst_32 : f32 to vector<128x32xf32>
    %64 = arith.maximumf %62, %63 : vector<128x32xf32>
    %65 = math.absf %62 : vector<128x32xf32>
    %cst_33 = arith.constant 0.000000e+00 : f32
    %66 = vector.broadcast %cst_33 : f32 to vector<128x32xf32>
    %67 = arith.subf %66, %65 : vector<128x32xf32>
    %68 = math.exp %67 : vector<128x32xf32>
    %69 = math.log1p %68 : vector<128x32xf32>
    %70 = arith.addf %64, %69 : vector<128x32xf32>
    %71 = arith.addf %60, %70 : vector<128x32xf32>
    %cst_34 = arith.constant -2.000000e+00 : f32
    %72 = vector.broadcast %cst_34 : f32 to vector<128x32xf32>
    %73 = arith.mulf %72, %71 : vector<128x32xf32>
    %74 = arith.addf %55, %73 : vector<128x32xf32>
    %75 = math.tanh %58 : vector<128x32xf32>
    %c0_35 = arith.constant 0 : index
    %c0_36 = arith.constant 0 : index
    %76 = vector.load %arg10[%c0_35, %c0_36] : memref<32x32xf32, #tpu.memory_space<vmem>>, vector<32x32xf32>
    %c0_37 = arith.constant 0 : index
    %c0_38 = arith.constant 0 : index
    %77 = vector.load %arg11[%c0_37, %c0_38] : memref<1x32xf32, #tpu.memory_space<vmem>>, vector<1x32xf32>
    %c0_39 = arith.constant 0 : index
    %c0_40 = arith.constant 0 : index
    %78 = vector.load %arg12[%c0_39, %c0_40] : memref<32x32xf32, #tpu.memory_space<vmem>>, vector<32x32xf32>
    %c0_41 = arith.constant 0 : index
    %c0_42 = arith.constant 0 : index
    %79 = vector.load %arg13[%c0_41, %c0_42] : memref<1x32xf32, #tpu.memory_space<vmem>>, vector<1x32xf32>
    %cst_43 = arith.constant dense<0xFF800000> : vector<128xf32>
    %80 = vector.multi_reduction <maximumf>, %74, %cst_43 [1] : vector<128x32xf32> to vector<128xf32>
    %81 = vector.shape_cast %80 : vector<128xf32> to vector<128x1xf32>
    %82 = vector.broadcast %81 : vector<128x1xf32> to vector<128x32xf32>
    %83 = arith.subf %74, %82 : vector<128x32xf32>
    %84 = math.exp %83 : vector<128x32xf32>
    %cst_44 = arith.constant dense<0.000000e+00> : vector<128x32xf32>
    %85 = tpu.matmul %84, %78, %cst_44 {dimension_numbers = #tpu.dot_dimension_numbers<[1], [0], [0], [1], [0, 0, 1, 1], [], []>} : vector<128x32xf32>, vector<32x32xf32>, vector<128x32xf32> -> vector<128x32xf32>
    %cst_45 = arith.constant 9.99999991E-38 : f32
    %86 = vector.broadcast %cst_45 : f32 to vector<128x32xf32>
    %87 = arith.maximumf %85, %86 : vector<128x32xf32>
    %88 = math.log %87 : vector<128x32xf32>
    %89 = vector.broadcast %81 : vector<128x1xf32> to vector<128x32xf32>
    %90 = arith.addf %88, %89 : vector<128x32xf32>
    %91 = vector.broadcast %79 : vector<1x32xf32> to vector<128x32xf32>
    %92 = arith.addf %90, %91 : vector<128x32xf32>
    %cst_46 = arith.constant dense<0.000000e+00> : vector<128x32xf32>
    %93 = tpu.matmul %75, %76, %cst_46 {dimension_numbers = #tpu.dot_dimension_numbers<[1], [0], [0], [1], [0, 0, 1, 1], [], []>} : vector<128x32xf32>, vector<32x32xf32>, vector<128x32xf32> -> vector<128x32xf32>
    %94 = vector.broadcast %77 : vector<1x32xf32> to vector<128x32xf32>
    %95 = arith.addf %93, %94 : vector<128x32xf32>
    %cst_47 = arith.constant 0.693147182 : f32
    %96 = vector.broadcast %cst_47 : f32 to vector<128x32xf32>
    %97 = arith.subf %95, %96 : vector<128x32xf32>
    %cst_48 = arith.constant -2.000000e+00 : f32
    %98 = vector.broadcast %cst_48 : f32 to vector<128x32xf32>
    %99 = arith.mulf %98, %95 : vector<128x32xf32>
    %cst_49 = arith.constant 0.000000e+00 : f32
    %100 = vector.broadcast %cst_49 : f32 to vector<128x32xf32>
    %101 = arith.maximumf %99, %100 : vector<128x32xf32>
    %102 = math.absf %99 : vector<128x32xf32>
    %cst_50 = arith.constant 0.000000e+00 : f32
    %103 = vector.broadcast %cst_50 : f32 to vector<128x32xf32>
    %104 = arith.subf %103, %102 : vector<128x32xf32>
    %105 = math.exp %104 : vector<128x32xf32>
    %106 = math.log1p %105 : vector<128x32xf32>
    %107 = arith.addf %101, %106 : vector<128x32xf32>
    %108 = arith.addf %97, %107 : vector<128x32xf32>
    %cst_51 = arith.constant -2.000000e+00 : f32
    %109 = vector.broadcast %cst_51 : f32 to vector<128x32xf32>
    %110 = arith.mulf %109, %108 : vector<128x32xf32>
    %111 = arith.addf %92, %110 : vector<128x32xf32>
    %112 = math.tanh %95 : vector<128x32xf32>
    %c0_52 = arith.constant 0 : index
    %c0_53 = arith.constant 0 : index
    %113 = vector.load %arg14[%c0_52, %c0_53] : memref<32x4xf32, #tpu.memory_space<vmem>>, vector<32x4xf32>
    %c0_54 = arith.constant 0 : index
    %c0_55 = arith.constant 0 : index
    %114 = vector.load %arg15[%c0_54, %c0_55] : memref<1x4xf32, #tpu.memory_space<vmem>>, vector<1x4xf32>
    %c0_56 = arith.constant 0 : index
    %c0_57 = arith.constant 0 : index
    %115 = vector.load %arg16[%c0_56, %c0_57] : memref<32x4xf32, #tpu.memory_space<vmem>>, vector<32x4xf32>
    %c0_58 = arith.constant 0 : index
    %c0_59 = arith.constant 0 : index
    %116 = vector.load %arg17[%c0_58, %c0_59] : memref<1x4xf32, #tpu.memory_space<vmem>>, vector<1x4xf32>
    %cst_60 = arith.constant dense<0xFF800000> : vector<128xf32>
    %117 = vector.multi_reduction <maximumf>, %111, %cst_60 [1] : vector<128x32xf32> to vector<128xf32>
    %118 = vector.shape_cast %117 : vector<128xf32> to vector<128x1xf32>
    %119 = vector.broadcast %118 : vector<128x1xf32> to vector<128x32xf32>
    %120 = arith.subf %111, %119 : vector<128x32xf32>
    %121 = math.exp %120 : vector<128x32xf32>
    %cst_61 = arith.constant dense<0.000000e+00> : vector<128x4xf32>
    %122 = tpu.matmul %121, %115, %cst_61 {dimension_numbers = #tpu.dot_dimension_numbers<[1], [0], [0], [1], [0, 0, 1, 1], [], []>} : vector<128x32xf32>, vector<32x4xf32>, vector<128x4xf32> -> vector<128x4xf32>
    %cst_62 = arith.constant 9.99999991E-38 : f32
    %123 = vector.broadcast %cst_62 : f32 to vector<128x4xf32>
    %124 = arith.maximumf %122, %123 : vector<128x4xf32>
    %125 = math.log %124 : vector<128x4xf32>
    %126 = vector.broadcast %118 : vector<128x1xf32> to vector<128x4xf32>
    %127 = arith.addf %125, %126 : vector<128x4xf32>
    %128 = vector.broadcast %116 : vector<1x4xf32> to vector<128x4xf32>
    %129 = arith.addf %127, %128 : vector<128x4xf32>
    %cst_63 = arith.constant dense<0.000000e+00> : vector<128x4xf32>
    %130 = tpu.matmul %112, %113, %cst_63 {dimension_numbers = #tpu.dot_dimension_numbers<[1], [0], [0], [1], [0, 0, 1, 1], [], []>} : vector<128x32xf32>, vector<32x4xf32>, vector<128x4xf32> -> vector<128x4xf32>
    %131 = vector.broadcast %114 : vector<1x4xf32> to vector<128x4xf32>
    %132 = arith.addf %130, %131 : vector<128x4xf32>
    %c0_64 = arith.constant 0 : index
    %c0_65 = arith.constant 0 : index
    %133 = vector.load %arg18[%c0_64, %c0_65] : memref<128x4xf32, #tpu.memory_space<vmem>>, vector<128x4xf32>
    tpu.vector_store %arg18[%c0_64, %c0_65], %132 {strides = array<i32>} : memref<128x4xf32, #tpu.memory_space<vmem>>, vector<128x4xf32>,
    %c0_66 = arith.constant 0 : index
    %c0_67 = arith.constant 0 : index
    %134 = vector.load %arg19[%c0_66, %c0_67] : memref<128x4xf32, #tpu.memory_space<vmem>>, vector<128x4xf32>
    tpu.vector_store %arg19[%c0_66, %c0_67], %129 {strides = array<i32>} : memref<128x4xf32, #tpu.memory_space<vmem>>, vector<128x4xf32>,
    return
  }
  func.func @transform_0(%arg0: i32) -> (i32, i32) {
    %c0_i32 = arith.constant 0 : i32
    %c0_i32_0 = arith.constant 0 : i32
    return %arg0, %c0_i32 : i32, i32
  }
  func.func @transform_1(%arg0: i32) -> (i32, i32) {
    %c0_i32 = arith.constant 0 : i32
    %c0_i32_0 = arith.constant 0 : i32
    %c0_i32_1 = arith.constant 0 : i32
    return %c0_i32, %c0_i32_0 : i32, i32
  }
  func.func @transform_2(%arg0: i32) -> (i32, i32) {
    %c0_i32 = arith.constant 0 : i32
    %c0_i32_0 = arith.constant 0 : i32
    %c0_i32_1 = arith.constant 0 : i32
    return %c0_i32, %c0_i32_0 : i32, i32
  }
  func.func @transform_3(%arg0: i32) -> (i32, i32) {
    %c0_i32 = arith.constant 0 : i32
    %c0_i32_0 = arith.constant 0 : i32
    %c0_i32_1 = arith.constant 0 : i32
    return %c0_i32, %c0_i32_0 : i32, i32
  }
  func.func @transform_4(%arg0: i32) -> (i32, i32) {
    %c0_i32 = arith.constant 0 : i32
    %c0_i32_0 = arith.constant 0 : i32
    %c0_i32_1 = arith.constant 0 : i32
    return %c0_i32, %c0_i32_0 : i32, i32
  }
  func.func @transform_5(%arg0: i32) -> (i32, i32) {
    %c0_i32 = arith.constant 0 : i32
    %c0_i32_0 = arith.constant 0 : i32
    %c0_i32_1 = arith.constant 0 : i32
    return %c0_i32, %c0_i32_0 : i32, i32
  }
  func.func @transform_6(%arg0: i32) -> (i32, i32) {
    %c0_i32 = arith.constant 0 : i32
    %c0_i32_0 = arith.constant 0 : i32
    %c0_i32_1 = arith.constant 0 : i32
    return %c0_i32, %c0_i32_0 : i32, i32
  }
  func.func @transform_7(%arg0: i32) -> (i32, i32) {
    %c0_i32 = arith.constant 0 : i32
    %c0_i32_0 = arith.constant 0 : i32
    %c0_i32_1 = arith.constant 0 : i32
    return %c0_i32, %c0_i32_0 : i32, i32
  }
  func.func @transform_8(%arg0: i32) -> (i32, i32) {
    %c0_i32 = arith.constant 0 : i32
    %c0_i32_0 = arith.constant 0 : i32
    %c0_i32_1 = arith.constant 0 : i32
    return %c0_i32, %c0_i32_0 : i32, i32
  }
  func.func @transform_9(%arg0: i32) -> (i32, i32) {
    %c0_i32 = arith.constant 0 : i32
    %c0_i32_0 = arith.constant 0 : i32
    %c0_i32_1 = arith.constant 0 : i32
    return %c0_i32, %c0_i32_0 : i32, i32
  }
  func.func @transform_10(%arg0: i32) -> (i32, i32) {
    %c0_i32 = arith.constant 0 : i32
    %c0_i32_0 = arith.constant 0 : i32
    %c0_i32_1 = arith.constant 0 : i32
    return %c0_i32, %c0_i32_0 : i32, i32
  }
  func.func @transform_11(%arg0: i32) -> (i32, i32) {
    %c0_i32 = arith.constant 0 : i32
    %c0_i32_0 = arith.constant 0 : i32
    %c0_i32_1 = arith.constant 0 : i32
    return %c0_i32, %c0_i32_0 : i32, i32
  }
  func.func @transform_12(%arg0: i32) -> (i32, i32) {
    %c0_i32 = arith.constant 0 : i32
    %c0_i32_0 = arith.constant 0 : i32
    %c0_i32_1 = arith.constant 0 : i32
    return %c0_i32, %c0_i32_0 : i32, i32
  }
  func.func @transform_13(%arg0: i32) -> (i32, i32) {
    %c0_i32 = arith.constant 0 : i32
    %c0_i32_0 = arith.constant 0 : i32
    %c0_i32_1 = arith.constant 0 : i32
    return %c0_i32, %c0_i32_0 : i32, i32
  }
  func.func @transform_14(%arg0: i32) -> (i32, i32) {
    %c0_i32 = arith.constant 0 : i32
    %c0_i32_0 = arith.constant 0 : i32
    %c0_i32_1 = arith.constant 0 : i32
    return %c0_i32, %c0_i32_0 : i32, i32
  }
  func.func @transform_15(%arg0: i32) -> (i32, i32) {
    %c0_i32 = arith.constant 0 : i32
    %c0_i32_0 = arith.constant 0 : i32
    %c0_i32_1 = arith.constant 0 : i32
    return %c0_i32, %c0_i32_0 : i32, i32
  }
  func.func @transform_16(%arg0: i32) -> (i32, i32) {
    %c0_i32 = arith.constant 0 : i32
    %c0_i32_0 = arith.constant 0 : i32
    %c0_i32_1 = arith.constant 0 : i32
    return %c0_i32, %c0_i32_0 : i32, i32
  }
  func.func @transform_17(%arg0: i32) -> (i32, i32) {
    %c0_i32 = arith.constant 0 : i32
    %c0_i32_0 = arith.constant 0 : i32
    return %arg0, %c0_i32 : i32, i32
  }
  func.func @transform_18(%arg0: i32) -> (i32, i32) {
    %c0_i32 = arith.constant 0 : i32
    %c0_i32_0 = arith.constant 0 : i32
    return %arg0, %c0_i32 : i32, i32
  }
}

</mosaic_0001>

<bundles_post_ra>
// kernel: _lambda_.2
= control target key start
LH: loop header
LB: loop body
LE: loop exit
PB: predicated region body
PF: predicated region fallthrough
CT: control target
= control target key end

     0   :  { %s5159_s27 = smov 0   ;;  %s7450_s0 = inlined_call_operand.vmem [shape: f32[256,4], index: 0, kind: input, shape index: {}]   ;;  %s7451_s1 = inlined_call_operand.vmem [shape: f32[4,32], index: 1, kind: input, shape index: {}]   ;;  %s7452_s2 = inlined_call_operand.vmem [shape: f32[1,32], index: 2, kind: input, shape index: {}]   ;;  %s7453_s3 = inlined_call_operand.vmem [shape: f32[4,32], index: 3, kind: input, shape index: {}]   ;;  %s7454_s4 = inlined_call_operand.vmem [shape: f32[1,32], index: 4, kind: input, shape index: {}]   ;;  %s7455_s5 = inlined_call_operand.vmem [shape: f32[32,32], index: 5, kind: input, shape index: {}]   ;;  %s7456_s6 = inlined_call_operand.vmem [shape: f32[1,32], index: 6, kind: input, shape index: {}]   ;;  %s7457_s7 = inlined_call_operand.vmem [shape: f32[32,32], index: 7, kind: input, shape index: {}]   ;;  %s7458_s8 = inlined_call_operand.vmem [shape: f32[1,32], index: 8, kind: input, shape index: {}]   ;;  %s7459_s9 = inlined_call_operand.vmem [shape: f32[32,32], index: 9, kind: input, shape index: {}]   ;;  %s7460_s10 = inlined_call_operand.vmem [shape: f32[1,32], index: 10, kind: input, shape index: {}]   ;;  %s7461_s11 = inlined_call_operand.vmem [shape: f32[32,32], index: 11, kind: input, shape index: {}]   ;;  %s7462_s12 = inlined_call_operand.vmem [shape: f32[1,32], index: 12, kind: input, shape index: {}]   ;;  %s7463_s13 = inlined_call_operand.vmem [shape: f32[32,4], index: 13, kind: input, shape index: {}]   ;;  %s7464_s14 = inlined_call_operand.vmem [shape: f32[1,4], index: 14, kind: input, shape index: {}]   ;;  %s7465_s15 = inlined_call_operand.vmem [shape: f32[32,4], index: 15, kind: input, shape index: {}]   ;;  %s7466_s16 = inlined_call_operand.vmem [shape: f32[1,4], index: 16, kind: input, shape index: {}]   ;;  %s7467_s17 = inlined_call_operand.vmem [shape: f32[256,4], index: 17, kind: output, shape index: {0}]   ;;  %s7468_s18 = inlined_call_operand.vmem [shape: f32[256,4], index: 18, kind: output, shape index: {1}]  }
   0x1   :  { %7536 = sst [smem:[#allocation32_spill]] %s7450_s0 }
   0x2   :  { %7537 = sst [smem:[#allocation33_spill]] %s7451_s1 }
   0x3   :  { %7538 = sst [smem:[#allocation34_spill]] %s7452_s2 }
   0x4 LB: > { %s3937_s28 = sadd.s32 4294967295, %s5061_s27   ;;  %p3941_p0 = scmp.ge.s32.totalorder %s5061_s27, 1  ;;  %s5061_s27 = sphi %s5159_s27, %s29_s27  }
   0x5   : > { %p516_p1 = scmp.lt.s32.totalorder %s5061_s27, 3 }
   0x7   : > { %p517_p2 = pnand %p3941_p0, %p516_p1 }
   0x9   : > { %520 = sbr.rel (%p517_p2) target bundleno = 1474 (0x5c2), region = 88 }
   0xe   : > { %s7539_s0 = sld [smem:[#allocation33_spill]]  ;;  %vm617_vm0 = vcmask 1043456   ;;  %s3942_s19 = sshll.u32 %s3937_s28, 4  ;;  %vm613_vm1 = vcmask 31744   ;;  %v611_v1 = vld [vmem:[%s7453_s3] sm:$0xf] }
   0xf   : > { %p576_p3 = scmp.lt.s32.totalorder %s3942_s19, 31  ;;  %v5063_v2 = vmov 1.0   ;;  %4290 = vmatprep.subr.msk.mxu0 %vm617_vm0, %v611_v1  ;;  %s7540_s23 = sld [smem:[#allocation32_spill]]  ;;  %v1393_v19 = vld [vmem:[%s7455_s5 + $0x18] sm:$0xff]  ;;  %v1392_v20 = vld [vmem:[%s7455_s5 + $0x10] sm:$0xff]  ;;  %v1391_v21 = vld [vmem:[%s7455_s5 + $0x8] sm:$0xff] }
  0x10   : > { %4292 = vmatprep.mubr.msk.f32.mxu0 %vm613_vm1, %v5063_v2  ;;  %4291 = vmatpush3.msk.msra.mxu0 %vm617_vm0, %v611_v1  ;;  %v1390_v22 = vld [vmem:[%s7455_s5] sm:$0xff]  ;;  %v1398_v25 = vld [vmem:[%s7457_s7 + $0x18] sm:$0xff]  ;;  %v1397_v26 = vld [vmem:[%s7457_s7 + $0x10] sm:$0xff]  ;;  %s7541_s26 = sld [smem:[#allocation34_spill]]  ;;  %vm1400_vm2 = vcmask 261120  }
  0x11   : > { %s7835_s19 = smov (!%p576_p3, %s3942_s19), 31  ;;  %4293 = vmatmul.mubr.msk.f32.vlgmr.msra.gmra.mxu0 %vm613_vm1, %v5063_v2  ;;  %4342 = vmatprep.subr.mxu0 %v1398_v25 }
  0x12   : > { %s5175_s21 = sshll.u32 %s7835_s19, 3  ;;  %4295 = vmatprep.mubr.msk.f32.mxu0 %vm613_vm1, %v5063_v2  ;;  %4343 = vmatpush3.msra.mxu0 %v1398_v25 }
  0x13   : > { %4344 = vmatprep.subr.mxu0 %v1397_v26  ;;  %s6723_s29 = scalar_lea.vmem %s7467_s17, %s5175_s21 }
  0x14   : > { %v609_v0 = vld [vmem:[%s7539_s0] sm:$0xf]  ;;  %4345 = vmatpush3.msra.mxu0 %v1397_v26  ;;  %s7382_s0 = scalar_lea.vmem %s7468_s18, %s5175_s21 }
  0x15   : > { %4316 = vmatprep.subr.msk.mxu1 %vm617_vm0, %v609_v0  ;;  %s5182_s24 = scalar_lea.vmem %s7540_s23, %s5175_s21  ;;  %4296 = vmatmul.mubr.msk.f32.gmra.mxu0 %vm613_vm1, %v5063_v2 }
  0x16   : > { %4317 = vmatpush3.msk.msra.mxu1 %vm617_vm0, %v609_v0  ;;  %v593_v3 = vld [vmem:[%s5182_s24] sm:$0xff]  ;;  %v594_v4 = vld [vmem:[%s5182_s24 + $0x8] sm:$0xff]  ;;  %v595_v5 = vld [vmem:[%s5182_s24 + $0x10] sm:$0xff]  ;;  %4298 = vmatprep.mubr.msk.f32.mxu0 %vm613_vm1, %v5063_v2 }
  0x17   : > { %4318 = vmatprep.mubr.msk.f32.mxu1 %vm613_vm1, %v593_v3  ;;  %v596_v6 = vld [vmem:[%s5182_s24 + $0x18] sm:$0xff]  ;;  %v597_v7 = vld [vmem:[%s5182_s24 + $0x20] sm:$0xff]  ;;  %v598_v8 = vld [vmem:[%s5182_s24 + $0x28] sm:$0xff]  ;;  %4374 = vmatprep.subr.mxu1 %v1393_v19 }
  0x18   : > { %4319 = vmatmul.mubr.msk.f32.vlgmr.msra.gmra.mxu1 %vm613_vm1, %v594_v4  ;;  %v599_v9 = vld [vmem:[%s5182_s24 + $0x30] sm:$0xff]  ;;  %v600_v10 = vld [vmem:[%s5182_s24 + $0x38] sm:$0xff]  ;;  %v601_v11 = vld [vmem:[%s5182_s24 + $0x40] sm:$0xff] }
  0x19   : > { %4321 = vmatprep.mubr.msk.f32.mxu1 %vm613_vm1, %v595_v5  ;;  %4299 = vmatmul.mubr.msk.f32.gmra.mxu0 %vm613_vm1, %v5063_v2  ;;  %v602_v12 = vld [vmem:[%s5182_s24 + $0x48] sm:$0xff]  ;;  %v603_v13 = vld [vmem:[%s5182_s24 + $0x50] sm:$0xff]  ;;  %v604_v14 = vld [vmem:[%s5182_s24 + $0x58] sm:$0xff] }
  0x1a   : > { %4301 = vmatprep.mubr.msk.f32.mxu0 %vm613_vm1, %v5063_v2  ;;  %v605_v15 = vld [vmem:[%s5182_s24 + $0x60] sm:$0xff]  ;;  %v606_v16 = vld [vmem:[%s5182_s24 + $0x68] sm:$0xff]  ;;  %v607_v17 = vld [vmem:[%s5182_s24 + $0x70] sm:$0xff]  ;;  %4375 = vmatpush3.msra.mxu1 %v1393_v19 }
  0x1b   : > { %v608_v18 = vld [vmem:[%s5182_s24 + $0x78] sm:$0xff]  ;;  %4376 = vmatprep.subr.mxu1 %v1392_v20  ;;  %v5250_v27 = vld [vmem:[%s7541_s26] ss:$0 sm:$0xff] }
  0x1c   : > { %4322 = vmatmul.mubr.msk.f32.gmra.mxu1 %vm613_vm1, %v596_v6 }
  0x1d   : > { %4324 = vmatprep.mubr.msk.f32.mxu1 %vm613_vm1, %v597_v7  ;;  %4302 = vmatmul.mubr.msk.f32.gmra.mxu0 %vm613_vm1, %v5063_v2 }
  0x1e   : > { %4304 = vmatprep.mubr.msk.f32.mxu0 %vm613_vm1, %v5063_v2  ;;  %4377 = vmatpush3.msra.mxu1 %v1392_v20 }
  0x1f   : > { %4378 = vmatprep.subr.mxu1 %v1391_v21 }
  0x20   : > { %4325 = vmatmul.mubr.msk.f32.gmra.mxu1 %vm613_vm1, %v598_v8 }
  0x21   : > { %4327 = vmatprep.mubr.msk.f32.mxu1 %vm613_vm1, %v599_v9  ;;  %4305 = vmatmul.mubr.msk.f32.gmra.mxu0 %vm613_vm1, %v5063_v2 }
  0x22   : > { %4307 = vmatprep.mubr.msk.f32.mxu0 %vm613_vm1, %v5063_v2  ;;  %4379 = vmatpush3.msra.mxu1 %v1391_v21 }
  0x23   : > { %4380 = vmatprep.subr.mxu1 %v1390_v22 }
  0x24   : > { %4328 = vmatmul.mubr.msk.f32.gmra.mxu1 %vm613_vm1, %v600_v10 }
  0x25   : > { %4330 = vmatprep.mubr.msk.f32.mxu1 %vm613_vm1, %v601_v11  ;;  %4308 = vmatmul.mubr.msk.f32.gmra.mxu0 %vm613_vm1, %v5063_v2 }
  0x26   : > { %4310 = vmatprep.mubr.msk.f32.mxu0 %vm613_vm1, %v5063_v2  ;;  %4381 = vmatpush3.msra.mxu1 %v1390_v22 }
  0x28   : > { %4331 = vmatmul.mubr.msk.f32.gmra.mxu1 %vm613_vm1, %v602_v12 }
  0x29   : > { %4333 = vmatprep.mubr.msk.f32.mxu1 %vm613_vm1, %v603_v13  ;;  %4311 = vmatmul.mubr.msk.f32.gmra.mxu0 %vm613_vm1, %v5063_v2 }
  0x2a   : > { %4313 = vmatprep.mubr.msk.f32.mxu0 %vm613_vm1, %v5063_v2 }
  0x2c   : > { %4334 = vmatmul.mubr.msk.f32.gmra.mxu1 %vm613_vm1, %v604_v14 }
  0x2d   : > { %4336 = vmatprep.mubr.msk.f32.mxu1 %vm613_vm1, %v605_v15  ;;  %4314 = vmatmul.mubr.msk.f32.gmra.mxu0 %vm613_vm1, %v5063_v2 }
  0x30   : > { %4337 = vmatmul.mubr.msk.f32.gmra.mxu1 %vm613_vm1, %v606_v16 }
  0x31   : > { %4339 = vmatprep.mubr.msk.f32.mxu1 %vm613_vm1, %v607_v17 }
  0x34   : > { %4340 = vmatmul.mubr.msk.f32.gmra.mxu1 %vm613_vm1, %v608_v18 }
  0xd1   : > { %v4294_v23 = vpop.f32.mrf.mxu0 }
  0xd2   : > { %v767_v30 = vmax.f32 %v4294_v23, 1e-37 }
  0xd3   : > { %v687_v24 = vpop.f32.mrf.mxu0 }
  0xd4   : > { %v766_v36 = vmax.f32 %v687_v24, 1e-37  ;;  %4543 = vlog2.f32 %v767_v30 }
  0xd5   : > { %v4297_v31 = vpop.f32.mrf.mxu0 }
  0xd6   : > { %v769_v39 = vmax.f32 %v4297_v31, 1e-37 }
  0xd7   : > { %v697_v40 = vpop.f32.mrf.mxu0 }
  0xd8   : > { %v4320_v28 = vpop.f32.mrf.mxu1  ;;  %v768_v48 = vmax.f32 %v697_v40, 1e-37 }
  0xd9   : > { %v5253_v29 = vadd.f32 %v4320_v28, %v5250_v27  ;;  %v4300_v61 = vpop.f32.mrf.mxu0 }
  0xda   : > { %v975_v32 = vpop.f32.mrf.mxu1  ;;  %v771_v4 = vmax.f32 %v4300_v61, 1e-37 }
  0xdb   : > { %v5256_v33 = vmul.f32 -2.0, %v5253_v29  ;;  %v5259_v34 = vadd.f32 %v5250_v27, %v975_v32  ;;  %v5312_v11 = vpop.f32.mrf.mxu0 }
  0xdc   : > { %v4323_v35 = vpop.f32.mrf.mxu1 }
  0xdd   : > { %v1103_v37 = vand.u32 2147483647, %v5256_v33  ;;  %v5263_v38 = vmul.f32 -2.0, %v5259_v34  ;;  %4545 = vtanh.f32 %v5259_v34  ;;  %v5267_v41 = vadd.f32 %v4323_v35, %v5250_v27  ;;  %v5338_v30 = vpop.f32.mrf.mxu0 }
  0xde   : > { %v985_v42 = vpop.f32.mrf.mxu1  ;;  %4547 = vtanh.f32 %v5253_v29 }
  0xdf   : > { %v1102_v43 = vand.u32 2147483647, %v5263_v38  ;;  %v5272_v44 = vadd.f32 %v5250_v27, %v985_v42  ;;  %v1119_v45 = vsub.f32 0.0, %v1103_v37  ;;  %v5275_v46 = vmul.f32 -2.0, %v5267_v41 }
  0xe0   : > { %v4326_v47 = vpop.f32.mrf.mxu1  ;;  %4549 = vlog2.f32 %v766_v36 }
  0xe1   : > { %v1118_v49 = vsub.f32 0.0, %v1102_v43  ;;  %v5278_v50 = vmul.f32 -2.0, %v5272_v44  ;;  %4551 = vlog2.f32 %v769_v39  ;;  %v1105_v51 = vand.u32 2147483647, %v5275_v46  ;;  %v5307_v7 = vpop.eup %4543 }
  0xe2   : > { %4553 = vtanh.f32 %v5272_v44  ;;  %v5283_v52 = vadd.f32 %v4326_v47, %v5250_v27  ;;  %v995_v53 = vpop.f32.mrf.mxu1  ;;  %v1136_v55 = vmul.f32 1.442695, %v1119_v45 }
  0xe3   : > { %4555 = vtanh.f32 %v5267_v41  ;;  %v1104_v54 = vand.u32 2147483647, %v5278_v50  ;;  %v1134_v57 = vmul.f32 1.442695, %v1118_v49  ;;  %v1121_v58 = vsub.f32 0.0, %v1105_v51  ;;  %v5356_v51 = vpop.f32.mrf.mxu0 }
  0xe4   : > { %v4329_v56 = vpop.f32.mrf.mxu1  ;;  %4557 = vlog2.f32 %v768_v48  ;;  %v5288_v59 = vadd.f32 %v5250_v27, %v995_v53  ;;  %v5294_v62 = vmul.f32 -2.0, %v5283_v52 }
  0xe5   : > { %v5291_v60 = vadd.f32 %v4329_v56, %v5250_v27  ;;  %4559 = vtanh.f32 %v5283_v52  ;;  %v1120_v0 = vsub.f32 0.0, %v1104_v54  ;;  %v1140_v5 = vmul.f32 1.442695, %v1121_v58 }
  0xe6   : > { %v1005_v63 = vpop.f32.mrf.mxu1  ;;  %v5298_v1 = vmul.f32 -2.0, %v5288_v59  ;;  %4561 = vtanh.f32 %v5288_v59  ;;  %v1107_v8 = vand.u32 2147483647, %v5294_v62 }
  0xe7   : > { %4563 = vpow2.f32 %v1136_v55  ;;  %v5302_v2 = vmul.f32 -2.0, %v5291_v60  ;;  %v5305_v6 = vadd.f32 %v5250_v27, %v1005_v63  ;;  %v1138_v13 = vmul.f32 1.442695, %v1120_v0 }
  0xe8   : > { %v4332_v3 = vpop.f32.mrf.mxu1  ;;  %4565 = vpow2.f32 %v1134_v57  ;;  %v1106_v9 = vand.u32 2147483647, %v5298_v1  ;;  %v1123_v23 = vsub.f32 0.0, %v1107_v8 }
  0xe9   : > { %4567 = vtanh.f32 %v5291_v60  ;;  %v1109_v14 = vand.u32 2147483647, %v5302_v2  ;;  %v5316_v15 = vmul.f32 -2.0, %v5305_v6  ;;  %v5320_v17 = vadd.f32 %v4332_v3, %v5250_v27 }
  0xea   : > { %v1015_v10 = vpop.f32.mrf.mxu1  ;;  %v4546_v12 = vpop.eup %4545  ;;  %4569 = vtanh.f32 %v5305_v6  ;;  %v1122_v24 = vsub.f32 0.0, %v1106_v9  ;;  %v1144_v43 = vmul.f32 1.442695, %v1123_v23 }
  0xeb   : > { %v4548_v16 = vpop.eup %4547  ;;  %v5323_v18 = vadd.f32 %v5250_v27, %v1015_v10  ;;  %4382 = vmatprep.mubr.msk.f32.mxu1 %vm1400_vm2, %v4546_v12  ;;  %4571 = vlog2.f32 %v771_v4  ;;  %v1108_v21 = vand.u32 2147483647, %v5316_v15  ;;  %v5333_v25 = vmul.f32 -2.0, %v5320_v17  ;;  %v5378_v10 = vpop.f32.mrf.mxu0 }
  0xec   : > { %v4335_v19 = vpop.f32.mrf.mxu1  ;;  %4573 = vpow2.f32 %v1140_v5  ;;  %4383 = vmatmul.mubr.msk.f32.vlgmr.msra.gmra.mxu1 %vm1400_vm2, %v4548_v16  ;;  %v1125_v32 = vsub.f32 0.0, %v1109_v14  ;;  %v1142_v45 = vmul.f32 1.442695, %v1122_v24 }
  0xed   : > { %v5326_v20 = vpop.eup %4549  ;;  %7542 = vst [vmem:[#allocation2_spill] sm:$0xff] %v5333_v25  ;;  %v5336_v26 = vadd.f32 %v4335_v19, %v5250_v27  ;;  %4575 = vpow2.f32 %v1138_v13  ;;  %v5341_v35 = vmul.f32 -2.0, %v5323_v18  ;;  %v1111_v37 = vand.u32 2147483647, %v5333_v25 }
  0xee   : > { %v5330_v22 = vpop.eup %4551  ;;  %v1025_v28 = vpop.f32.mrf.mxu1  ;;  %4577 = vtanh.f32 %v5320_v17  ;;  %v1124_v42 = vsub.f32 0.0, %v1108_v21  ;;  %v1148_v54 = vmul.f32 1.442695, %v1125_v32 }
  0xef   : > { %7543 = vst [vmem:[#allocation3_spill] sm:$0xff] %v5336_v26  ;;  %v4554_v31 = vpop.eup %4553  ;;  %4579 = vtanh.f32 %v5323_v18  ;;  %v5351_v47 = vmul.f32 -2.0, %v5336_v26  ;;  %v5354_v48 = vadd.f32 %v5250_v27, %v1025_v28  ;;  %v1110_v55 = vand.u32 2147483647, %v5341_v35 }
  0xf0   : > { %v4556_v36 = vpop.eup %4555  ;;  %4385 = vmatprep.mubr.msk.f32.mxu1 %vm1400_vm2, %v4554_v31  ;;  %v4338_v39 = vpop.f32.mrf.mxu1  ;;  %v1127_v61 = vsub.f32 0.0, %v1111_v37  ;;  %4581 = vtanh.f32 %v5336_v26  ;;  %v1146_v5 = vmul.f32 1.442695, %v1124_v42 }
  0xf1   : > { %v5346_v40 = vpop.eup %4557  ;;  %4386 = vmatmul.mubr.msk.f32.gmra.mxu1 %vm1400_vm2, %v4556_v36  ;;  %7544 = vst [vmem:[#allocation4_spill] sm:$0xff] %v5351_v47  ;;  %7545 = vst [vmem:[#allocation5_spill] sm:$0xff] %v5354_v48  ;;  %v5360_v56 = vadd.f32 %v4338_v39, %v5250_v27  ;;  %v1113_v63 = vand.u32 2147483647, %v5351_v47  ;;  %v5368_v0 = vmul.f32 -2.0, %v5354_v48  ;;  %4583 = vtanh.f32 %v5354_v48  ;;  %v5398_v42 = vpop.f32.mrf.mxu0 }
  0xf2   : > { %v1035_v49 = vpop.f32.mrf.mxu1  ;;  %v4560_v53 = vpop.eup %4559  ;;  %4585 = vpow2.f32 %v1144_v43  ;;  %v1126_v13 = vsub.f32 0.0, %v1110_v55  ;;  %v1152_v21 = vmul.f32 1.442695, %v1127_v61 }
  0xf3   : > { %7546 = vst [vmem:[#allocation6_spill] sm:$0xff] %v5360_v56  ;;  %v5363_v57 = vadd.f32 %v5250_v27, %v1035_v49  ;;  %v4562_v58 = vpop.eup %4561  ;;  %7548 = vst [vmem:[#allocation8_spill] sm:$0xff] %v5368_v0  ;;  %v1112_v9 = vand.u32 2147483647, %v5368_v0  ;;  %4587 = vpow2.f32 %v1142_v45  ;;  %v5381_v14 = vmul.f32 -2.0, %v5360_v56 }
  0xf4   : > { %v4341_v3 = vpop.f32.mrf.mxu1  ;;  %v5370_v4 = vpop.eup %4563  ;;  %4388 = vmatprep.mubr.msk.f32.mxu1 %vm1400_vm2, %v4562_v58  ;;  %4589 = vpow2.f32 %v1148_v54  ;;  %v1129_v23 = vsub.f32 0.0, %v1113_v63  ;;  %v1150_v43 = vmul.f32 1.442695, %v1126_v13  ;;  %v5410_v63 = vadd.f32 -0.6931472, %v5253_v29 }
  0xf5   : > { %7547 = vst [vmem:[#allocation7_spill] sm:$0xff] %v5363_v57  ;;  %v5374_v8 = vpop.eup %4565  ;;  %4389 = vmatmul.mubr.msk.f32.gmra.mxu1 %vm1400_vm2, %v4560_v53  ;;  %7549 = vst [vmem:[#allocation9_spill] sm:$0xff] %v5381_v14  ;;  %v5384_v16 = vmul.f32 -2.0, %v5363_v57  ;;  %4591 = vpow2.f32 %v1146_v5  ;;  %v1128_v31 = vsub.f32 0.0, %v1112_v9  ;;  %v1115_v32 = vand.u32 2147483647, %v5381_v14 }
  0xf6   : > { %v4568_v12 = vpop.eup %4567  ;;  %v1045_v24 = vpop.f32.mrf.mxu1  ;;  %4593 = vtanh.f32 %v5360_v56  ;;  %v5395_v39 = vadd.f32 %v4341_v3, %v5250_v27  ;;  %v1156_v54 = vmul.f32 1.442695, %v1129_v23  ;;  %v770_v23 = vmax.f32 %v5312_v11, 1e-37 }
  0xf7   : > { %7550 = vst [vmem:[#allocation10_spill] sm:$0xff] %v5384_v16  ;;  %v4570_v19 = vpop.eup %4569  ;;  %v1114_v36 = vand.u32 2147483647, %v5384_v16  ;;  %v1131_v45 = vsub.f32 0.0, %v1115_v32  ;;  %4595 = vtanh.f32 %v5363_v57  ;;  %v5402_v49 = vadd.f32 %v5250_v27, %v1045_v24 }
  0xf8   : > { %v5386_v28 = vpop.eup %4571  ;;  %4391 = vmatprep.mubr.msk.f32.mxu1 %vm1400_vm2, %v4570_v19  ;;  %7551 = vst [vmem:[#allocation11_spill] sm:$0xff] %v5395_v39  ;;  %4597 = vpow2.f32 %v1152_v21  ;;  %v5407_v58 = vmul.f32 -2.0, %v5395_v39  ;;  %v1154_v5 = vmul.f32 1.442695, %v1128_v31  ;;  %v5419_v19 = vpop.f32.mrf.mxu0  ;;  %v5422_v21 = vadd.f32 -0.6931472, %v5259_v34 }
  0xf9   : > { %v5391_v37 = vpop.eup %4573  ;;  %4392 = vmatmul.mubr.msk.f32.gmra.mxu1 %vm1400_vm2, %v4568_v12  ;;  %7552 = vst [vmem:[#allocation12_spill] sm:$0xff] %v5402_v49  ;;  %v1130_v55 = vsub.f32 0.0, %v1114_v36  ;;  %4599 = vtanh.f32 %v5395_v39  ;;  %v1160_v27 = vmul.f32 1.442695, %v1131_v45  ;;  %v5416_v13 = vmul.f32 -2.0, %v5402_v49 }
  0xfa   : > { %v5404_v53 = vpop.eup %4575  ;;  %7553 = vst [vmem:[#allocation13_spill] sm:$0xff] %v5407_v58  ;;  %v1117_v12 = vand.u32 2147483647, %v5407_v58  ;;  %4601 = vtanh.f32 %v5402_v49  ;;  %v5430_v45 = vadd.f32 -0.6931472, %v5267_v41 }
  0xfb   : > { %v4578_v61 = vpop.eup %4577  ;;  %7554 = vst [vmem:[#allocation14_spill] sm:$0xff] %v5416_v13  ;;  %4603 = vpow2.f32 %v1150_v43  ;;  %v1158_v24 = vmul.f32 1.442695, %v1130_v55  ;;  %v1116_v32 = vand.u32 2147483647, %v5416_v13  ;;  %v737_v55 = vpop.f32.mrf.mxu0 }
  0xfc   : > { %v4580_v9 = vpop.eup %4579  ;;  %4605 = vpow2.f32 %v1156_v54  ;;  %v1133_v31 = vsub.f32 0.0, %v1117_v12  ;;  %v773_v34 = vmax.f32 %v5338_v30, 1e-37  ;;  %v772_v43 = vmax.f32 %v5356_v51, 1e-37 }
  0xfd   : > { %4394 = vmatprep.mubr.msk.f32.mxu1 %vm1400_vm2, %v4580_v9  ;;  %v4582_v36 = vpop.eup %4581  ;;  %4607 = vpow2.f32 %v1154_v5  ;;  %v5436_v11 = vadd.f32 -0.6931472, %v5272_v44  ;;  %v1132_v54 = vsub.f32 0.0, %v1116_v32  ;;  %v5442_v41 = vadd.f32 -0.6931472, %v5283_v52 }
  0xfe   : > { %4395 = vmatmul.mubr.msk.f32.gmra.mxu1 %vm1400_vm2, %v4578_v61  ;;  %v4584_v3 = vpop.eup %4583  ;;  %4609 = vpow2.f32 %v1160_v27  ;;  %v1164_v5 = vmul.f32 1.442695, %v1133_v31  ;;  %v5449_v44 = vadd.f32 -0.6931472, %v5288_v59  ;;  %v775_v27 = vmax.f32 %v5378_v10, 1e-37  ;;  %v4312_v10 = vpop.f32.mrf.mxu0 }
  0xff   : > { %v5438_v12 = vpop.eup %4585  ;;  %4611 = vlog2.f32 %v770_v23  ;;  %4397 = vmatprep.mubr.msk.f32.mxu1 %vm1400_vm2, %v4584_v3  ;;  %v5457_v23 = vadd.f32 -0.6931472, %v5291_v60  ;;  %v774_v3 = vmax.f32 %v5398_v42, 1e-37  ;;  %v5468_v52 = vadd.f32 -0.6931472, %v5323_v18 }
 0x100   : > { %v5445_v30 = vpop.eup %4587  ;;  %4613 = vpow2.f32 %v1158_v24  ;;  %v5464_v24 = vadd.f32 -0.6931472, %v5305_v6  ;;  %v777_v60 = vmax.f32 %v5419_v19, 1e-37  ;;  %v5475_v6 = vld [vmem:[%s7454_s4] ss:$0 sm:$0xff]  ;;  %v5487_v29 = vpop.f32.mrf.mxu0 }
 0x101   : > { %v5453_v32 = vpop.eup %4589  ;;  %4615 = vlog2.f32 %v772_v43  ;;  %7555 = vst [vmem:[#allocation15_spill] sm:$0xff] %v5468_v52  ;;  %7556 = vst [vmem:[#allocation16_spill] sm:$0xff] %v5475_v6  ;;  %v776_v19 = vmax.f32 %v737_v55, 1e-37  ;;  %v785_v43 = vmul.f32 0.6931472, %v5307_v7 }
 0x102   : > { %4398 = vmatmul.mubr.msk.f32.gmra.mxu1 %vm1400_vm2, %v4582_v36  ;;  %v5460_v31 = vpop.eup %4591  ;;  %v1162_v36 = vmul.f32 1.442695, %v1132_v54  ;;  %4617 = vlog2.f32 %v773_v34  ;;  %v1166_v34 = vadd.f32 1.0, %v5374_v8  ;;  %v1169_v54 = vmul.f32 -0.5, %v5374_v8 }
 0x103   : > { %v4594_v51 = vpop.eup %4593  ;;  %4619 = vpow2.f32 %v1164_v5  ;;  %v783_v5 = vmul.f32 0.6931472, %v5326_v20  ;;  %v789_v9 = vmul.f32 0.6931472, %v5330_v22  ;;  %v779_v61 = vmax.f32 %v4312_v10, 1e-37 }
 0x104   : > { %v4596_v42 = vpop.eup %4595  ;;  %4621 = vlog2.f32 %v775_v27  ;;  %v787_v18 = vmul.f32 0.6931472, %v5346_v40  ;;  %v1184_v20 = vadd.f32 1.0, %v5404_v53  ;;  %v793_v7 = vmul.f32 0.6931472, %v5386_v28 }
 0x105   : > { %v5479_v59 = vpop.eup %4597  ;;  %4400 = vmatprep.mubr.msk.f32.mxu1 %vm1400_vm2, %v4596_v42  ;;  %4623 = vlog2.f32 %v774_v3  ;;  %v1187_v3 = vmul.f32 -0.5, %v5404_v53  ;;  %v1170_v22 = vadd.f32 1.0, %v1169_v54  ;;  %v5501_v10 = vadd.f32 %v5475_v6, %v783_v5 }
 0x106   : > { %v4600_v27 = vpop.eup %4599  ;;  %4625 = vpow2.f32 %v1162_v36  ;;  %4401 = vmatmul.mubr.msk.f32.gmra.mxu1 %vm1400_vm2, %v4594_v51  ;;  %v1175_v51 = vadd.f32 1.0, %v5370_v4  ;;  %v1172_v28 = vand.u32 2147483647, %v5374_v8  ;;  %v1196_v40 = vmul.f32 -0.5, %v5391_v37 }
 0x107   : > { %v4602_v39 = vpop.eup %4601  ;;  %4627 = vlog2.f32 %v777_v60  ;;  %v1193_v60 = vadd.f32 1.0, %v5391_v37  ;;  %v1188_v5 = vadd.f32 1.0, %v1187_v3  ;;  %v5517_v58 = vmul.f32 %v5374_v8, %v1170_v22 }
 0x108   : > { %v5492_v55 = vpop.eup %4603  ;;  %4403 = vmatprep.mubr.msk.f32.mxu1 %vm1400_vm2, %v4602_v39  ;;  %4629 = vlog2.f32 %v1166_v34  ;;  %v1178_v39 = vmul.f32 -0.5, %v5370_v4  ;;  %v1202_v34 = vadd.f32 1.0, %v5445_v30  ;;  %v5524_v16 = vadd.f32 %v5475_v6, %v785_v43 }
 0x109   : > { %v5497_v36 = vpop.eup %4605  ;;  %4631 = vlog2.f32 %v776_v19  ;;  %v5513_v19 = vadd.f32 %v5475_v6, %v787_v18  ;;  %v1181_v18 = vand.u32 2147483647, %v5370_v4  ;;  %v5529_v8 = vadd.f32 %v5475_v6, %v789_v9 }
 0x10a   : > { %7557 = vst [vmem:[#allocation17_spill] sm:$0xff] %v5497_v36  ;;  %v5504_v42 = vpop.eup %4607  ;;  %4404 = vmatmul.mubr.msk.f32.gmra.mxu1 %vm1400_vm2, %v4600_v27  ;;  %4633 = vlog2.f32 %v779_v61  ;;  %v1190_v61 = vand.u32 2147483647, %v5404_v53  ;;  %v1211_v27 = vadd.f32 1.0, %v5438_v12  ;;  %v1179_v57 = vadd.f32 1.0, %v1178_v39 }
 0x10b   : > { %v5510_v54 = vpop.eup %4609  ;;  %4635 = vlog2.f32 %v1184_v20  ;;  %v1205_v20 = vmul.f32 -0.5, %v5445_v30  ;;  %v1220_v22 = vadd.f32 1.0, %v5460_v31  ;;  %vm5532_vm3 = vcmp.lt.f32.partialorder %v1172_v28, 0.0004427343 }
 0x10c   : > { %7558 = vst [vmem:[#allocation18_spill] sm:$0xff] %v5510_v54  ;;  %v4612_v13 = vpop.eup %4611  ;;  %4637 = vlog2.f32 %v1175_v51  ;;  %v5537_v43 = vmul.f32 %v5404_v53, %v1188_v5  ;;  %v1199_v39 = vand.u32 2147483647, %v5391_v37  ;;  %v1214_v9 = vmul.f32 -0.5, %v5438_v12 }
 0x10d   : > { %v5521_v49 = vpop.eup %4613  ;;  %4639 = vlog2.f32 %v1193_v60  ;;  %v791_v14 = vmul.f32 0.6931472, %v4612_v13  ;;  %v1197_v60 = vadd.f32 1.0, %v1196_v40  ;;  %v1206_v28 = vadd.f32 1.0, %v1205_v20 }
 0x10e   : > { %7559 = vst [vmem:[#allocation19_spill] sm:$0xff] %v5521_v49  ;;  %v4616_v3 = vpop.eup %4615  ;;  %4641 = vlog2.f32 %v1202_v34  ;;  %v1223_v34 = vmul.f32 -0.5, %v5460_v31  ;;  %v1208_v48 = vand.u32 2147483647, %v5445_v30  ;;  %v1229_v54 = vadd.f32 1.0, %v5453_v32 }
 0x10f   : > { %v4618_v51 = vpop.eup %4617  ;;  %4643 = vlog2.f32 %v1211_v27  ;;  %v795_v13 = vmul.f32 0.6931472, %v4616_v3  ;;  %vm5546_vm4 = vcmp.lt.f32.partialorder %v1190_v61, 0.0004427343  ;;  %v1180_v5 = vmul.f32 %v5370_v4, %v1179_v57 }
 0x110   : > { %v5539_v47 = vpop.eup %4619  ;;  %4645 = vlog2.f32 %v1220_v22  ;;  %v5552_v27 = vadd.f32 %v5475_v6, %v793_v7  ;;  %v1217_v22 = vand.u32 2147483647, %v5438_v12  ;;  %v797_v20 = vmul.f32 0.6931472, %v4618_v51 }
 0x111   : > { %7562 = vst [vmem:[#allocation20_spill] sm:$0xff] %v5539_v47  ;;  %v4622_v26 = vpop.eup %4621  ;;  %v1232_v47 = vmul.f32 -0.5, %v5453_v32  ;;  %vm5558_vm5 = vcmp.lt.f32.partialorder %v1181_v18, 0.0004427343  ;;  %v1198_v61 = vmul.f32 %v5391_v37, %v1197_v60  ;;  %v5564_v49 = vadd.f32 %v5475_v6, %v791_v14 }
 0x112   : > { %v4624_v53 = vpop.eup %4623  ;;  %4647 = vlog2.f32 %v1229_v54  ;;  %vm5568_vm6 = vcmp.lt.f32.partialorder %v1199_v39, 0.0004427343  ;;  %v1215_v7 = vadd.f32 1.0, %v1214_v9  ;;  %v1224_v36 = vadd.f32 1.0, %v1223_v34 }
 0x113   : > { %v5556_v3 = vpop.eup %4625  ;;  %v1226_v51 = vand.u32 2147483647, %v5460_v31  ;;  %v1238_v18 = vadd.f32 1.0, %v5492_v55  ;;  %v5574_v52 = vmul.f32 0.6931472, %v4622_v26  ;;  %v1207_v14 = vmul.f32 %v5445_v30, %v1206_v28 }
 0x114   : > { %7565 = vst [vmem:[#allocation21_spill] sm:$0xff] %v5556_v3  ;;  %v5566_v57 = vpop.eup %4627  ;;  %v5576_v37 = vmul.f32 0.6931472, %v4624_v53  ;;  %vm5579_vm7 = vcmp.lt.f32.partialorder %v1208_v48, 0.0004427343  ;;  %v5584_v60 = vadd.f32 %v5475_v6, %v795_v13  ;;  %v1233_v26 = vadd.f32 1.0, %v1232_v47 }
 0x115   : > { %7568 = vst [vmem:[#allocation22_spill] sm:$0xff] %v5566_v57  ;;  %v4630_v3 = vpop.eup %4629  ;;  %7571 = vst [vmem:[#allocation23_spill] sm:$0xff] %v5574_v52  ;;  %vm5588_vm8 = vcmp.lt.f32.partialorder %v1217_v22, 0.0004427343  ;;  %4649 = vlog2.f32 %v1238_v18  ;;  %v1241_v53 = vmul.f32 -0.5, %v5492_v55  ;;  %v5596_v48 = vadd.f32 %v5475_v6, %v797_v20 }
 0x116   : > { %7572 = vst [vmem:[#allocation24_spill] sm:$0xff] %v5576_v37  ;;  %v5586_v39 = vpop.eup %4631  ;;  %v1168_v9 = vmul.f32 0.6931472, %v4630_v3  ;;  %v1235_v30 = vand.u32 2147483647, %v5453_v32  ;;  %v1247_v13 = vadd.f32 1.0, %v5479_v59  ;;  %v1216_v47 = vmul.f32 %v5438_v12, %v1215_v7 }
 0x117   : > { %7575 = vst [vmem:[#allocation25_spill] sm:$0xff] %v5586_v39  ;;  %v5593_v57 = vpop.eup %4633  ;;  %7579 = vst [vmem:[#allocation27_spill] sm:$0xff] %v5596_v48  ;;  %v1250_v28 = vmul.f32 -0.5, %v5479_v59  ;;  %v1225_v18 = vmul.f32 %v5460_v31, %v1224_v36  ;;  %vm5606_vm9 = vcmp.lt.f32.partialorder %v1226_v51, 0.0004427343  ;;  %v7582_v39 = vmax.f32 %v5263_v38, 0.0 }
 0x118   : > { %7578 = vst [vmem:[#allocation26_spill] sm:$0xff] %v5593_v57  ;;  %v4636_v3 = vpop.eup %4635  ;;  %v1174_v22 = vsel %vm5532_vm3, %v5517_v58, %v1168_v9  ;;  %v1244_v25 = vand.u32 2147483647, %v5492_v55  ;;  %4651 = vlog2.f32 %v1247_v13  ;;  %v1234_v56 = vmul.f32 %v5453_v32, %v1233_v26 }
 0x119   : > { %v4638_v20 = vpop.eup %4637  ;;  %v1310_v48 = vadd.f32 %v1174_v22, %v7582_v39  ;;  %v1186_v52 = vmul.f32 0.6931472, %v4636_v3  ;;  %v1242_v58 = vadd.f32 1.0, %v1241_v53  ;;  %v1253_v12 = vand.u32 2147483647, %v5479_v59 }
 0x11a   : > { %v4640_v6 = vpop.eup %4639  ;;  %v1177_v37 = vmul.f32 0.6931472, %v4638_v20  ;;  %vm5619_vm10 = vcmp.lt.f32.partialorder %v1235_v30, 0.0004427343  ;;  %v1251_v39 = vadd.f32 1.0, %v1250_v28  ;;  %v7585_v13 = vmax.f32 %v5278_v50, 0.0 }
 0x11b   : > { %v4642_v31 = vpop.eup %4641  ;;  %v1326_v36 = vadd.f32 %v5422_v21, %v1310_v48  ;;  %v1192_v7 = vsel %vm5546_vm4, %v5537_v43, %v1186_v52  ;;  %v1195_v38 = vmul.f32 0.6931472, %v4640_v6  ;;  %v1256_v21 = vadd.f32 1.0, %v5504_v42 }
 0x11c   : > { %v4644_v9 = vpop.eup %4643  ;;  %v1312_v32 = vadd.f32 %v1192_v7, %v7585_v13  ;;  %v1183_v26 = vsel %vm5558_vm5, %v1180_v5, %v1177_v37  ;;  %v1204_v53 = vmul.f32 0.6931472, %v4642_v31  ;;  %v7586_v52 = vmax.f32 %v5256_v33, 0.0 }
 0x11d   : > { %v4646_v48 = vpop.eup %4645  ;;  %v1342_v3 = vmul.f32 -2.0, %v1326_v36  ;;  %v1201_v43 = vsel %vm5568_vm6, %v1198_v61, %v1195_v38  ;;  %v1213_v40 = vmul.f32 0.6931472, %v4644_v9  ;;  %v7587_v50 = vmax.f32 %v5275_v46, 0.0 }
 0x11e   : > { %v1311_v6 = vadd.f32 %v1183_v26, %v7586_v52  ;;  %v1328_v30 = vadd.f32 %v5436_v11, %v1312_v32  ;;  %v1210_v0 = vsel %vm5579_vm7, %v1207_v14, %v1204_v53  ;;  %v1222_v5 = vmul.f32 0.6931472, %v4646_v48 }
 0x11f   : > { %v1313_v28 = vadd.f32 %v1201_v43, %v7587_v50  ;;  %v5638_v37 = vadd.f32 %v1342_v3, %v5501_v10  ;;  %v7588_v33 = vmax.f32 %v5298_v1, 0.0  ;;  %v1219_v61 = vsel %vm5588_vm8, %v1216_v47, %v1213_v40  ;;  %v4648_v4 = vpop.eup %4647  ;;  %v7595_v50 = vld [vmem:[#allocation16_spill] sm:$0xff] }
 0x120   : > { %v1327_v22 = vadd.f32 %v5410_v63, %v1311_v6  ;;  %v1344_v11 = vmul.f32 -2.0, %v1328_v30  ;;  %v7589_v31 = vmax.f32 %v5294_v62, 0.0  ;;  %v1228_v14 = vsel %vm5606_vm9, %v1225_v18, %v1222_v5  ;;  %v7598_v5 = vld [vmem:[#allocation15_spill] sm:$0xff] }
 0x121   : > { %v1314_v20 = vadd.f32 %v1210_v0, %v7588_v33  ;;  %v1329_v46 = vadd.f32 %v5430_v45, %v1313_v28  ;;  %v1401_v10 = vsel %vm1400_vm2, %v5638_v37, -inf  ;;  %v7590_v36 = vmax.f32 %v5316_v15, 0.0  ;;  %v7599_v33 = vld [vmem:[#allocation23_spill] sm:$0xff] }
 0x122   : > { %v1315_v54 = vadd.f32 %v1219_v61, %v7589_v31  ;;  %v1343_v63 = vmul.f32 -2.0, %v1327_v22  ;;  %1402 = vmax.xlane.f32.xlu0 %v1401_v10  ;;  %v5656_v47 = vadd.f32 %v1344_v11, %v5513_v19  ;;  %v1231_v7 = vmul.f32 0.6931472, %v4648_v4  ;;  %v4650_v38 = vpop.eup %4649  ;;  %v7601_v4 = vld [vmem:[#allocation27_spill] sm:$0xff] }
 0x123   : > { %v1330_v1 = vadd.f32 %v5449_v44, %v1314_v20  ;;  %v1316_v34 = vadd.f32 %v1228_v14, %v7590_v36  ;;  %v1345_v45 = vmul.f32 -2.0, %v1329_v46  ;;  %4653 = vlog2.f32 %v1256_v21  ;;  %v5677_v21 = vpop.f32.mrf.mxu0  ;;  %v7602_v31 = vld [vmem:[#allocation19_spill] sm:$0xff] }
 0x124   : > { %v1331_v62 = vadd.f32 %v5442_v41, %v1315_v54  ;;  %v5660_v57 = vadd.f32 %v1343_v63, %v5524_v16  ;;  %v1407_v15 = vsel %vm1400_vm2, %v5656_v47, -inf  ;;  %v1237_v13 = vsel %vm5619_vm10, %v1234_v56, %v1231_v7 }
 0x125   : > { %v1346_v18 = vmul.f32 -2.0, %v1330_v1  ;;  %v1332_v9 = vadd.f32 %v5464_v24, %v1316_v34  ;;  %v5666_v44 = vadd.f32 %v1345_v45, %v5529_v8  ;;  %1408 = vmax.xlane.f32.xlu1 %v1407_v15  ;;  %v7591_v24 = vmax.f32 %v5302_v2, 0.0  ;;  %v4652_v53 = vpop.eup %4651  ;;  %v757_v30 = vpop.f32.mrf.mxu0 }
 0x126   : > { %v1347_v19 = vmul.f32 -2.0, %v1331_v62  ;;  %v1404_v41 = vsel %vm1400_vm2, %v5660_v57, -inf  ;;  %v1240_v8 = vmul.f32 0.6931472, %v4650_v38  ;;  %v1243_v48 = vmul.f32 %v5492_v55, %v1242_v58  ;;  %v7603_v62 = vld [vmem:[#allocation8_spill] sm:$0xff] }
 0x127   : > { %v5673_v16 = vadd.f32 %v1346_v18, %v5564_v49  ;;  %v1348_v32 = vmul.f32 -2.0, %v1332_v9  ;;  %v1317_v26 = vadd.f32 %v1237_v13, %v7591_v24  ;;  %1405 = vmax.xlane.f32.xlu0 %v1404_v41  ;;  %vm1245_vm11 = vcmp.lt.f32.partialorder %v1244_v25, 0.0004427343  ;;  %v7604_v9 = vld [vmem:[#allocation18_spill] sm:$0xff] }
 0x128   : > { %v1252_v56 = vmul.f32 %v5479_v59, %v1251_v39  ;;  %v1249_v3 = vmul.f32 0.6931472, %v4652_v53  ;;  %v1410_v52 = vsel %vm1400_vm2, %v5666_v44, -inf  ;;  %v5692_v6 = vadd.f32 %v1347_v19, %v5552_v27  ;;  %v7594_v27 = vld [vmem:[#allocation24_spill] sm:$0xff]  ;;  %v7596_v59 = vld [vmem:[#allocation2_spill] sm:$0xff] }
 0x129   : > { %v1413_v49 = vsel %vm1400_vm2, %v5673_v16, -inf  ;;  %v5686_v51 = vadd.f32 %v1348_v32, %v5584_v60  ;;  %v1333_v2 = vadd.f32 %v5457_v23, %v1317_v26  ;;  %v1246_v58 = vsel %vm1245_vm11, %v1243_v48, %v1240_v8  ;;  %1411 = vmax.xlane.f32.xlu1 %v1410_v52  ;;  %v7605_v32 = vld [vmem:[#allocation25_spill] sm:$0xff] }
 0x12a   : > { %vm1254_vm12 = vcmp.lt.f32.partialorder %v1253_v12, 0.0004427343  ;;  %v7592_v55 = vmax.f32 %v5341_v35, 0.0  ;;  %v1259_v43 = vmul.f32 -0.5, %v5504_v42  ;;  %v3993_v23 = vadd.f32 -0.6931472, %v5320_v17 }
 0x12b   : > { %v1349_v25 = vmul.f32 -2.0, %v1333_v2  ;;  %v1255_v60 = vsel %vm1254_vm12, %v1252_v56, %v1249_v3  ;;  %v7593_v40 = vmax.f32 %v5487_v29, 1e-37  ;;  %1414 = vmax.xlane.f32.xlu0 %v1413_v49  ;;  %v844_v28 = vadd.f32 %v7595_v50, %v7594_v27  ;;  %v7600_v17 = vld [vmem:[#allocation17_spill] sm:$0xff] }
 0x12c   : > { %v1318_v39 = vadd.f32 %v1246_v58, %v7592_v55  ;;  %v7597_v12 = vmax.f32 %v7596_v59, 0.0  ;;  %v1419_v35 = vsel %vm1400_vm2, %v5686_v51, -inf  ;;  %v845_v20 = vadd.f32 %v7595_v50, %v7599_v33  ;;  %v7606_v48 = vld [vmem:[#allocation21_spill] sm:$0xff]  ;;  %v7608_v58 = vld [vmem:[#allocation20_spill] sm:$0xff] }
 0x12d   : > { %4655 = vlog2.f32 %v7593_v40  ;;  %v1265_v61 = vadd.f32 1.0, %v7600_v17  ;;  %v1416_v29 = vsel %vm1400_vm2, %v5692_v6, -inf  ;;  %v5715_v11 = vadd.f32 %v1349_v25, %v7601_v4  ;;  %v7607_v49 = vld [vmem:[#allocation5_spill] sm:$0xff] }
 0x12e   : > { %v1319_v0 = vadd.f32 %v1255_v60, %v7597_v12  ;;  %v1334_v22 = vadd.f32 %v7598_v5, %v1318_v39  ;;  %v1274_v54 = vadd.f32 1.0, %v7602_v31  ;;  %v780_v14 = vmax.f32 %v757_v30, 1e-37  ;;  %1417 = vmax.xlane.f32.xlu1 %v1416_v29  ;;  %v7611_v12 = vld [vmem:[#allocation6_spill] sm:$0xff] }
 0x12f   : > { %v1260_v63 = vadd.f32 1.0, %v1259_v43  ;;  %4657 = vlog2.f32 %v1265_v61  ;;  %1420 = vmax.xlane.f32.xlu0 %v1419_v35  ;;  %v1262_v36 = vand.u32 2147483647, %v5504_v42  ;;  %v1096_v7 = vmax.f32 %v7603_v62, 0.0  ;;  %v7614_v29 = vld [vmem:[#allocation10_spill] sm:$0xff] }
 0x130   : > { %v1335_v46 = vadd.f32 %v3993_v23, %v1319_v0  ;;  %v1350_v10 = vmul.f32 -2.0, %v1334_v22  ;;  %4659 = vlog2.f32 %v1274_v54  ;;  %v4654_v45 = vpop.eup %4653  ;;  %v1422_v38 = vsel %vm1400_vm2, %v5715_v11, -inf  ;;  %v7609_v23 = vld [vmem:[#allocation3_spill] sm:$0xff]  ;;  %v7612_v22 = vld [vmem:[#allocation9_spill] sm:$0xff] }
 0x131   : > { %v1283_v15 = vadd.f32 1.0, %v7604_v9  ;;  %4661 = vlog2.f32 %v780_v14  ;;  %v1258_v13 = vmul.f32 0.6931472, %v4654_v45  ;;  %v1261_v41 = vmul.f32 %v5504_v42, %v1260_v63  ;;  %v7615_v14 = vld [vmem:[#allocation12_spill] sm:$0xff]  ;;  %v7616_v63 = vld [vmem:[#allocation22_spill] sm:$0xff] }
 0x132   : > { %v1351_v1 = vmul.f32 -2.0, %v1335_v46  ;;  %v5719_v34 = vadd.f32 %v1350_v10, %v844_v28  ;;  %1423 = vmax.xlane.f32.xlu1 %v1422_v38  ;;  %v803_v24 = vmul.f32 0.6931472, %v7605_v32  ;;  %v781_v26 = vmax.f32 %v5677_v21, 1e-37  ;;  %v1396_v21 = vld [vmem:[%s7457_s7 + $0x8] sm:$0xff] }
 0x133   : > { %vm1263_vm13 = vcmp.lt.f32.partialorder %v1262_v36, 0.0004427343  ;;  %4663 = vlog2.f32 %v1283_v15  ;;  %v1268_v8 = vmul.f32 -0.5, %v7600_v17  ;;  %v1292_v56 = vadd.f32 1.0, %v7606_v48  ;;  %4346 = vmatprep.subr.mxu0 %v1396_v21  ;;  %v7610_v28 = vld [vmem:[#allocation4_spill] sm:$0xff] }
 0x134   : > { %v5724_v18 = vadd.f32 %v1351_v1, %v845_v20  ;;  %v1425_v19 = vsel %vm1400_vm2, %v5719_v34, -inf  ;;  %v1264_v53 = vsel %vm1263_vm13, %v1261_v41, %v1258_v13  ;;  %v3994_v2 = vadd.f32 -0.6931472, %v7607_v49  ;;  %4347 = vmatpush3.msra.mxu0 %v1396_v21  ;;  %v7613_v20 = vld [vmem:[#allocation7_spill] sm:$0xff]  ;;  %v7619_v49 = vld [vmem:[#allocation13_spill] sm:$0xff] }
 0x135   : > { %1426 = vmax.xlane.f32.xlu0 %v1425_v19  ;;  %v1320_v52 = vadd.f32 %v1264_v53, %v1096_v7  ;;  %v1277_v42 = vmul.f32 -0.5, %v7602_v31  ;;  %4665 = vlog2.f32 %v1292_v56  ;;  %v1301_v25 = vadd.f32 1.0, %v7608_v58 }
 0x136   : > { %v1428_v3 = vsel %vm1400_vm2, %v5724_v18, -inf  ;;  %4667 = vlog2.f32 %v781_v26  ;;  %v846_v55 = vadd.f32 %v7595_v50, %v803_v24  ;;  %v1271_v60 = vand.u32 2147483647, %v7600_v17  ;;  %v1395_v26 = vld [vmem:[%s7457_s7] sm:$0xff] }
 0x137   : > { %1429 = vmax.xlane.f32.xlu1 %v1428_v3  ;;  %v1336_v39 = vadd.f32 %v3994_v2, %v1320_v52  ;;  %v3995_v40 = vadd.f32 -0.6931472, %v7609_v23  ;;  %v1269_v30 = vadd.f32 1.0, %v1268_v8  ;;  %v1286_v27 = vmul.f32 -0.5, %v7604_v9  ;;  %4348 = vmatprep.subr.mxu0 %v1395_v26  ;;  %v7620_v3 = vld [vmem:[#allocation26_spill] sm:$0xff] }
 0x138   : > { %4669 = vlog2.f32 %v1301_v25  ;;  %v1097_v59 = vmax.f32 %v7610_v28, 0.0  ;;  %v5748_v0 = vadd.f32 -0.6931472, %v7611_v12  ;;  %v1278_v5 = vadd.f32 1.0, %v1277_v42  ;;  %4349 = vmatpush3.msra.mxu0 %v1395_v26  ;;  %v7621_v28 = vld [vmem:[#allocation14_spill] sm:$0xff] }
 0x139   : > { %v1352_v35 = vmul.f32 -2.0, %v1336_v39  ;;  %v1099_v33 = vmax.f32 %v7612_v22, 0.0  ;;  %v3996_v61 = vadd.f32 -0.6931472, %v7613_v20  ;;  %v1098_v4 = vmax.f32 %v7614_v29, 0.0 }
 0x13a   : > { %v4656_v43 = vpop.eup %4655  ;;  %v1280_v46 = vand.u32 2147483647, %v7602_v31  ;;  %v5755_v10 = vadd.f32 -0.6931472, %v7615_v14  ;;  %v805_v1 = vmul.f32 0.6931472, %v7616_v63  ;;  %v1270_v38 = vmul.f32 %v7600_v17, %v1269_v30 }
 0x13b   : > { %v5758_v36 = vadd.f32 %v1352_v35, %v846_v55  ;;  %vm5760_vm14 = vcmp.lt.f32.partialorder %v1271_v60, 0.0004427343  ;;  %v1287_v15 = vadd.f32 1.0, %v1286_v27  ;;  %v1295_v19 = vmul.f32 -0.5, %v7606_v48 }
 0x13c   : > { %v4658_v54 = vpop.eup %4657  ;;  %v1279_v32 = vmul.f32 %v7602_v31, %v1278_v5  ;;  %v1304_v24 = vmul.f32 -0.5, %v7608_v58  ;;  %v807_v53 = vmul.f32 0.6931472, %v4656_v43  ;;  %vm1281_vm15 = vcmp.lt.f32.partialorder %v1280_v46, 0.0004427343 }
 0x13d   : > { %v4660_v62 = vpop.eup %4659  ;;  %v1267_v7 = vmul.f32 0.6931472, %v4658_v54  ;;  %v1431_v13 = vsel %vm1400_vm2, %v5758_v36, -inf  ;;  %v1289_v8 = vand.u32 2147483647, %v7604_v9  ;;  %v1101_v2 = vmax.f32 %v7619_v49, 0.0 }
 0x13e   : > { %v1276_v41 = vmul.f32 0.6931472, %v4660_v62  ;;  %1432 = vmax.xlane.f32.xlu0 %v1431_v13  ;;  %v4662_v56 = vpop.eup %4661  ;;  %v809_v31 = vmul.f32 0.6931472, %v7620_v3  ;;  %v847_v25 = vadd.f32 %v7595_v50, %v805_v1  ;;  %v1288_v39 = vmul.f32 %v7604_v9, %v1287_v15 }
 0x13f   : > { %v1273_v17 = vsel %vm5760_vm14, %v1270_v38, %v1267_v7  ;;  %v1296_v60 = vadd.f32 1.0, %v1295_v19  ;;  %v1298_v30 = vand.u32 2147483647, %v7606_v48  ;;  %v1305_v27 = vadd.f32 1.0, %v1304_v24  ;;  %v7622_v24 = vld [vmem:[#allocation11_spill] sm:$0xff] }
 0x140   : > { %v1321_v52 = vadd.f32 %v1273_v17, %v1097_v59  ;;  %v1282_v42 = vsel %vm1281_vm15, %v1279_v32, %v1276_v41  ;;  %v4664_v21 = vpop.eup %4663  ;;  %v1100_v12 = vmax.f32 %v7621_v28, 0.0  ;;  %v848_v35 = vadd.f32 %v7595_v50, %v807_v53 }
 0x141   : > { %v1322_v55 = vadd.f32 %v1282_v42, %v1098_v4  ;;  %v1285_v23 = vmul.f32 0.6931472, %v4664_v21  ;;  %vm1290_vm0 = vcmp.lt.f32.partialorder %v1289_v8, 0.0004427343  ;;  %v811_v22 = vmul.f32 0.6931472, %v4662_v56 }
 0x142   : > { %v1337_v43 = vadd.f32 %v3995_v40, %v1321_v52  ;;  %v4666_v59 = vpop.eup %4665  ;;  %v1307_v4 = vand.u32 2147483647, %v7608_v58  ;;  %v1297_v14 = vmul.f32 %v7606_v48, %v1296_v60  ;;  %v849_v45 = vadd.f32 %v7595_v50, %v809_v31 }
 0x143   : > { %v1338_v5 = vadd.f32 %v3996_v61, %v1322_v55  ;;  %v1291_v29 = vsel %vm1290_vm0, %v1288_v39, %v1285_v23  ;;  %v4668_v46 = vpop.eup %4667  ;;  %v1294_v40 = vmul.f32 0.6931472, %v4666_v59  ;;  %vm1299_vm3 = vcmp.lt.f32.partialorder %v1298_v30, 0.0004427343  ;;  %v2311_v55 = vld [vmem:[%s7459_s9] sm:$0xff] }
 0x144   : > { %v1353_v20 = vmul.f32 -2.0, %v1337_v43  ;;  %v1323_v54 = vadd.f32 %v1291_v29, %v1099_v33  ;;  %v1306_v61 = vmul.f32 %v7608_v58, %v1305_v27  ;;  %v813_v19 = vmul.f32 0.6931472, %v4668_v46  ;;  %v5827_v39 = vld [vmem:[%s7456_s6] ss:$0 sm:$0xff] }
 0x145   : > { %v1354_v9 = vmul.f32 -2.0, %v1338_v5  ;;  %v4670_v63 = vpop.eup %4669  ;;  %v1300_v38 = vsel %vm1299_vm3, %v1297_v14, %v1294_v40  ;;  %vm1308_vm4 = vcmp.lt.f32.partialorder %v1307_v4, 0.0004427343  ;;  %v3999_v58 = vadd.f32 -0.6931472, %v7622_v24 }
 0x146   : > { %v5785_v1 = vadd.f32 %v1353_v20, %v847_v25  ;;  %v1339_v7 = vadd.f32 %v5748_v0, %v1323_v54  ;;  %v1303_v15 = vmul.f32 0.6931472, %v4670_v63  ;;  %v1324_v13 = vadd.f32 %v1300_v38, %v1100_v12  ;;  %v2312_v25 = vld [vmem:[%s7459_s9 + $0x8] sm:$0xff] }
 0x147   : > { %v5789_v62 = vadd.f32 %v1354_v9, %v848_v35  ;;  %v850_v26 = vadd.f32 %v7595_v50, %v811_v22  ;;  %v851_v56 = vadd.f32 %v7595_v50, %v813_v19  ;;  %v2314_v50 = vld [vmem:[%s7459_s9 + $0x18] sm:$0xff] }
 0x148   : > { %v1434_v33 = vsel %vm1400_vm2, %v5785_v1, -inf  ;;  %v1355_v41 = vmul.f32 -2.0, %v1339_v7  ;;  %v1309_v32 = vsel %vm1308_vm4, %v1306_v61, %v1303_v15  ;;  %v1340_v0 = vadd.f32 %v5755_v10, %v1324_v13  ;;  %4438 = vmatprep.subr.mxu1 %v2314_v50 }
 0x149   : > { %1435 = vmax.xlane.f32.xlu1 %v1434_v33  ;;  %v1437_v48 = vsel %vm1400_vm2, %v5789_v62, -inf  ;;  %v1325_v53 = vadd.f32 %v1309_v32, %v1101_v2  ;;  %4439 = vmatpush3.msra.mxu1 %v2314_v50  ;;  %v2313_v2 = vld [vmem:[%s7459_s9 + $0x10] sm:$0xff] }
 0x14a   : > { %1438 = vmax.xlane.f32.xlu0 %v1437_v48  ;;  %v5799_v17 = vadd.f32 %v1355_v41, %v849_v45  ;;  %v1356_v8 = vmul.f32 -2.0, %v1340_v0  ;;  %4440 = vmatprep.subr.mxu1 %v2313_v2 }
 0x14b   : > { %v1341_v49 = vadd.f32 %v3999_v58, %v1325_v53  ;;  %4441 = vmatpush3.msra.mxu1 %v2313_v2 }
 0x14c   : > { %v1440_v3 = vsel %vm1400_vm2, %v5799_v17, -inf  ;;  %v5804_v31 = vadd.f32 %v1356_v8, %v850_v26  ;;  %4442 = vmatprep.subr.mxu1 %v2312_v25 }
 0x14d   : > { %1441 = vmax.xlane.f32.xlu1 %v1440_v3  ;;  %v1357_v52 = vmul.f32 -2.0, %v1341_v49  ;;  %4443 = vmatpush3.msra.mxu1 %v2312_v25 }
 0x14e   : > { %v1443_v42 = vsel %vm1400_vm2, %v5804_v31, -inf  ;;  %4444 = vmatprep.subr.mxu1 %v2311_v55 }
 0x14f   : > { %v5808_v21 = vadd.f32 %v1357_v52, %v851_v56  ;;  %1444 = vmax.xlane.f32.xlu0 %v1443_v42  ;;  %4445 = vmatpush3.msra.mxu1 %v2311_v55 }
 0x151   : > { %v1446_v10 = vsel %vm1400_vm2, %v5808_v21, -inf }
 0x152   : > { %1447 = vmax.xlane.f32.xlu1 %v1446_v10 }
 0x1ab   : > { %v5832_v23 = vpop.xlane.xlu0 %1402 }
 0x1ac   : > { %v4384_v60 = vpop.f32.mrf.mxu1  ;;  %v1449_v27 = vsub.f32 %v5638_v37, %v5832_v23 }
 0x1ad   : > { %v5830_v43 = vadd.f32 %v4384_v60, %v5827_v39 }
 0x1ae   : > { %v1896_v30 = vpop.f32.mrf.mxu1  ;;  %v1465_v35 = vmul.f32 1.442695, %v1449_v27  ;;  %v5839_v5 = vpop.xlane.xlu1 %1408 }
 0x1af   : > { %v5837_v28 = vadd.f32 %v5827_v39, %v1896_v30  ;;  %4671 = vtanh.f32 %v5830_v43  ;;  %v1451_v59 = vsub.f32 %v5656_v47, %v5839_v5 }
 0x1b0   : > { %v5844_v22 = vpop.xlane.xlu0 %1405 }
 0x1b1   : > { %v4387_v12 = vpop.f32.mrf.mxu1  ;;  %4673 = vtanh.f32 %v5837_v28  ;;  %v1450_v37 = vsub.f32 %v5660_v57, %v5844_v22  ;;  %v1469_v29 = vmul.f32 1.442695, %v1451_v59 }
 0x1b2   : > { %4675 = vpow2.f32 %v1465_v35  ;;  %v5850_v4 = vadd.f32 %v4387_v12, %v5827_v39  ;;  %v5852_v9 = vpop.xlane.xlu1 %1411 }
 0x1b3   : > { %v1906_v20 = vpop.f32.mrf.mxu1  ;;  %v1467_v46 = vmul.f32 1.442695, %v1450_v37  ;;  %4677 = vpow2.f32 %v1469_v29  ;;  %v1452_v40 = vsub.f32 %v5666_v44, %v5852_v9 }
 0x1b4   : > { %v5855_v54 = vadd.f32 %v5827_v39, %v1906_v20  ;;  %v5859_v14 = vpop.xlane.xlu0 %1414 }
 0x1b5   : > { %v4390_v47 = vpop.f32.mrf.mxu1  ;;  %7623 = vst [vmem:[#allocation24_spill] sm:$0xff] %v5859_v14  ;;  %4679 = vpow2.f32 %v1467_v46  ;;  %v1453_v57 = vsub.f32 %v5673_v16, %v5859_v14  ;;  %v1471_v45 = vmul.f32 1.442695, %v1452_v40 }
 0x1b6   : > { %4681 = vtanh.f32 %v5850_v4 }
 0x1b7   : > { %v1916_v63 = vpop.f32.mrf.mxu1  ;;  %v1473_v61 = vmul.f32 1.442695, %v1453_v57  ;;  %v5864_v7 = vpop.xlane.xlu1 %1417  ;;  %4683 = vtanh.f32 %v5855_v54 }
 0x1b8   : > { %7624 = vst [vmem:[#allocation16_spill] sm:$0xff] %v5864_v7  ;;  %4685 = vpow2.f32 %v1471_v45  ;;  %v1454_v44 = vsub.f32 %v5692_v6, %v5864_v7  ;;  %v5869_v15 = vpop.xlane.xlu0 %1420  ;;  %v5882_v53 = vadd.f32 %v5827_v39, %v1916_v63 }
 0x1b9   : > { %v4393_v38 = vpop.f32.mrf.mxu1  ;;  %7625 = vst [vmem:[#allocation2_spill] sm:$0xff] %v5869_v15  ;;  %4687 = vpow2.f32 %v1473_v61  ;;  %v1455_v16 = vsub.f32 %v5686_v51, %v5869_v15 }
 0x1ba   : > { %v1475_v33 = vmul.f32 1.442695, %v1454_v44  ;;  %v5902_v55 = vadd.f32 %v4393_v38, %v5827_v39 }
 0x1bb   : > { %v1926_v19 = vpop.f32.mrf.mxu1  ;;  %v1477_v13 = vmul.f32 1.442695, %v1455_v16  ;;  %v5873_v48 = vpop.xlane.xlu1 %1423 }
 0x1bc   : > { %7626 = vst [vmem:[#allocation15_spill] sm:$0xff] %v5873_v48  ;;  %v4672_v41 = vpop.eup %4671  ;;  %4689 = vpow2.f32 %v1475_v33  ;;  %v1456_v32 = vsub.f32 %v5715_v11, %v5873_v48  ;;  %v5889_v11 = vadd.f32 %v4390_v47, %v5827_v39  ;;  %v5899_v25 = vadd.f32 %v5827_v39, %v1926_v19 }
 0x1bd   : > { %4691 = vpow2.f32 %v1477_v13 }
 0x1be   : > { %v5877_v24 = vpop.xlane.xlu0 %1426  ;;  %v4674_v58 = vpop.eup %4673  ;;  %v1479_v51 = vmul.f32 1.442695, %v1456_v32 }
 0x1bf   : > { %7627 = vst [vmem:[#allocation23_spill] sm:$0xff] %v5877_v24  ;;  %v1457_v6 = vsub.f32 %v5719_v34, %v5877_v24  ;;  %v4396_v26 = vpop.f32.mrf.mxu1  ;;  %v4676_v0 = vpop.eup %4675  ;;  %4446 = vmatprep.mubr.msk.f32.mxu1 %vm1400_vm2, %v4674_v58 }
 0x1c0   : > { %4350 = vmatprep.mubr.msk.f32.mxu0 %vm1400_vm2, %v4676_v0  ;;  %v5886_v56 = vpop.xlane.xlu1 %1429  ;;  %4447 = vmatmul.mubr.msk.f32.vlgmr.msra.gmra.mxu1 %vm1400_vm2, %v4672_v41  ;;  %4693 = vpow2.f32 %v1479_v51  ;;  %v4678_v3 = vpop.eup %4677  ;;  %v5918_v20 = vadd.f32 %v4396_v26, %v5827_v39 }
 0x1c1   : > { %v1481_v8 = vmul.f32 1.442695, %v1457_v6  ;;  %7628 = vst [vmem:[#allocation17_spill] sm:$0xff] %v5886_v56  ;;  %v1936_v49 = vpop.f32.mrf.mxu1  ;;  %v1458_v34 = vsub.f32 %v5724_v18, %v5886_v56 }
 0x1c2   : > { %v4680_v42 = vpop.eup %4679  ;;  %v5906_v27 = vadd.f32 %v5827_v39, %v1936_v49 }
 0x1c3   : > { %4695 = vpow2.f32 %v1481_v8  ;;  %v4399_v52 = vpop.f32.mrf.mxu1  ;;  %v1483_v10 = vmul.f32 1.442695, %v1458_v34  ;;  %v4682_v50 = vpop.eup %4681  ;;  %4351 = vmatmul.mubr.msk.f32.vlgmr.msra.gmra.mxu0 %vm1400_vm2, %v4680_v42 }
 0x1c4   : > { %4697 = vtanh.f32 %v5882_v53  ;;  %v4684_v2 = vpop.eup %4683  ;;  %4353 = vmatprep.mubr.msk.f32.mxu0 %vm1400_vm2, %v4678_v3  ;;  %v5928_v40 = vadd.f32 %v4399_v52, %v5827_v39 }
 0x1c5   : > { %4699 = vtanh.f32 %v5889_v11  ;;  %v4686_v18 = vpop.eup %4685  ;;  %v1946_v60 = vpop.f32.mrf.mxu1  ;;  %4449 = vmatprep.mubr.msk.f32.mxu1 %vm1400_vm2, %v4684_v2 }
 0x1c6   : > { %4701 = vpow2.f32 %v1483_v10  ;;  %v4688_v30 = vpop.eup %4687  ;;  %4450 = vmatmul.mubr.msk.f32.gmra.mxu1 %vm1400_vm2, %v4682_v50 }
 0x1c7   : > { %v5909_v12 = vpop.xlane.xlu0 %1432  ;;  %4354 = vmatmul.mubr.msk.f32.gmra.mxu0 %vm1400_vm2, %v4686_v18  ;;  %4703 = vtanh.f32 %v5899_v25  ;;  %v4402_v37 = vpop.f32.mrf.mxu1 }
 0x1c8   : > { %7629 = vst [vmem:[#allocation27_spill] sm:$0xff] %v5909_v12  ;;  %v1459_v35 = vsub.f32 %v5758_v36, %v5909_v12  ;;  %4356 = vmatprep.mubr.msk.f32.mxu0 %vm1400_vm2, %v4688_v30  ;;  %4705 = vtanh.f32 %v5902_v55  ;;  %v5924_v36 = vadd.f32 %v5827_v39, %v1946_v60  ;;  %v5941_v19 = vadd.f32 %v4402_v37, %v5827_v39 }
 0x1c9   : > { %v4690_v59 = vpop.eup %4689  ;;  %4707 = vtanh.f32 %v5906_v27  ;;  %v1956_v57 = vpop.f32.mrf.mxu1 }
 0x1ca   : > { %v4692_v29 = vpop.eup %4691  ;;  %v1485_v46 = vmul.f32 1.442695, %v1459_v35  ;;  %v5934_v38 = vadd.f32 %v5827_v39, %v1956_v57 }
 0x1cb   : > { %4357 = vmatmul.mubr.msk.f32.gmra.mxu0 %vm1400_vm2, %v4690_v59  ;;  %v4405_v33 = vpop.f32.mrf.mxu1 }
 0x1cc   : > { %4709 = vpow2.f32 %v1485_v46  ;;  %4359 = vmatprep.mubr.msk.f32.mxu0 %vm1400_vm2, %v4692_v29  ;;  %v5966_v42 = vadd.f32 %v4405_v33, %v5827_v39  ;;  %v6002_v33 = vmul.f32 -2.0, %v5830_v43 }
 0x1cd   : > { %v4694_v47 = vpop.eup %4693  ;;  %4711 = vtanh.f32 %v5918_v20  ;;  %v1966_v0 = vpop.f32.mrf.mxu1 }
 0x1ce   : > { %4713 = vtanh.f32 %v5924_v36  ;;  %v5960_v49 = vadd.f32 %v5827_v39, %v1966_v0  ;;  %7635 = vst [vmem:[#allocation5_spill] sm:$0xff] %v5966_v42 }
 0x1cf   : > { %4360 = vmatmul.mubr.msk.f32.gmra.mxu0 %vm1400_vm2, %v4694_v47  ;;  %4715 = vtanh.f32 %v5928_v40 }
 0x1d0   : > { %v4696_v63 = vpop.eup %4695  ;;  %4717 = vtanh.f32 %v5934_v38  ;;  %7633 = vst [vmem:[#allocation25_spill] sm:$0xff] %v5960_v49 }
 0x1d1   : > { %v4698_v45 = vpop.eup %4697  ;;  %4362 = vmatprep.mubr.msk.f32.mxu0 %vm1400_vm2, %v4696_v63  ;;  %4719 = vtanh.f32 %v5941_v19  ;;  %v3234_v63 = vld [vmem:[%s7463_s13 + $0x18] sm:$0xff] }
 0x1d2   : > { %v4700_v61 = vpop.eup %4699  ;;  %4452 = vmatprep.mubr.msk.f32.mxu1 %vm1400_vm2, %v4698_v45  ;;  %v5937_v16 = vpop.xlane.xlu1 %1435  ;;  %4502 = vmatprep.subr.mxu1 %v3234_v63  ;;  %v3233_v45 = vld [vmem:[%s7463_s13 + $0x10] sm:$0xff] }
 0x1d3   : > { %v4702_v44 = vpop.eup %4701  ;;  %7630 = vst [vmem:[#allocation19_spill] sm:$0xff] %v5937_v16  ;;  %4453 = vmatmul.mubr.msk.f32.gmra.mxu1 %vm1400_vm2, %v4700_v61  ;;  %v1460_v13 = vsub.f32 %v5785_v1, %v5937_v16  ;;  %v5946_v41 = vpop.xlane.xlu0 %1438  ;;  %v3232_v61 = vld [vmem:[%s7463_s13 + $0x8] sm:$0xff] }
 0x1d4   : > { %7631 = vst [vmem:[#allocation8_spill] sm:$0xff] %v5946_v41  ;;  %v1461_v32 = vsub.f32 %v5789_v62, %v5946_v41  ;;  %4363 = vmatmul.mubr.msk.f32.gmra.mxu0 %vm1400_vm2, %v4702_v44  ;;  %v4704_v6 = vpop.eup %4703  ;;  %4503 = vmatpush3.msra.mxu1 %v3234_v63  ;;  %v3231_v44 = vld [vmem:[%s7463_s13] sm:$0xff] }
 0x1d5   : > { %v1487_v58 = vmul.f32 1.442695, %v1460_v13  ;;  %v4706_v51 = vpop.eup %4705  ;;  %4455 = vmatprep.mubr.msk.f32.mxu1 %vm1400_vm2, %v4704_v6  ;;  %4504 = vmatprep.subr.mxu1 %v3233_v45  ;;  %v6005_v13 = vmul.f32 -2.0, %v5837_v28  ;;  %v2318_v6 = vld [vmem:[%s7461_s11 + $0x10] sm:$0xff] }
 0x1d6   : > { %v1489_v26 = vmul.f32 1.442695, %v1461_v32  ;;  %v5953_v8 = vpop.xlane.xlu1 %1441  ;;  %v4708_v1 = vpop.eup %4707  ;;  %4505 = vmatpush3.msra.mxu1 %v3233_v45  ;;  %v2024_v32 = vand.u32 2147483647, %v6002_v33 }
 0x1d7   : > { %4721 = vpow2.f32 %v1487_v58  ;;  %7632 = vst [vmem:[#allocation18_spill] sm:$0xff] %v5953_v8  ;;  %v1462_v62 = vsub.f32 %v5799_v17, %v5953_v8  ;;  %4456 = vmatmul.mubr.msk.f32.gmra.mxu1 %vm1400_vm2, %v4706_v51  ;;  %4506 = vmatprep.subr.mxu1 %v3232_v61  ;;  %v2319_v58 = vld [vmem:[%s7461_s11 + $0x18] sm:$0xff]  ;;  %v2023_v0 = vand.u32 2147483647, %v6005_v13  ;;  %v6019_v51 = vmul.f32 -2.0, %v5855_v54 }
 0x1d8   : > { %4723 = vpow2.f32 %v1489_v26  ;;  %4458 = vmatprep.mubr.msk.f32.mxu1 %vm1400_vm2, %v4708_v1  ;;  %v5963_v52 = vpop.xlane.xlu0 %1444  ;;  %4507 = vmatpush3.msra.mxu1 %v3232_v61  ;;  %v6015_v26 = vmul.f32 -2.0, %v5850_v4  ;;  %v2040_v1 = vsub.f32 0.0, %v2024_v32  ;;  %v6043_v32 = vmul.f32 -2.0, %v5906_v27 }
 0x1d9   : > { %v4710_v34 = vpop.eup %4709  ;;  %v1491_v3 = vmul.f32 1.442695, %v1462_v62  ;;  %7634 = vst [vmem:[#allocation21_spill] sm:$0xff] %v5963_v52  ;;  %v1463_v50 = vsub.f32 %v5804_v31, %v5963_v52  ;;  %4508 = vmatprep.subr.mxu1 %v3231_v44  ;;  %4406 = vmatprep.subr.mxu0 %v2319_v58  ;;  %v6022_v62 = vmul.f32 -2.0, %v5889_v11  ;;  %v6130_v8 = vadd.f32 -0.6931472, %v5941_v19 }
 0x1da   : > { %v4712_v10 = vpop.eup %4711  ;;  %4365 = vmatprep.mubr.msk.f32.mxu0 %vm1400_vm2, %v4710_v34  ;;  %4509 = vmatpush3.msra.mxu1 %v3231_v44  ;;  %v2026_v34 = vand.u32 2147483647, %v6015_v26  ;;  %7637 = vst [vmem:[#allocation3_spill] sm:$0xff] %v6043_v32 }
 0x1db   : > { %4725 = vpow2.f32 %v1491_v3  ;;  %v5971_v17 = vpop.xlane.xlu1 %1447  ;;  %4459 = vmatmul.mubr.msk.f32.gmra.mxu1 %vm1400_vm2, %v4712_v10  ;;  %v1493_v2 = vmul.f32 1.442695, %v1463_v50  ;;  %v4714_v60 = vpop.eup %4713  ;;  %4407 = vmatpush3.msra.mxu0 %v2319_v58  ;;  %v6026_v3 = vmul.f32 -2.0, %v5882_v53  ;;  %v2039_v10 = vsub.f32 0.0, %v2023_v0  ;;  %7649 = vst [vmem:[#allocation28_spill] sm:$0xff] %v6130_v8 }
 0x1dc   : > { %7636 = vst [vmem:[#allocation20_spill] sm:$0xff] %v5971_v17  ;;  %v1464_v18 = vsub.f32 %v5808_v21, %v5971_v17  ;;  %4727 = vtanh.f32 %v5960_v49  ;;  %v4716_v39 = vpop.eup %4715  ;;  %4461 = vmatprep.mubr.msk.f32.mxu1 %vm1400_vm2, %v4714_v60  ;;  %4408 = vmatprep.subr.mxu0 %v2318_v6  ;;  %v2025_v50 = vand.u32 2147483647, %v6019_v51  ;;  %v6031_v60 = vmul.f32 -2.0, %v5902_v55 }
 0x1dd   : > { %4729 = vtanh.f32 %v5966_v42  ;;  %v4718_v31 = vpop.eup %4717  ;;  %4409 = vmatpush3.msra.mxu0 %v2318_v6  ;;  %v6046_v58 = vadd.f32 -0.6931472, %v5830_v43  ;;  %v6124_v17 = vadd.f32 -0.6931472, %v5924_v36 }
 0x1de   : > { %4731 = vpow2.f32 %v1493_v2  ;;  %v1495_v30 = vmul.f32 1.442695, %v1464_v18  ;;  %v4720_v35 = vpop.eup %4719  ;;  %v2057_v2 = vmul.f32 1.442695, %v2040_v1  ;;  %v2028_v18 = vand.u32 2147483647, %v6022_v62 }
 0x1df   : > { %4462 = vmatmul.mubr.msk.f32.gmra.mxu1 %vm1400_vm2, %v4716_v39  ;;  %v2042_v39 = vsub.f32 0.0, %v2026_v34  ;;  %v6051_v1 = vmul.f32 -2.0, %v5928_v40  ;;  %v6054_v34 = vadd.f32 -0.6931472, %v5837_v28  ;;  %7648 = vst [vmem:[#allocation11_spill] sm:$0xff] %v6124_v17 }
 0x1e0   : > { %4733 = vpow2.f32 %v1495_v30  ;;  %4464 = vmatprep.mubr.msk.f32.mxu1 %vm1400_vm2, %v4718_v31  ;;  %v2027_v30 = vand.u32 2147483647, %v6026_v3  ;;  %v2055_v31 = vmul.f32 1.442695, %v2039_v10 }
 0x1e1   : > { %4735 = vpow2.f32 %v2057_v2  ;;  %7638 = vst [vmem:[#allocation4_spill] sm:$0xff] %v6051_v1  ;;  %v6060_v2 = vadd.f32 -0.6931472, %v5850_v4  ;;  %v2034_v4 = vand.u32 2147483647, %v6051_v1 }
 0x1e2   : > { %4737 = vpow2.f32 %v2055_v31  ;;  %v6066_v31 = vadd.f32 -0.6931472, %v5855_v54 }
 0x1e3   : > { %4465 = vmatmul.mubr.msk.f32.gmra.mxu1 %vm1400_vm2, %v4720_v35  ;;  %v2041_v35 = vsub.f32 0.0, %v2025_v50  ;;  %v6057_v50 = vmul.f32 -2.0, %v5924_v36 }
 0x1e4   : > { %v4722_v59 = vpop.eup %4721 }
 0x1e5   : > { %v4724_v21 = vpop.eup %4723  ;;  %4366 = vmatmul.mubr.msk.f32.gmra.mxu0 %vm1400_vm2, %v4722_v59  ;;  %v2044_v59 = vsub.f32 0.0, %v2028_v18  ;;  %7639 = vst [vmem:[#allocation6_spill] sm:$0xff] %v6057_v50  ;;  %v2031_v18 = vand.u32 2147483647, %v6043_v32  ;;  %v2033_v54 = vand.u32 2147483647, %v6057_v50 }
 0x1e6   : > { %4368 = vmatprep.mubr.msk.f32.mxu0 %vm1400_vm2, %v4724_v21  ;;  %v2030_v21 = vand.u32 2147483647, %v6031_v60 }
 0x1e7   : > { %v2065_v63 = vmul.f32 1.442695, %v2044_v59 }
 0x1e8   : > { %v4726_v37 = vpop.eup %4725  ;;  %v2046_v45 = vsub.f32 0.0, %v2030_v21  ;;  %v6074_v21 = vmul.f32 -2.0, %v5941_v19 }
 0x1e9   : > { %v4728_v29 = vpop.eup %4727  ;;  %4369 = vmatmul.mubr.msk.f32.gmra.mxu0 %vm1400_vm2, %v4726_v37  ;;  %v2061_v37 = vmul.f32 1.442695, %v2042_v39 }
 0x1ea   : > { %v4730_v46 = vpop.eup %4729  ;;  %4467 = vmatprep.mubr.msk.f32.mxu1 %vm1400_vm2, %v4728_v29  ;;  %v2043_v29 = vsub.f32 0.0, %v2027_v30  ;;  %v2069_v10 = vmul.f32 1.442695, %v2046_v45  ;;  %7640 = vst [vmem:[#allocation9_spill] sm:$0xff] %v6074_v21  ;;  %v2047_v45 = vsub.f32 0.0, %v2031_v18 }
 0x1eb   : > { %v4732_v47 = vpop.eup %4731  ;;  %4468 = vmatmul.mubr.msk.f32.gmra.mxu1 %vm1400_vm2, %v4730_v46  ;;  %v6036_v46 = vmul.f32 -2.0, %v5899_v25  ;;  %4739 = vpow2.f32 %v2061_v37  ;;  %v2036_v18 = vand.u32 2147483647, %v6074_v21  ;;  %v6102_v30 = vadd.f32 -0.6931472, %v5906_v27 }
 0x1ec   : > { %4371 = vmatprep.mubr.msk.f32.mxu0 %vm1400_vm2, %v4732_v47  ;;  %v2059_v47 = vmul.f32 1.442695, %v2041_v35  ;;  %v2063_v61 = vmul.f32 1.442695, %v2043_v29  ;;  %v6070_v35 = vadd.f32 -0.6931472, %v5889_v11 }
 0x1ed   : > { %v4734_v57 = vpop.eup %4733  ;;  %v2029_v44 = vand.u32 2147483647, %v6036_v46  ;;  %v6078_v29 = vadd.f32 -0.6931472, %v5882_v53  ;;  %v6092_v53 = vadd.f32 -0.6931472, %v5899_v25 }
 0x1ee   : > { %4372 = vmatmul.mubr.msk.f32.gmra.mxu0 %vm1400_vm2, %v4734_v57  ;;  %v6039_v57 = vmul.f32 -2.0, %v5918_v20  ;;  %4741 = vpow2.f32 %v2059_v47  ;;  %v6081_v47 = vpop.eup %4735  ;;  %7644 = vst [vmem:[#allocation22_spill] sm:$0xff] %v6102_v30  ;;  %v2071_v39 = vmul.f32 1.442695, %v2047_v45  ;;  %v6117_v27 = vmul.f32 -2.0, %v5960_v49 }
 0x1ef   : > { %4743 = vpow2.f32 %v2065_v63  ;;  %v2045_v43 = vsub.f32 0.0, %v2029_v44  ;;  %v6084_v63 = vadd.f32 -0.6931472, %v5902_v55  ;;  %7642 = vst [vmem:[#allocation10_spill] sm:$0xff] %v6092_v53  ;;  %v6097_v37 = vpop.eup %4737  ;;  %v2049_v44 = vsub.f32 0.0, %v2033_v54 }
 0x1f0   : > { %v2032_v0 = vand.u32 2147483647, %v6039_v57  ;;  %4745 = vpow2.f32 %v2063_v61  ;;  %v6087_v61 = vmul.f32 -2.0, %v5934_v38  ;;  %v2096_v25 = vadd.f32 1.0, %v6081_v47  ;;  %7647 = vst [vmem:[#allocation14_spill] sm:$0xff] %v6117_v27 }
 0x1f1   : > { %4747 = vpow2.f32 %v2069_v10  ;;  %v2067_v11 = vmul.f32 1.442695, %v2045_v43  ;;  %v6095_v10 = vadd.f32 -0.6931472, %v5918_v20  ;;  %v2050_v43 = vsub.f32 0.0, %v2034_v4 }
 0x1f2   : > { %v2048_v59 = vsub.f32 0.0, %v2032_v0  ;;  %7641 = vst [vmem:[#allocation7_spill] sm:$0xff] %v6087_v61  ;;  %v6105_v0 = vmul.f32 -2.0, %v5966_v42  ;;  %v2035_v6 = vand.u32 2147483647, %v6087_v61  ;;  %v2087_v54 = vadd.f32 1.0, %v6097_v37 }
 0x1f3   : > { %7643 = vst [vmem:[#allocation12_spill] sm:$0xff] %v6095_v10  ;;  %4749 = vpow2.f32 %v2067_v11  ;;  %v6114_v4 = vadd.f32 -0.6931472, %v5928_v40  ;;  %v2077_v45 = vmul.f32 1.442695, %v2050_v43  ;;  %v2052_v20 = vsub.f32 0.0, %v2036_v18 }
 0x1f4   : > { %v2073_v28 = vmul.f32 1.442695, %v2048_v59  ;;  %7645 = vst [vmem:[#allocation13_spill] sm:$0xff] %v6105_v0  ;;  %v2075_v41 = vmul.f32 1.442695, %v2049_v44  ;;  %v2051_v49 = vsub.f32 0.0, %v2035_v6 }
 0x1f5   : > { %7646 = vst [vmem:[#allocation26_spill] sm:$0xff] %v6114_v4  ;;  %v2038_v59 = vand.u32 2147483647, %v6105_v0  ;;  %v6136_v43 = vadd.f32 -0.6931472, %v5934_v38  ;;  %v2099_v19 = vmul.f32 -0.5, %v6081_v47 }
 0x1f6   : > { %4751 = vpow2.f32 %v2073_v28  ;;  %v2037_v36 = vand.u32 2147483647, %v6117_v27  ;;  %v2090_v18 = vmul.f32 -0.5, %v6097_v37  ;;  %v2102_v6 = vand.u32 2147483647, %v6081_v47 }
 0x1f7   : > { %4753 = vlog2.f32 %v2096_v25  ;;  %7650 = vst [vmem:[#allocation29_spill] sm:$0xff] %v6136_v43  ;;  %v2054_v25 = vsub.f32 0.0, %v2038_v59  ;;  %v2079_v43 = vmul.f32 1.442695, %v2051_v49  ;;  %v2100_v59 = vadd.f32 1.0, %v2099_v19 }
 0x1f8   : > { %v6110_v55 = vpop.eup %4739  ;;  %4755 = vpow2.f32 %v2071_v39  ;;  %v2081_v39 = vmul.f32 1.442695, %v2052_v20  ;;  %v2091_v19 = vadd.f32 1.0, %v2090_v18  ;;  %vm6163_vm5 = vcmp.lt.f32.partialorder %v2102_v6, 0.0004427343 }
 0x1f9   : > { %v2114_v28 = vadd.f32 1.0, %v6110_v55  ;;  %4757 = vlog2.f32 %v2087_v54  ;;  %v2117_v20 = vmul.f32 -0.5, %v6110_v55  ;;  %v2085_v8 = vmul.f32 1.442695, %v2054_v25 }
 0x1fa   : > { %4759 = vpow2.f32 %v2077_v45  ;;  %v2053_v45 = vsub.f32 0.0, %v2037_v36  ;;  %v6161_v0 = vmul.f32 %v6081_v47, %v2100_v59  ;;  %v2120_v16 = vand.u32 2147483647, %v6110_v55  ;;  %v6175_v47 = vld [vmem:[%s7460_s10] ss:$0 sm:$0xff] }
 0x1fb   : > { %v6120_v52 = vpop.eup %4741  ;;  %4761 = vpow2.f32 %v2075_v41  ;;  %v2118_v41 = vadd.f32 1.0, %v2117_v20 }
 0x1fc   : > { %v6127_v40 = vpop.eup %4743  ;;  %v2105_v44 = vadd.f32 1.0, %v6120_v52  ;;  %4763 = vlog2.f32 %v2114_v28  ;;  %v2108_v17 = vmul.f32 -0.5, %v6120_v52  ;;  %v2093_v28 = vand.u32 2147483647, %v6097_v37 }
 0x1fd   : > { %v6133_v12 = vpop.eup %4745  ;;  %v2132_v11 = vadd.f32 1.0, %v6127_v40  ;;  %v2135_v36 = vmul.f32 -0.5, %v6127_v40  ;;  %v2138_v50 = vand.u32 2147483647, %v6127_v40  ;;  %vm6205_vm7 = vcmp.lt.f32.partialorder %v2120_v16, 0.0004427343 }
 0x1fe   : > { %v6144_v42 = vpop.eup %4747  ;;  %v2123_v54 = vadd.f32 1.0, %v6133_v12  ;;  %4765 = vlog2.f32 %v2105_v44  ;;  %v2126_v38 = vmul.f32 -0.5, %v6133_v12  ;;  %v2109_v21 = vadd.f32 1.0, %v2108_v17 }
 0x1ff   : > { %4767 = vpow2.f32 %v2081_v39  ;;  %v2150_v49 = vadd.f32 1.0, %v6144_v42  ;;  %v2083_v39 = vmul.f32 1.442695, %v2053_v45  ;;  %v2153_v61 = vmul.f32 -0.5, %v6144_v42 }
 0x200   : > { %4769 = vlog2.f32 %v2132_v11  ;;  %v6157_v44 = vpop.eup %4749  ;;  %vm6177_vm6 = vcmp.lt.f32.partialorder %v2093_v28, 0.0004427343  ;;  %v2136_v45 = vadd.f32 1.0, %v2135_v36  ;;  %v2127_v20 = vadd.f32 1.0, %v2126_v38 }
 0x201   : > { %4771 = vlog2.f32 %v2123_v54  ;;  %v2144_v59 = vmul.f32 -0.5, %v6157_v44  ;;  %v6185_v17 = vmul.f32 %v6097_v37, %v2091_v19  ;;  %v2154_v24 = vadd.f32 1.0, %v2153_v61 }
 0x202   : > { %4773 = vpow2.f32 %v2079_v43  ;;  %v2111_v43 = vand.u32 2147483647, %v6120_v52  ;;  %vm6224_vm9 = vcmp.lt.f32.partialorder %v2138_v50, 0.0004427343 }
 0x203   : > { %v6168_v54 = vpop.eup %4751  ;;  %4775 = vlog2.f32 %v2150_v49  ;;  %v2141_v49 = vadd.f32 1.0, %v6157_v44 }
 0x204   : > { %v4754_v18 = vpop.eup %4753  ;;  %4777 = vpow2.f32 %v2085_v8  ;;  %v6188_v8 = vmul.f32 %v6110_v55, %v2118_v41  ;;  %v2168_v38 = vadd.f32 1.0, %v6168_v54  ;;  %v2171_v36 = vmul.f32 -0.5, %v6168_v54 }
 0x205   : > { %v6182_v25 = vpop.eup %4755  ;;  %4779 = vpow2.f32 %v2083_v39  ;;  %v2098_v37 = vmul.f32 0.6931472, %v4754_v18  ;;  %v6200_v55 = vmul.f32 %v6120_v52, %v2109_v21  ;;  %v2129_v41 = vand.u32 2147483647, %v6133_v12 }
 0x206   : > { %v4758_v27 = vpop.eup %4757  ;;  %vm6209_vm8 = vcmp.lt.f32.partialorder %v2111_v43, 0.0004427343  ;;  %v6217_v18 = vmul.f32 %v6133_v12, %v2127_v20  ;;  %v2156_v52 = vand.u32 2147483647, %v6144_v42  ;;  %v2145_v21 = vadd.f32 1.0, %v2144_v59 }
 0x207   : > { %v6194_v56 = vpop.eup %4759  ;;  %v2089_v16 = vmul.f32 0.6931472, %v4758_v27  ;;  %4781 = vlog2.f32 %v2141_v49  ;;  %v6229_v12 = vmul.f32 %v6144_v42, %v2154_v24  ;;  %v2104_v27 = vsel %vm6163_vm5, %v6161_v0, %v2098_v37 }
 0x208   : > { %v6203_v19 = vpop.eup %4761  ;;  %4783 = vlog2.f32 %v2168_v38  ;;  %vm6238_vm10 = vcmp.lt.f32.partialorder %v2129_v41, 0.0004427343  ;;  %v2162_v24 = vmul.f32 -0.5, %v6182_v25  ;;  %v6245_v38 = vmul.f32 %v6157_v44, %v2145_v21 }
 0x209   : > { %v4764_v48 = vpop.eup %4763  ;;  %v2095_v37 = vsel %vm6177_vm6, %v6185_v17, %v2089_v16  ;;  %vm6255_vm11 = vcmp.lt.f32.partialorder %v2156_v52, 0.0004427343  ;;  %v2189_v53 = vmul.f32 -0.5, %v6194_v56 }
 0x20a   : > { %v2116_v49 = vmul.f32 0.6931472, %v4764_v48  ;;  %v2163_v16 = vadd.f32 1.0, %v2162_v24 }
 0x20b   : > { %v4766_v14 = vpop.eup %4765 }
 0x20c   : > { %v6232_v20 = vpop.eup %4767  ;;  %v2107_v41 = vmul.f32 0.6931472, %v4766_v14 }
 0x20d   : > { %v4770_v42 = vpop.eup %4769 }
 0x20e   : > { %v2134_v14 = vmul.f32 0.6931472, %v4770_v42 }
 0x280   : > { %v4448_v28 = vpop.f32.mrf.mxu1 }
 0x281   : > { %v6197_v39 = vadd.f32 %v4448_v28, %v6175_v47  ;;  %v6214_v28 = vmul.f32 %v6127_v40, %v2136_v45  ;;  %v2172_v40 = vadd.f32 1.0, %v2171_v36  ;;  %v2159_v45 = vadd.f32 1.0, %v6182_v25  ;;  %v4772_v36 = vpop.eup %4771 }
 0x282   : > { %v2816_v15 = vpop.f32.mrf.mxu1  ;;  %v6251_v43 = vpop.eup %4773  ;;  %v2125_v52 = vmul.f32 0.6931472, %v4772_v36 }
 0x283   : > { %7655 = vst [vmem:[#allocation30_spill] sm:$0xff] %v6197_v39  ;;  %v6221_v1 = vadd.f32 %v6175_v47, %v2816_v15  ;;  %v4352_v30 = vpop.f32.mrf.mxu0  ;;  %4785 = vtanh.f32 %v6197_v39  ;;  %v6260_v10 = vmul.f32 %v6168_v54, %v2172_v40  ;;  %v2140_v4 = vsel %vm6224_vm9, %v6214_v28, %v2134_v14 }
 0x284   : > { %v1691_v15 = vmax.f32 %v4352_v30, 1e-37  ;;  %v2174_v30 = vand.u32 2147483647, %v6168_v54  ;;  %v2190_v28 = vadd.f32 1.0, %v2189_v53 }
 0x285   : > { %7660 = vst [vmem:[#allocation31_spill] sm:$0xff] %v6221_v1  ;;  %v1611_v59 = vpop.f32.mrf.mxu0  ;;  %4787 = vtanh.f32 %v6221_v1  ;;  %v7665_v1 = vmax.f32 %v6002_v33, 0.0  ;;  %v7668_v33 = vmax.f32 %v6005_v13, 0.0 }
 0x286   : > { %4789 = vlog2.f32 %v1691_v15  ;;  %v1690_v11 = vmax.f32 %v1611_v59, 1e-37  ;;  %v4451_v0 = vpop.f32.mrf.mxu1  ;;  %v2165_v15 = vand.u32 2147483647, %v6182_v25  ;;  %v4776_v59 = vpop.eup %4775  ;;  %vm6307_vm13 = vcmp.lt.f32.partialorder %v2174_v30, 0.0004427343 }
 0x287   : > { %v4355_v39 = vpop.f32.mrf.mxu0  ;;  %v2232_v48 = vadd.f32 %v2104_v27, %v7665_v1  ;;  %4791 = vlog2.f32 %v2159_v45  ;;  %v2231_v1 = vadd.f32 %v2095_v37, %v7668_v33  ;;  %v2186_v27 = vadd.f32 1.0, %v6194_v56  ;;  %v6267_v54 = vpop.eup %4777 }
 0x288   : > { %4793 = vlog2.f32 %v1690_v11  ;;  %v1693_v6 = vmax.f32 %v4355_v39, 1e-37  ;;  %v2826_v17 = vpop.f32.mrf.mxu1  ;;  %v2122_v39 = vsel %vm6205_vm7, %v6188_v8, %v2116_v49  ;;  %v2113_v45 = vsel %vm6209_vm8, %v6200_v55, %v2107_v41  ;;  %v6275_v24 = vpop.eup %4779 }
 0x289   : > { %v1621_v32 = vpop.f32.mrf.mxu0  ;;  %v6278_v42 = vadd.f32 %v6175_v47, %v2826_v17  ;;  %v2248_v36 = vadd.f32 %v6046_v58, %v2232_v48  ;;  %v2192_v11 = vand.u32 2147483647, %v6194_v56  ;;  %v6284_v61 = vadd.f32 %v4451_v0, %v6175_v47  ;;  %v4782_v14 = vpop.eup %4781 }
 0x28a   : > { %4795 = vlog2.f32 %v1693_v6  ;;  %v1692_v40 = vmax.f32 %v1621_v32, 1e-37  ;;  %v2177_v32 = vadd.f32 1.0, %v6203_v19  ;;  %v2152_v8 = vmul.f32 0.6931472, %v4776_v59 }
 0x28b   : > { %v4358_v13 = vpop.f32.mrf.mxu0  ;;  %v7669_v49 = vmax.f32 %v6015_v26, 0.0  ;;  %v7670_v41 = vmax.f32 %v6019_v51, 0.0  ;;  %v2131_v48 = vsel %vm6238_vm10, %v6217_v18, %v2125_v52  ;;  %v2247_v0 = vadd.f32 %v6054_v34, %v2231_v1 }
 0x28c   : > { %4797 = vlog2.f32 %v1692_v40  ;;  %v1695_v6 = vmax.f32 %v4358_v13, 1e-37  ;;  %v7671_v17 = vand.u32 2147483647, %v6157_v44  ;;  %v2180_v26 = vmul.f32 -0.5, %v6203_v19  ;;  %v4784_v44 = vpop.eup %4783 }
 0x28d   : > { %v1631_v55 = vpop.f32.mrf.mxu0  ;;  %v2234_v37 = vadd.f32 %v2122_v39, %v7669_v49  ;;  %v2233_v58 = vadd.f32 %v2113_v45, %v7670_v41  ;;  %4799 = vlog2.f32 %v2186_v27  ;;  %v7674_v18 = vmax.f32 %v6022_v62, 0.0 }
 0x28e   : > { %vm6299_vm12 = vcmp.lt.f32.partialorder %v7671_v17, 0.0004427343  ;;  %v1694_v51 = vmax.f32 %v1631_v55, 1e-37  ;;  %4801 = vtanh.f32 %v6278_v42  ;;  %v6312_v34 = vmul.f32 %v6182_v25, %v2163_v16 }
 0x28f   : > { %v4361_v59 = vpop.f32.mrf.mxu0  ;;  %v2236_v50 = vadd.f32 %v2140_v4, %v7674_v18  ;;  %4803 = vtanh.f32 %v6284_v61  ;;  %v2264_v53 = vmul.f32 -2.0, %v2248_v36  ;;  %v7677_v1 = vmax.f32 %v6026_v3, 0.0 }
 0x290   : > { %v2158_v27 = vsel %vm6255_vm11, %v6229_v12, %v2152_v8  ;;  %v4786_v62 = vpop.eup %4785  ;;  %v1697_v40 = vmax.f32 %v4361_v59, 1e-37  ;;  %v2250_v45 = vadd.f32 %v6060_v2, %v2234_v37  ;;  %v2249_v16 = vadd.f32 %v6066_v31, %v2233_v58 }
 0x291   : > { %v2235_v52 = vadd.f32 %v2131_v48, %v7677_v1  ;;  %v6320_v30 = vpop.f32.mrf.mxu0  ;;  %4805 = vlog2.f32 %v2177_v32  ;;  %v6324_v36 = vmul.f32 -2.0, %v2247_v0  ;;  %v6327_v3 = vmul.f32 %v6194_v56, %v2190_v28 }
 0x292   : > { %v4788_v13 = vpop.eup %4787  ;;  %4807 = vlog2.f32 %v1695_v6  ;;  %v2181_v4 = vadd.f32 1.0, %v2180_v26  ;;  %v2252_v8 = vadd.f32 %v6070_v35, %v2236_v50  ;;  %v7678_v2 = vmax.f32 %v6031_v60, 0.0  ;;  %v6345_v6 = vld [vmem:[%s7458_s8] ss:$0 sm:$0xff] }
 0x293   : > { %v4454_v39 = vpop.f32.mrf.mxu1  ;;  %v4790_v21 = vpop.eup %4789  ;;  %4809 = vlog2.f32 %v1694_v51  ;;  %4510 = vmatprep.mubr.msk.f32.mxu1 %vm1400_vm2, %v4788_v13  ;;  %v2143_v31 = vmul.f32 0.6931472, %v4782_v14  ;;  %v2251_v37 = vadd.f32 %v6078_v29, %v2235_v52  ;;  %v2170_v41 = vmul.f32 0.6931472, %v4784_v44 }
 0x294   : > { %v2238_v55 = vadd.f32 %v2158_v27, %v7678_v2  ;;  %v4792_v32 = vpop.eup %4791  ;;  %v1709_v49 = vmul.f32 0.6931472, %v4790_v21  ;;  %4511 = vmatmul.mubr.msk.f32.vlgmr.msra.gmra.mxu1 %vm1400_vm2, %v4786_v62  ;;  %vm6337_vm14 = vcmp.lt.f32.partialorder %v2165_v15, 0.0004427343  ;;  %v2183_v35 = vand.u32 2147483647, %v6203_v19  ;;  %v4364_v60 = vpop.f32.mrf.mxu0 }
 0x295   : > { %v2836_v12 = vpop.f32.mrf.mxu1  ;;  %v4794_v48 = vpop.eup %4793  ;;  %4811 = vlog2.f32 %v1697_v40  ;;  %v6350_v0 = vmul.f32 -2.0, %v2250_v45  ;;  %v6352_v25 = vmul.f32 -2.0, %v2249_v16  ;;  %v6355_v17 = vadd.f32 %v4454_v39, %v6175_v47 }
 0x296   : > { %v6348_v29 = vadd.f32 %v6175_v47, %v2836_v12  ;;  %v1707_v15 = vmul.f32 0.6931472, %v4794_v48  ;;  %v1739_v28 = vadd.f32 %v1709_v49, %v5844_v22  ;;  %v6359_v26 = vmul.f32 %v6203_v19, %v2181_v4 }
 0x297   : > { %v4796_v14 = vpop.eup %4795  ;;  %v4457_v51 = vpop.f32.mrf.mxu1  ;;  %v6361_v59 = vmul.f32 -2.0, %v2252_v8  ;;  %v2254_v18 = vadd.f32 %v6084_v63, %v2238_v55  ;;  %v2149_v50 = vsel %vm6299_vm12, %v6245_v38, %v2143_v31  ;;  %v2204_v44 = vadd.f32 1.0, %v6232_v20 }
 0x298   : > { %v1761_v1 = vadd.f32 %v6345_v6, %v1739_v28  ;;  %v6369_v52 = vmul.f32 -2.0, %v2251_v37  ;;  %v2176_v22 = vsel %vm6307_vm13, %v6260_v10, %v2170_v41  ;;  %v2207_v27 = vmul.f32 -0.5, %v6232_v20  ;;  %v1651_v63 = vpop.f32.mrf.mxu0  ;;  %v7685_v28 = vld [vmem:[#allocation10_spill] sm:$0xff] }
 0x299   : > { %v4798_v62 = vpop.eup %4797  ;;  %v1696_v40 = vmax.f32 %v6320_v30, 1e-37  ;;  %4813 = vtanh.f32 %v6348_v29  ;;  %v1738_v38 = vadd.f32 %v1707_v15, %v5832_v23  ;;  %v2161_v7 = vmul.f32 0.6931472, %v4792_v32  ;;  %v2846_v13 = vpop.f32.mrf.mxu1 }
 0x29a   : > { %v4800_v39 = vpop.eup %4799  ;;  %v1713_v45 = vmul.f32 0.6931472, %v4796_v14  ;;  %4815 = vtanh.f32 %v6355_v17  ;;  %v6379_v16 = vadd.f32 %v2264_v53, %v1761_v1  ;;  %v2195_v10 = vadd.f32 1.0, %v6251_v43 }
 0x29b   : > { %v1711_v33 = vmul.f32 0.6931472, %v4798_v62  ;;  %v1699_v4 = vmax.f32 %v4364_v60, 1e-37  ;;  %v1760_v21 = vadd.f32 %v6345_v6, %v1738_v38  ;;  %v7681_v30 = vmax.f32 %v6036_v46, 0.0  ;;  %v4802_v8 = vpop.eup %4801 }
 0x29c   : > { %vm6387_vm15 = vcmp.lt.f32.partialorder %v2192_v11, 0.0004427343  ;;  %v1698_v2 = vmax.f32 %v1651_v63, 1e-37  ;;  %v2324_v53 = vsel %vm1400_vm2, %v6379_v16, -inf  ;;  %v6393_v55 = vmul.f32 -2.0, %v2254_v18  ;;  %v4804_v31 = vpop.eup %4803  ;;  %4513 = vmatprep.mubr.msk.f32.mxu1 %vm1400_vm2, %v4802_v8 }
 0x29d   : > { %v2237_v12 = vadd.f32 %v2149_v50, %v7681_v30  ;;  %4817 = vlog2.f32 %v2204_v44  ;;  %2325 = vmax.xlane.f32.xlu1 %v2324_v53  ;;  %v6396_v46 = vadd.f32 %v6324_v36, %v1760_v21  ;;  %v7684_v56 = vmax.f32 %v6039_v57, 0.0  ;;  %v4460_v36 = vpop.f32.mrf.mxu1  ;;  %4514 = vmatmul.mubr.msk.f32.gmra.mxu1 %vm1400_vm2, %v4804_v31  ;;  %v7686_v50 = vld [vmem:[#allocation3_spill] sm:$0xff]  ;;  %v7689_v53 = vld [vmem:[#allocation16_spill] sm:$0xff] }
 0x29e   : > { %4819 = vlog2.f32 %v1696_v40  ;;  %v2167_v32 = vsel %vm6337_vm14, %v6312_v34, %v2161_v7  ;;  %v6404_v49 = vpop.eup %4805  ;;  %v6407_v37 = vadd.f32 %v4457_v51, %v6175_v47  ;;  %v1741_v41 = vadd.f32 %v1713_v45, %v5852_v9 }
 0x29f   : > { %v2240_v11 = vadd.f32 %v2176_v22, %v7684_v56  ;;  %v6411_v48 = vadd.f32 %v6175_v47, %v2846_v13  ;;  %4821 = vlog2.f32 %v2195_v10  ;;  %v4808_v57 = vpop.eup %4807  ;;  %v2321_v58 = vsel %vm1400_vm2, %v6396_v46, -inf  ;;  %v2856_v40 = vpop.f32.mrf.mxu1 }
 0x2a0   : > { %4823 = vlog2.f32 %v1699_v4  ;;  %v1740_v34 = vadd.f32 %v1711_v33, %v5839_v5  ;;  %v2208_v60 = vadd.f32 1.0, %v2207_v27  ;;  %v4810_v15 = vpop.eup %4809  ;;  %2322 = vmax.xlane.f32.xlu0 %v2321_v58  ;;  %v1763_v9 = vadd.f32 %v6345_v6, %v1741_v41  ;;  %v7693_v58 = vld [vmem:[#allocation24_spill] sm:$0xff] }
 0x2a1   : > { %4825 = vlog2.f32 %v1698_v2  ;;  %v2253_v14 = vadd.f32 %v7685_v28, %v2237_v12  ;;  %v2188_v51 = vmul.f32 0.6931472, %v4800_v39  ;;  %v7687_v44 = vmax.f32 %v7686_v50, 0.0  ;;  %v7688_v39 = vld [vmem:[#allocation12_spill] sm:$0xff]  ;;  %v4463_v56 = vpop.f32.mrf.mxu1  ;;  %v7696_v50 = vld [vmem:[#allocation15_spill] sm:$0xff] }
 0x2a2   : > { %4827 = vtanh.f32 %v6411_v48  ;;  %v1762_v18 = vadd.f32 %v6345_v6, %v1740_v34  ;;  %v2222_v22 = vadd.f32 1.0, %v6267_v54  ;;  %v4812_v62 = vpop.eup %4811  ;;  %v1717_v5 = vmul.f32 0.6931472, %v4808_v57 }
 0x2a3   : > { %v2239_v1 = vadd.f32 %v2167_v32, %v7687_v44  ;;  %4829 = vtanh.f32 %v6407_v37  ;;  %v6426_v27 = vadd.f32 %v6350_v0, %v1763_v9  ;;  %v2213_v63 = vadd.f32 1.0, %v6275_v24 }
 0x2a4   : > { %v1715_v38 = vmul.f32 0.6931472, %v4810_v15  ;;  %v6430_v7 = vadd.f32 %v6352_v25, %v1762_v18  ;;  %v2256_v45 = vadd.f32 %v7688_v39, %v2240_v11  ;;  %v2210_v13 = vand.u32 2147483647, %v6232_v20  ;;  %v7690_v11 = vld [vmem:[#allocation22_spill] sm:$0xff] }
 0x2a5   : > { %v4367_v10 = vpop.f32.mrf.mxu0  ;;  %v2330_v33 = vsel %vm1400_vm2, %v6426_v27, -inf  ;;  %v6436_v4 = vmul.f32 -2.0, %v2253_v14  ;;  %v2194_v0 = vsel %vm6387_vm15, %v6327_v3, %v2188_v51  ;;  %v6442_v21 = vmul.f32 %v6232_v20, %v2208_v60 }
 0x2a6   : > { %v1721_v30 = vmul.f32 0.6931472, %v4812_v62  ;;  %v1701_v25 = vmax.f32 %v4367_v10, 1e-37  ;;  %2331 = vmax.xlane.f32.xlu1 %v2330_v33  ;;  %v2327_v12 = vsel %vm1400_vm2, %v6430_v7, -inf  ;;  %4831 = vlog2.f32 %v2222_v22  ;;  %v4814_v8 = vpop.eup %4813 }
 0x2a7   : > { %v1661_v2 = vpop.f32.mrf.mxu0  ;;  %2328 = vmax.xlane.f32.xlu0 %v2327_v12  ;;  %v1743_v31 = vadd.f32 %v1717_v5, %v7689_v53  ;;  %v2255_v32 = vadd.f32 %v7690_v11, %v2239_v1  ;;  %vm6450_vm0 = vcmp.lt.f32.partialorder %v2183_v35, 0.0004427343  ;;  %v2198_v3 = vmul.f32 -0.5, %v6251_v43  ;;  %v4816_v23 = vpop.eup %4815  ;;  %4516 = vmatprep.mubr.msk.f32.mxu1 %vm1400_vm2, %v4814_v8  ;;  %v7694_v35 = vld [vmem:[#allocation4_spill] sm:$0xff] }
 0x2a8   : > { %4833 = vlog2.f32 %v2213_v63  ;;  %v1700_v41 = vmax.f32 %v1661_v2, 1e-37  ;;  %v6456_v57 = vadd.f32 %v4460_v36, %v6175_v47  ;;  %v1742_v34 = vadd.f32 %v1715_v38, %v7693_v58  ;;  %4517 = vmatmul.mubr.msk.f32.gmra.mxu1 %vm1400_vm2, %v4816_v23  ;;  %v2866_v63 = vpop.f32.mrf.mxu1  ;;  %v7701_v23 = vld [vmem:[#allocation26_spill] sm:$0xff] }
 0x2a9   : > { %4835 = vlog2.f32 %v1701_v25  ;;  %v1765_v60 = vadd.f32 %v6345_v6, %v1743_v31  ;;  %v6461_v19 = vmul.f32 -2.0, %v2256_v45  ;;  %v7695_v15 = vmax.f32 %v7694_v35, 0.0  ;;  %v4370_v51 = vpop.f32.mrf.mxu0 }
 0x2aa   : > { %v2201_v28 = vand.u32 2147483647, %v6251_v43  ;;  %v4818_v14 = vpop.eup %4817  ;;  %v6468_v36 = vadd.f32 %v6175_v47, %v2856_v40  ;;  %v1764_v18 = vadd.f32 %v6345_v6, %v1742_v34  ;;  %v1745_v44 = vadd.f32 %v1721_v30, %v7696_v50  ;;  %v7702_v50 = vld [vmem:[#allocation2_spill] sm:$0xff] }
 0x2ab   : > { %v2242_v9 = vadd.f32 %v2194_v0, %v7695_v15  ;;  %v6473_v1 = vmul.f32 0.6931472, %v6404_v49  ;;  %v4820_v22 = vpop.eup %4819  ;;  %4837 = vlog2.f32 %v1700_v41  ;;  %v1703_v62 = vmax.f32 %v4370_v51, 1e-37  ;;  %v1671_v45 = vpop.f32.mrf.mxu0 }
 0x2ac   : > { %v6476_v5 = vadd.f32 %v6361_v59, %v1765_v60  ;;  %v2199_v38 = vadd.f32 1.0, %v2198_v3  ;;  %v4822_v39 = vpop.eup %4821  ;;  %4839 = vtanh.f32 %v6456_v57  ;;  %v6480_v40 = vadd.f32 %v6369_v52, %v1764_v18  ;;  %v4466_v3 = vpop.f32.mrf.mxu1 }
 0x2ad   : > { %v6482_v10 = vmul.f32 -2.0, %v2255_v32  ;;  %vm6484_vm3 = vcmp.lt.f32.partialorder %v2210_v13, 0.0004427343  ;;  %v2225_v33 = vmul.f32 -0.5, %v6267_v54  ;;  %v4824_v0 = vpop.eup %4823  ;;  %4841 = vlog2.f32 %v1703_v62 }
 0x2ae   : > { %v1702_v59 = vmax.f32 %v1671_v45, 1e-37  ;;  %v2336_v30 = vsel %vm1400_vm2, %v6476_v5, -inf  ;;  %v2228_v25 = vand.u32 2147483647, %v6267_v54  ;;  %v4826_v12 = vpop.eup %4825  ;;  %4843 = vtanh.f32 %v6468_v36  ;;  %v4373_v31 = vpop.f32.mrf.mxu0  ;;  %v7703_v45 = vld [vmem:[#allocation17_spill] sm:$0xff] }
 0x2af   : > { %v1719_v8 = vmul.f32 0.6931472, %v4820_v22  ;;  %2337 = vmax.xlane.f32.xlu1 %v2336_v30  ;;  %v2333_v52 = vsel %vm1400_vm2, %v6480_v40, -inf  ;;  %v1767_v13 = vadd.f32 %v6345_v6, %v1745_v44  ;;  %vm6496_vm4 = vcmp.lt.f32.partialorder %v2201_v28, 0.0004427343  ;;  %v4828_v53 = vpop.eup %4827  ;;  %v2317_v30 = vld [vmem:[%s7461_s11 + $0x8] sm:$0xff] }
 0x2b0   : > { %4845 = vlog2.f32 %v1702_v59  ;;  %2334 = vmax.xlane.f32.xlu0 %v2333_v52  ;;  %v6501_v11 = vadd.f32 %v4463_v56, %v6175_v47  ;;  %v6504_v32 = vadd.f32 %v6175_v47, %v2866_v63  ;;  %v6507_v41 = vadd.f32 %v7701_v23, %v2242_v9  ;;  %v4830_v58 = vpop.eup %4829  ;;  %4519 = vmatprep.mubr.msk.f32.mxu1 %vm1400_vm2, %v4828_v53  ;;  %v1681_v28 = vpop.f32.mrf.mxu0 }
 0x2b1   : > { %v1725_v34 = vmul.f32 0.6931472, %v4824_v0  ;;  %v1705_v60 = vmax.f32 %v4373_v31, 1e-37  ;;  %v6510_v35 = vadd.f32 %v6393_v55, %v1767_v13  ;;  %v2185_v56 = vsel %vm6450_vm0, %v6359_v26, %v6473_v1  ;;  %4520 = vmatmul.mubr.msk.f32.gmra.mxu1 %vm1400_vm2, %v4830_v58  ;;  %v2876_v26 = vpop.f32.mrf.mxu1  ;;  %v7705_v13 = vld [vmem:[#allocation6_spill] sm:$0xff]  ;;  %4410 = vmatprep.subr.mxu0 %v2317_v30 }
 0x2b2   : > { %v1723_v15 = vmul.f32 0.6931472, %v4826_v12  ;;  %4847 = vtanh.f32 %v6504_v32  ;;  %v2206_v9 = vmul.f32 0.6931472, %v4818_v14  ;;  %v2216_v51 = vmul.f32 -0.5, %v6275_v24  ;;  %4411 = vmatpush3.msra.mxu0 %v2317_v30 }
 0x2b3   : > { %4849 = vlog2.f32 %v1705_v60  ;;  %v1704_v18 = vmax.f32 %v1681_v28, 1e-37  ;;  %v2342_v55 = vsel %vm1400_vm2, %v6510_v35, -inf  ;;  %v1744_v44 = vadd.f32 %v1719_v8, %v7702_v50  ;;  %v4832_v22 = vpop.eup %4831  ;;  %v7704_v8 = vld [vmem:[#allocation23_spill] sm:$0xff] }
 0x2b4   : > { %4851 = vtanh.f32 %v6501_v11  ;;  %2343 = vmax.xlane.f32.xlu1 %v2342_v55  ;;  %v2197_v20 = vmul.f32 0.6931472, %v4822_v39  ;;  %v2200_v1 = vmul.f32 %v6251_v43, %v2199_v38  ;;  %v2226_v62 = vadd.f32 1.0, %v2225_v33  ;;  %v7712_v55 = vld [vmem:[#allocation9_spill] sm:$0xff] }
 0x2b5   : > { %v4834_v63 = vpop.eup %4833  ;;  %4853 = vlog2.f32 %v1704_v18  ;;  %v1766_v14 = vadd.f32 %v6345_v6, %v1744_v44  ;;  %v1747_v0 = vadd.f32 %v1725_v34, %v7703_v45  ;;  %v2219_v59 = vand.u32 2147483647, %v6275_v24 }
 0x2b6   : > { %v4836_v12 = vpop.eup %4835  ;;  %v1746_v52 = vadd.f32 %v1723_v15, %v7704_v8  ;;  %v7706_v39 = vmax.f32 %v7705_v13, 0.0  ;;  %v2212_v43 = vsel %vm6484_vm3, %v6442_v21, %v2206_v9  ;;  %v2217_v38 = vadd.f32 1.0, %v2216_v51 }
 0x2b7   : > { %v1729_v33 = vmul.f32 0.6931472, %v4836_v12  ;;  %v6538_v31 = vadd.f32 %v6436_v4, %v1766_v14  ;;  %v6541_v23 = vadd.f32 %v6175_v47, %v2876_v26  ;;  %v2224_v58 = vmul.f32 0.6931472, %v4832_v22  ;;  %v4469_v4 = vpop.f32.mrf.mxu1  ;;  %v7714_v22 = vld [vmem:[#allocation19_spill] sm:$0xff] }
 0x2b8   : > { %v2241_v53 = vadd.f32 %v2185_v56, %v7706_v39  ;;  %v6544_v34 = vadd.f32 %v4466_v3, %v6175_v47  ;;  %v1769_v60 = vadd.f32 %v6345_v6, %v1747_v0  ;;  %v2203_v49 = vsel %vm6496_vm4, %v2200_v1, %v2197_v20  ;;  %v4838_v56 = vpop.eup %4837  ;;  %v7715_v20 = vld [vmem:[#allocation7_spill] sm:$0xff] }
 0x2b9   : > { %7707 = vst [vmem:[#allocation10_spill] sm:$0xff] %v6541_v23  ;;  %v2215_v21 = vmul.f32 0.6931472, %v4834_v63  ;;  %v2339_v15 = vsel %vm1400_vm2, %v6538_v31, -inf  ;;  %v2227_v28 = vmul.f32 %v6267_v54, %v2226_v62  ;;  %vm6554_vm5 = vcmp.lt.f32.partialorder %v2228_v25, 0.0004427343  ;;  %v4840_v2 = vpop.eup %4839  ;;  %v2886_v8 = vpop.f32.mrf.mxu1 }
 0x2ba   : > { %vm6558_vm6 = vcmp.lt.f32.partialorder %v2219_v59, 0.0004427343  ;;  %2340 = vmax.xlane.f32.xlu0 %v2339_v15  ;;  %v6563_v51 = vadd.f32 %v6461_v19, %v1769_v60  ;;  %v1768_v18 = vadd.f32 %v6345_v6, %v1746_v52  ;;  %v7713_v50 = vmax.f32 %v7712_v55, 0.0  ;;  %v4842_v25 = vpop.eup %4841  ;;  %v7717_v52 = vld [vmem:[#allocation11_spill] sm:$0xff]  ;;  %v7723_v15 = vld [vmem:[#allocation14_spill] sm:$0xff] }
 0x2bb   : > { %v2218_v54 = vmul.f32 %v6275_v24, %v2217_v38  ;;  %4855 = vtanh.f32 %v6541_v23  ;;  %v1749_v26 = vadd.f32 %v1729_v33, %v7714_v22  ;;  %v7716_v1 = vmax.f32 %v7715_v20, 0.0  ;;  %v4844_v19 = vpop.eup %4843  ;;  %v7718_v38 = vld [vmem:[#allocation28_spill] sm:$0xff]  ;;  %v7729_v20 = vld [vmem:[#allocation18_spill] sm:$0xff] }
 0x2bc   : > { %v2244_v44 = vadd.f32 %v2212_v43, %v7713_v50  ;;  %v2230_v63 = vsel %vm6554_vm5, %v2227_v28, %v2224_v58  ;;  %v1727_v14 = vmul.f32 0.6931472, %v4838_v56  ;;  %4857 = vtanh.f32 %v6544_v34  ;;  %4522 = vmatprep.mubr.msk.f32.mxu1 %vm1400_vm2, %v4844_v19  ;;  %v7719_v58 = vld [vmem:[#allocation13_spill] sm:$0xff] }
 0x2bd   : > { %v2243_v62 = vadd.f32 %v2203_v49, %v7716_v1  ;;  %v2348_v45 = vsel %vm1400_vm2, %v6563_v51, -inf  ;;  %v2221_v24 = vsel %vm6558_vm6, %v2218_v54, %v2215_v21  ;;  %v4846_v0 = vpop.eup %4845  ;;  %v1733_v59 = vmul.f32 0.6931472, %v4842_v25  ;;  %4523 = vmatmul.mubr.msk.f32.gmra.mxu1 %vm1400_vm2, %v4840_v2  ;;  %v7728_v25 = vld [vmem:[#allocation25_spill] sm:$0xff] }
 0x2be   : > { %2349 = vmax.xlane.f32.xlu1 %v2348_v45  ;;  %v6581_v30 = vadd.f32 %v6482_v10, %v1768_v18  ;;  %v2274_v12 = vmul.f32 -2.0, %v6507_v41  ;;  %v2257_v13 = vadd.f32 %v7717_v52, %v2241_v53  ;;  %v1731_v39 = vmul.f32 0.6931472, %v4846_v0  ;;  %v7722_v53 = vld [vmem:[#allocation29_spill] sm:$0xff] }
 0x2bf   : > { %v1771_v43 = vadd.f32 %v6345_v6, %v1749_v26  ;;  %v2260_v33 = vadd.f32 %v7718_v38, %v2244_v44  ;;  %v7720_v60 = vmax.f32 %v7719_v58, 0.0  ;;  %v4848_v21 = vpop.eup %4847  ;;  %v6594_v41 = vadd.f32 %v4469_v4, %v6175_v47  ;;  %v7725_v18 = vld [vmem:[#allocation5_spill] sm:$0xff]  ;;  %v7727_v44 = vld [vmem:[#allocation27_spill] sm:$0xff]  ;;  %v7731_v38 = vld [vmem:[#allocation20_spill] sm:$0xff] }
 0x2c0   : > { %v2345_v10 = vsel %vm1400_vm2, %v6581_v30, -inf  ;;  %v2259_v56 = vadd.f32 %v7722_v53, %v2243_v62  ;;  %v7724_v28 = vmax.f32 %v7723_v15, 0.0  ;;  %v4850_v3 = vpop.eup %4849  ;;  %v4049_v55 = vadd.f32 -0.6931472, %v7725_v18  ;;  %4525 = vmatprep.mubr.msk.f32.mxu1 %vm1400_vm2, %v4848_v21  ;;  %v7730_v62 = vld [vmem:[#allocation8_spill] sm:$0xff]  ;;  %v7732_v58 = vld [vmem:[#allocation21_spill] sm:$0xff] }
 0x2c1   : > { %v2246_v49 = vadd.f32 %v2230_v63, %v7720_v60  ;;  %7721 = vst [vmem:[#allocation3_spill] sm:$0xff] %v6594_v41  ;;  %2346 = vmax.xlane.f32.xlu0 %v2345_v10  ;;  %v6600_v2 = vadd.f32 %v2274_v12, %v1771_v43  ;;  %v6603_v50 = vadd.f32 %v6175_v47, %v2886_v8  ;;  %v4852_v4 = vpop.eup %4851  ;;  %v4048_v22 = vadd.f32 -0.6931472, %v7728_v25 }
 0x2c2   : > { %v2245_v9 = vadd.f32 %v2221_v24, %v7724_v28  ;;  %v1748_v54 = vadd.f32 %v1727_v14, %v7727_v44  ;;  %v1737_v26 = vmul.f32 0.6931472, %v4850_v3  ;;  %v1751_v1 = vadd.f32 %v1733_v59, %v7729_v20  ;;  %v4854_v19 = vpop.eup %4853  ;;  %4526 = vmatmul.mubr.msk.f32.gmra.mxu1 %vm1400_vm2, %v4852_v4  ;;  %v2316_v14 = vld [vmem:[%s7461_s11] sm:$0xff] }
 0x2c3   : > { %7726 = vst [vmem:[#allocation12_spill] sm:$0xff] %v6603_v50  ;;  %v1750_v63 = vadd.f32 %v1731_v39, %v7730_v62  ;;  %v2354_v45 = vsel %vm1400_vm2, %v6600_v2, -inf  ;;  %v2273_v24 = vmul.f32 -2.0, %v2257_v13  ;;  %v2276_v0 = vmul.f32 -2.0, %v2260_v33  ;;  %4412 = vmatprep.subr.mxu0 %v2316_v14 }
 0x2c4   : > { %v2262_v47 = vadd.f32 %v4049_v55, %v2246_v49  ;;  %v1735_v12 = vmul.f32 0.6931472, %v4854_v19  ;;  %2355 = vmax.xlane.f32.xlu1 %v2354_v45  ;;  %4859 = vtanh.f32 %v6603_v50  ;;  %v1770_v59 = vadd.f32 %v6345_v6, %v1748_v54  ;;  %4413 = vmatpush3.msra.mxu0 %v2316_v14 }
 0x2c5   : > { %v2261_v8 = vadd.f32 %v4048_v22, %v2245_v9  ;;  %4861 = vtanh.f32 %v6594_v41  ;;  %v1773_v52 = vadd.f32 %v6345_v6, %v1751_v1  ;;  %v1772_v13 = vadd.f32 %v6345_v6, %v1750_v63 }
 0x2c6   : > { %v2275_v39 = vmul.f32 -2.0, %v2259_v56  ;;  %v6621_v43 = vadd.f32 %v2273_v24, %v1770_v59  ;;  %v1753_v33 = vadd.f32 %v1737_v26, %v7731_v38  ;;  %v1752_v60 = vadd.f32 %v1735_v12, %v7732_v58 }
 0x2c7   : > { %v6625_v49 = vadd.f32 %v2276_v0, %v1773_v52  ;;  %v2278_v10 = vmul.f32 -2.0, %v2262_v47  ;;  %v2277_v56 = vmul.f32 -2.0, %v2261_v8 }
 0x2c8   : > { %v6627_v21 = vadd.f32 %v2275_v39, %v1772_v13  ;;  %v2351_v53 = vsel %vm1400_vm2, %v6621_v43, -inf  ;;  %v1775_v15 = vadd.f32 %v6345_v6, %v1753_v33  ;;  %v1774_v28 = vadd.f32 %v6345_v6, %v1752_v60  ;;  %v4856_v9 = vpop.eup %4855 }
 0x2c9   : > { %2352 = vmax.xlane.f32.xlu0 %v2351_v53  ;;  %v2360_v3 = vsel %vm1400_vm2, %v6625_v49, -inf  ;;  %v4858_v18 = vpop.eup %4857  ;;  %4528 = vmatprep.mubr.msk.f32.mxu1 %vm1400_vm2, %v4856_v9 }
 0x2ca   : > { %2361 = vmax.xlane.f32.xlu1 %v2360_v3  ;;  %v2357_v55 = vsel %vm1400_vm2, %v6627_v21, -inf  ;;  %v6637_v44 = vadd.f32 %v2278_v10, %v1775_v15  ;;  %v6639_v54 = vadd.f32 %v2277_v56, %v1774_v28  ;;  %4529 = vmatmul.mubr.msk.f32.gmra.mxu1 %vm1400_vm2, %v4858_v18 }
 0x2cc   : > { %v2366_v6 = vsel %vm1400_vm2, %v6637_v44, -inf  ;;  %v2363_v4 = vsel %vm1400_vm2, %v6639_v54, -inf }
 0x2cd   : > { %2358 = vmax.xlane.f32.xlu0 %v2357_v55 }
 0x2ce   : > { %2367 = vmax.xlane.f32.xlu1 %v2366_v6 }
 0x2d1   : > { %v4860_v25 = vpop.eup %4859  ;;  %2364 = vmax.xlane.f32.xlu0 %v2363_v4 }
 0x2d2   : > { %v4862_v22 = vpop.eup %4861  ;;  %4531 = vmatprep.mubr.msk.f32.mxu1 %vm1400_vm2, %v4860_v25 }
 0x2d3   : > { %4532 = vmatmul.mubr.msk.f32.gmra.mxu1 %vm1400_vm2, %v4862_v22 }
 0x326   : > { %v6649_v26 = vpop.xlane.xlu1 %2325 }
 0x327   : > { %v2370_v20 = vsub.f32 %v6379_v16, %v6649_v26 }
 0x329   : > { %v6653_v1 = vpop.xlane.xlu0 %2322  ;;  %v2387_v63 = vmul.f32 1.442695, %v2370_v20  ;;  %v6710_v20 = vld [vmem:[%s7464_s14] ss:$0 sm:$0xff] }
 0x32a   : > { %v2369_v62 = vsub.f32 %v6396_v46, %v6653_v1 }
 0x32c   : > { %v2385_v19 = vmul.f32 1.442695, %v2369_v62 }
 0x32e   : > { %4863 = vpow2.f32 %v2385_v19 }
 0x32f   : > { %v6657_v45 = vpop.xlane.xlu1 %2331  ;;  %4865 = vpow2.f32 %v2387_v63 }
 0x330   : > { %v2372_v24 = vsub.f32 %v6426_v27, %v6657_v45  ;;  %v6661_v0 = vpop.xlane.xlu0 %2328 }
 0x331   : > { %v2371_v47 = vsub.f32 %v6430_v7, %v6661_v0 }
 0x332   : > { %v2391_v16 = vmul.f32 1.442695, %v2372_v24 }
 0x333   : > { %v2389_v14 = vmul.f32 1.442695, %v2371_v47 }
 0x335   : > { %4867 = vpow2.f32 %v2389_v14 }
 0x336   : > { %4869 = vpow2.f32 %v2391_v16 }
 0x338   : > { %v6665_v12 = vpop.xlane.xlu1 %2337 }
 0x339   : > { %v2374_v46 = vsub.f32 %v6476_v5, %v6665_v12  ;;  %v6669_v59 = vpop.xlane.xlu0 %2334 }
 0x33a   : > { %7733 = vst [vmem:[#allocation16_spill] sm:$0xff] %v6669_v59  ;;  %v2373_v8 = vsub.f32 %v6480_v40, %v6669_v59 }
 0x33b   : > { %v2395_v27 = vmul.f32 1.442695, %v2374_v46  ;;  %v4864_v13 = vpop.eup %4863 }
 0x33c   : > { %v2393_v52 = vmul.f32 1.442695, %v2373_v8  ;;  %v4866_v39 = vpop.eup %4865  ;;  %4414 = vmatprep.mubr.msk.f32.mxu0 %vm1400_vm2, %v4864_v13 }
 0x33d   : > { %v6673_v7 = vpop.xlane.xlu1 %2343  ;;  %4415 = vmatmul.mubr.msk.f32.vlgmr.msra.gmra.mxu0 %vm1400_vm2, %v4866_v39 }
 0x33e   : > { %4871 = vpow2.f32 %v2393_v52  ;;  %7734 = vst [vmem:[#allocation22_spill] sm:$0xff] %v6673_v7  ;;  %v2376_v5 = vsub.f32 %v6510_v35, %v6673_v7 }
 0x33f   : > { %4873 = vpow2.f32 %v2395_v27 }
 0x340   : > { %v2399_v60 = vmul.f32 1.442695, %v2376_v5 }
 0x342   : > { %v4868_v38 = vpop.eup %4867 }
 0x343   : > { %v6679_v33 = vpop.xlane.xlu0 %2340  ;;  %v4870_v58 = vpop.eup %4869  ;;  %4417 = vmatprep.mubr.msk.f32.mxu0 %vm1400_vm2, %v4868_v38 }
 0x344   : > { %7735 = vst [vmem:[#allocation24_spill] sm:$0xff] %v6679_v33  ;;  %v2375_v40 = vsub.f32 %v6538_v31, %v6679_v33  ;;  %4418 = vmatmul.mubr.msk.f32.gmra.mxu0 %vm1400_vm2, %v4870_v58 }
 0x346   : > { %v2397_v10 = vmul.f32 1.442695, %v2375_v40 }
 0x347   : > { %v6685_v53 = vpop.xlane.xlu1 %2349 }
 0x348   : > { %7736 = vst [vmem:[#allocation4_spill] sm:$0xff] %v6685_v53  ;;  %v2378_v15 = vsub.f32 %v6563_v51, %v6685_v53  ;;  %4875 = vpow2.f32 %v2397_v10 }
 0x349   : > { %4877 = vpow2.f32 %v2399_v60 }
 0x34a   : > { %v6689_v35 = vpop.xlane.xlu0 %2346  ;;  %v2403_v31 = vmul.f32 1.442695, %v2378_v15 }
 0x34b   : > { %7737 = vst [vmem:[#allocation15_spill] sm:$0xff] %v6689_v35  ;;  %v2377_v28 = vsub.f32 %v6581_v30, %v6689_v35  ;;  %v4872_v56 = vpop.eup %4871 }
 0x34c   : > { %v4874_v9 = vpop.eup %4873  ;;  %4420 = vmatprep.mubr.msk.f32.mxu0 %vm1400_vm2, %v4872_v56 }
 0x34d   : > { %v2401_v3 = vmul.f32 1.442695, %v2377_v28  ;;  %v6693_v18 = vpop.xlane.xlu1 %2355  ;;  %4421 = vmatmul.mubr.msk.f32.gmra.mxu0 %vm1400_vm2, %v4874_v9 }
 0x34e   : > { %7738 = vst [vmem:[#allocation26_spill] sm:$0xff] %v6693_v18  ;;  %v2380_v51 = vsub.f32 %v6600_v2, %v6693_v18 }
 0x34f   : > { %4879 = vpow2.f32 %v2401_v3 }
 0x350   : > { %4881 = vpow2.f32 %v2403_v31  ;;  %v2407_v4 = vmul.f32 1.442695, %v2380_v51 }
 0x352   : > { %v6699_v55 = vpop.xlane.xlu0 %2352 }
 0x353   : > { %7739 = vst [vmem:[#allocation2_spill] sm:$0xff] %v6699_v55  ;;  %v2379_v30 = vsub.f32 %v6621_v43, %v6699_v55  ;;  %v6703_v6 = vpop.xlane.xlu1 %2361  ;;  %v6910_v55 = vadd.f32 -0.6931472, %v6468_v36 }
 0x354   : > { %7740 = vst [vmem:[#allocation17_spill] sm:$0xff] %v6703_v6  ;;  %v2382_v25 = vsub.f32 %v6625_v49, %v6703_v6  ;;  %v4512_v49 = vpop.f32.mrf.mxu1 }
 0x355   : > { %v2405_v22 = vmul.f32 1.442695, %v2379_v30  ;;  %v4876_v62 = vpop.eup %4875  ;;  %7756 = vst [vmem:[#allocation18_spill] sm:$0xff] %v6910_v55 }
 0x356   : > { %v6712_v63 = vpop.xlane.xlu0 %2358  ;;  %v4878_v2 = vpop.eup %4877  ;;  %4423 = vmatprep.mubr.msk.f32.mxu0 %vm1400_vm2, %v4876_v62  ;;  %v2411_v24 = vmul.f32 1.442695, %v2382_v25 }
 0x357   : > { %7741 = vst [vmem:[#allocation23_spill] sm:$0xff] %v6712_v63  ;;  %4883 = vpow2.f32 %v2405_v22  ;;  %v2381_v43 = vsub.f32 %v6627_v21, %v6712_v63  ;;  %v6716_v19 = vpop.xlane.xlu1 %2367  ;;  %4424 = vmatmul.mubr.msk.f32.gmra.mxu0 %vm1400_vm2, %v4878_v2  ;;  %v3742_v21 = vadd.f32 %v4512_v49, %v6710_v20  ;;  %v3736_v14 = vpop.f32.mrf.mxu1  ;;  %v6893_v63 = vadd.f32 -0.6931472, %v6407_v37 }
 0x358   : > { %7742 = vst [vmem:[#allocation6_spill] sm:$0xff] %v6716_v19  ;;  %4885 = vpow2.f32 %v2407_v4  ;;  %v2384_v47 = vsub.f32 %v6637_v44, %v6716_v19  ;;  %v3737_v8 = vadd.f32 %v6710_v20, %v3736_v14 }
 0x359   : > { %v2409_v16 = vmul.f32 1.442695, %v2381_v43  ;;  %3816 = vst.msk [vmem:[%s6723_s29 + $0x8] sm:$0xff] %vm613_vm1, %v3742_v21 }
 0x35a   : > { %v6729_v46 = vpop.xlane.xlu0 %2364  ;;  %v2415_v44 = vmul.f32 1.442695, %v2384_v47  ;;  %3815 = vst.msk [vmem:[%s6723_s29] sm:$0xff] %vm613_vm1, %v3737_v8 }
 0x35b   : > { %7743 = vst [vmem:[#allocation9_spill] sm:$0xff] %v6729_v46  ;;  %4887 = vpow2.f32 %v2409_v16  ;;  %v2383_v27 = vsub.f32 %v6639_v54, %v6729_v46 }
 0x35c   : > { %v4880_v52 = vpop.eup %4879  ;;  %4889 = vpow2.f32 %v2411_v24 }
 0x35d   : > { %v4882_v13 = vpop.eup %4881  ;;  %v2413_v39 = vmul.f32 1.442695, %v2383_v27  ;;  %4426 = vmatprep.mubr.msk.f32.mxu0 %vm1400_vm2, %v4880_v52  ;;  %v4515_v5 = vpop.f32.mrf.mxu1 }
 0x35e   : > { %4427 = vmatmul.mubr.msk.f32.gmra.mxu0 %vm1400_vm2, %v4882_v13  ;;  %v3752_v38 = vadd.f32 %v4515_v5, %v6710_v20 }
 0x35f   : > { %4891 = vpow2.f32 %v2413_v39  ;;  %v3746_v58 = vpop.f32.mrf.mxu1 }
 0x360   : > { %4893 = vpow2.f32 %v2415_v44  ;;  %3818 = vst.msk [vmem:[%s6723_s29 + $0x18] sm:$0xff] %vm613_vm1, %v3752_v38  ;;  %v3747_v54 = vadd.f32 %v6710_v20, %v3746_v58  ;;  %v3239_v38 = vld [vmem:[%s7465_s15 + $0x18] sm:$0xff]  ;;  %v3238_v58 = vld [vmem:[%s7465_s15 + $0x10] sm:$0xff] }
 0x361   : > { %4470 = vmatprep.subr.mxu0 %v3239_v38 }
 0x362   : > { %3817 = vst.msk [vmem:[%s6723_s29 + $0x10] sm:$0xff] %vm613_vm1, %v3747_v54  ;;  %4471 = vmatpush3.msra.mxu0 %v3239_v38 }
 0x363   : > { %4472 = vmatprep.subr.mxu0 %v3238_v58 }
 0x364   : > { %v4884_v40 = vpop.eup %4883  ;;  %4473 = vmatpush3.msra.mxu0 %v3238_v58 }
 0x365   : > { %v4886_v60 = vpop.eup %4885  ;;  %4429 = vmatprep.mubr.msk.f32.mxu0 %vm1400_vm2, %v4884_v40  ;;  %v7744_v40 = vld [vmem:[#allocation30_spill] sm:$0xff] }
 0x366   : > { %4430 = vmatmul.mubr.msk.f32.gmra.mxu0 %vm1400_vm2, %v4886_v60  ;;  %v6795_v54 = vmul.f32 -2.0, %v7744_v40 }
 0x368   : > { %v4888_v10 = vpop.eup %4887  ;;  %v4518_v28 = vpop.f32.mrf.mxu1  ;;  %v2944_v60 = vand.u32 2147483647, %v6795_v54 }
 0x369   : > { %v4890_v15 = vpop.eup %4889  ;;  %4432 = vmatprep.mubr.msk.f32.mxu0 %vm1400_vm2, %v4888_v10  ;;  %v3762_v31 = vadd.f32 %v4518_v28, %v6710_v20  ;;  %v6805_v28 = vmul.f32 -2.0, %v6278_v42 }
 0x36a   : > { %4433 = vmatmul.mubr.msk.f32.gmra.mxu0 %vm1400_vm2, %v4890_v15  ;;  %v3756_v3 = vpop.f32.mrf.mxu1  ;;  %v6802_v15 = vmul.f32 -2.0, %v6284_v61 }
 0x36b   : > { %3820 = vst.msk [vmem:[%s6723_s29 + $0x28] sm:$0xff] %vm613_vm1, %v3762_v31  ;;  %v3757_v51 = vadd.f32 %v6710_v20, %v3756_v3  ;;  %v6808_v31 = vmul.f32 -2.0, %v6355_v17 }
 0x36c   : > { %v4892_v56 = vpop.eup %4891  ;;  %v2946_v3 = vand.u32 2147483647, %v6802_v15 }
 0x36d   : > { %v4894_v9 = vpop.eup %4893  ;;  %4435 = vmatprep.mubr.msk.f32.mxu0 %vm1400_vm2, %v4892_v56  ;;  %3819 = vst.msk [vmem:[%s6723_s29 + $0x20] sm:$0xff] %vm613_vm1, %v3757_v51  ;;  %v2960_v56 = vsub.f32 0.0, %v2944_v60  ;;  %v2945_v51 = vand.u32 2147483647, %v6805_v28  ;;  %v6837_v60 = vadd.f32 -0.6931472, %v7744_v40 }
 0x36e   : > { %4436 = vmatmul.mubr.msk.f32.gmra.mxu0 %vm1400_vm2, %v4894_v9  ;;  %v6852_v40 = vadd.f32 -0.6931472, %v6284_v61  ;;  %v6866_v61 = vmul.f32 -2.0, %v6594_v41 }
 0x370   : > { %7752 = vst [vmem:[#allocation14_spill] sm:$0xff] %v6866_v61 }
 0x371   : > { %v4521_v30 = vpop.f32.mrf.mxu1 }
 0x372   : > { %v3772_v4 = vadd.f32 %v4521_v30, %v6710_v20  ;;  %v2977_v30 = vmul.f32 1.442695, %v2960_v56  ;;  %v6883_v56 = vadd.f32 -0.6931472, %v6348_v29 }
 0x373   : > { %v3766_v25 = vpop.f32.mrf.mxu1 }
 0x374   : > { %3822 = vst.msk [vmem:[%s6723_s29 + $0x38] sm:$0xff] %vm613_vm1, %v3772_v4  ;;  %v3767_v22 = vadd.f32 %v6710_v20, %v3766_v25  ;;  %v2948_v4 = vand.u32 2147483647, %v6808_v31  ;;  %4895 = vpow2.f32 %v2977_v30 }
 0x376   : > { %3821 = vst.msk [vmem:[%s6723_s29 + $0x30] sm:$0xff] %vm613_vm1, %v3767_v22  ;;  %v2962_v22 = vsub.f32 0.0, %v2946_v3 }
 0x37d   : > { %v4524_v62 = vpop.f32.mrf.mxu1 }
 0x37e   : > { %v3782_v2 = vadd.f32 %v4524_v62, %v6710_v20  ;;  %v2961_v62 = vsub.f32 0.0, %v2945_v51 }
 0x37f   : > { %v3776_v43 = vpop.f32.mrf.mxu1 }
 0x380   : > { %3824 = vst.msk [vmem:[%s6723_s29 + $0x48] sm:$0xff] %vm613_vm1, %v3782_v2  ;;  %v3777_v49 = vadd.f32 %v6710_v20, %v3776_v43  ;;  %v2964_v2 = vsub.f32 0.0, %v2948_v4  ;;  %v6815_v43 = vmul.f32 -2.0, %v6348_v29 }
 0x381   : > { %v6845_v4 = vpop.eup %4895 }
 0x382   : > { %v4527_v24 = vpop.f32.mrf.mxu1  ;;  %3823 = vst.msk [vmem:[%s6723_s29 + $0x40] sm:$0xff] %vm613_vm1, %v3777_v49 }
 0x383   : > { %v3792_v47 = vadd.f32 %v4527_v24, %v6710_v20  ;;  %v6818_v24 = vmul.f32 -2.0, %v6407_v37 }
 0x384   : > { %v3786_v21 = vpop.f32.mrf.mxu1 }
 0x385   : > { %3826 = vst.msk [vmem:[%s6723_s29 + $0x58] sm:$0xff] %vm613_vm1, %v3792_v47  ;;  %v3787_v16 = vadd.f32 %v6710_v20, %v3786_v21  ;;  %v2981_v47 = vmul.f32 1.442695, %v2962_v22  ;;  %v2979_v21 = vmul.f32 1.442695, %v2961_v62 }
 0x387   : > { %3825 = vst.msk [vmem:[%s6723_s29 + $0x50] sm:$0xff] %vm613_vm1, %v3787_v16  ;;  %v2985_v16 = vmul.f32 1.442695, %v2964_v2  ;;  %v6849_v2 = vmul.f32 -2.0, %v6504_v32 }
 0x389   : > { %7749 = vst [vmem:[#allocation28_spill] sm:$0xff] %v6849_v2 }
 0x38a   : > { %v4530_v14 = vpop.f32.mrf.mxu1 }
 0x38b   : > { %v3802_v8 = vadd.f32 %v4530_v14, %v6710_v20  ;;  %v2947_v14 = vand.u32 2147483647, %v6815_v43 }
 0x38c   : > { %v3796_v27 = vpop.f32.mrf.mxu1 }
 0x38d   : > { %3828 = vst.msk [vmem:[%s6723_s29 + $0x68] sm:$0xff] %vm613_vm1, %v3802_v8  ;;  %v3797_v52 = vadd.f32 %v6710_v20, %v3796_v27  ;;  %v2950_v8 = vand.u32 2147483647, %v6818_v24  ;;  %v6823_v27 = vmul.f32 -2.0, %v6411_v48 }
 0x38f   : > { %3827 = vst.msk [vmem:[%s6723_s29 + $0x60] sm:$0xff] %vm613_vm1, %v3797_v52  ;;  %v6826_v52 = vmul.f32 -2.0, %v6456_v57  ;;  %v2949_v38 = vand.u32 2147483647, %v6823_v27 }
 0x391   : > { %7746 = vst [vmem:[#allocation19_spill] sm:$0xff] %v6826_v52  ;;  %v2952_v58 = vand.u32 2147483647, %v6826_v52  ;;  %v2965_v62 = vsub.f32 0.0, %v2949_v38  ;;  %v6870_v38 = vadd.f32 -0.6931472, %v6355_v17 }
 0x393   : > { %v4533_v44 = vpop.f32.mrf.mxu1 }
 0x394   : > { %v3812_v13 = vadd.f32 %v4533_v44, %v6710_v20  ;;  %v6829_v44 = vmul.f32 -2.0, %v6468_v36 }
 0x395   : > { %v3806_v39 = vpop.f32.mrf.mxu1 }
 0x396   : > { %3830 = vst.msk [vmem:[%s6723_s29 + $0x78] sm:$0xff] %vm613_vm1, %v3812_v13  ;;  %v3807_v5 = vadd.f32 %v6710_v20, %v3806_v39  ;;  %v7745_v20 = vld [vmem:[#allocation31_spill] sm:$0xff]  ;;  %7747 = vst [vmem:[#allocation7_spill] sm:$0xff] %v6829_v44  ;;  %v2963_v13 = vsub.f32 0.0, %v2947_v14  ;;  %v6832_v39 = vmul.f32 -2.0, %v6501_v11 }
 0x397   : > { %v6799_v10 = vmul.f32 -2.0, %v7745_v20  ;;  %v6842_v3 = vadd.f32 -0.6931472, %v7745_v20  ;;  %v6856_v20 = vmul.f32 -2.0, %v6544_v34 }
 0x398   : > { %3829 = vst.msk [vmem:[%s6723_s29 + $0x70] sm:$0xff] %vm613_vm1, %v3807_v5  ;;  %7748 = vst [vmem:[#allocation11_spill] sm:$0xff] %v6832_v39  ;;  %v2966_v5 = vsub.f32 0.0, %v2950_v8  ;;  %v2983_v51 = vmul.f32 1.442695, %v2963_v13  ;;  %v6863_v8 = vmul.f32 -2.0, %v6541_v23 }
 0x399   : > { %v2943_v9 = vand.u32 2147483647, %v6799_v10  ;;  %v2954_v30 = vand.u32 2147483647, %v6832_v39  ;;  %7750 = vst [vmem:[#allocation13_spill] sm:$0xff] %v6856_v20  ;;  %v7770_v39 = vmax.f32 %v6795_v54, 0.0 }
 0x39a   : > { %v2989_v22 = vmul.f32 1.442695, %v2966_v5  ;;  %7751 = vst [vmem:[#allocation29_spill] sm:$0xff] %v6863_v8  ;;  %v3016_v5 = vadd.f32 1.0, %v6845_v4  ;;  %v6901_v23 = vadd.f32 -0.6931472, %v6411_v48 }
 0x39b   : > { %v2959_v25 = vsub.f32 0.0, %v2943_v9  ;;  %v2951_v9 = vand.u32 2147483647, %v6829_v44  ;;  %v2970_v13 = vsub.f32 0.0, %v2954_v30  ;;  %v6878_v30 = vmul.f32 -2.0, %v6603_v50 }
 0x39c   : > { %7754 = vst [vmem:[#allocation27_spill] sm:$0xff] %v6901_v23 }
 0x39d   : > { %v2975_v49 = vmul.f32 1.442695, %v2959_v25  ;;  %v2967_v14 = vsub.f32 0.0, %v2951_v9  ;;  %7753 = vst [vmem:[#allocation5_spill] sm:$0xff] %v6878_v30  ;;  %v2997_v19 = vmul.f32 1.442695, %v2970_v13 }
 0x39e   : > { %v2957_v6 = vand.u32 2147483647, %v6878_v30 }
 0x39f   : > { %4897 = vpow2.f32 %v2975_v49  ;;  %v2991_v17 = vmul.f32 1.442695, %v2967_v14 }
 0x3a0   : > { %4899 = vpow2.f32 %v2981_v47  ;;  %v2968_v47 = vsub.f32 0.0, %v2952_v58  ;;  %v2987_v58 = vmul.f32 1.442695, %v2965_v62 }
 0x3a1   : > { %4901 = vpow2.f32 %v2979_v21  ;;  %v6859_v21 = vadd.f32 -0.6931472, %v6278_v42  ;;  %v2953_v42 = vand.u32 2147483647, %v6849_v2 }
 0x3a2   : > { %4903 = vpow2.f32 %v2985_v16  ;;  %v2993_v16 = vmul.f32 1.442695, %v2968_v47  ;;  %v2958_v47 = vand.u32 2147483647, %v6866_v61 }
 0x3a3   : > { %4905 = vpow2.f32 %v2983_v51  ;;  %v2956_v51 = vand.u32 2147483647, %v6856_v20  ;;  %v2969_v50 = vsub.f32 0.0, %v2953_v42  ;;  %v6906_v42 = vadd.f32 -0.6931472, %v6456_v57 }
 0x3a4   : > { %4907 = vpow2.f32 %v2989_v22  ;;  %v2955_v22 = vand.u32 2147483647, %v6863_v8  ;;  %v2974_v37 = vsub.f32 0.0, %v2958_v47 }
 0x3a5   : > { %4909 = vlog2.f32 %v3016_v5  ;;  %v2972_v14 = vsub.f32 0.0, %v2956_v51  ;;  %7755 = vst [vmem:[#allocation25_spill] sm:$0xff] %v6906_v42  ;;  %v2995_v51 = vmul.f32 1.442695, %v2969_v50 }
 0x3a6   : > { %4911 = vpow2.f32 %v2987_v58  ;;  %v2971_v46 = vsub.f32 0.0, %v2955_v22  ;;  %v2973_v22 = vsub.f32 0.0, %v2957_v6  ;;  %v3005_v57 = vmul.f32 1.442695, %v2974_v37 }
 0x3a7   : > { %4913 = vpow2.f32 %v2993_v16  ;;  %v6915_v16 = vadd.f32 -0.6931472, %v6501_v11  ;;  %v3022_v37 = vand.u32 2147483647, %v6845_v4 }
 0x3a8   : > { %4915 = vpow2.f32 %v2991_v17  ;;  %v3001_v17 = vmul.f32 1.442695, %v2972_v14  ;;  %v2999_v48 = vmul.f32 1.442695, %v2971_v46  ;;  %v3003_v14 = vmul.f32 1.442695, %v2973_v22 }
 0x3a9   : > { %4917 = vpow2.f32 %v2997_v19  ;;  %v3019_v19 = vmul.f32 -0.5, %v6845_v4  ;;  %7757 = vst [vmem:[#allocation8_spill] sm:$0xff] %v6915_v16  ;;  %vm6945_vm7 = vcmp.lt.f32.partialorder %v3022_v37, 0.0004427343 }
 0x3ac   : > { %v6873_v49 = vpop.eup %4897 }
 0x3ad   : > { %v6880_v25 = vpop.eup %4899  ;;  %v3007_v29 = vadd.f32 1.0, %v6873_v49  ;;  %v3010_v36 = vmul.f32 -0.5, %v6873_v49 }
 0x3ae   : > { %v6886_v62 = vpop.eup %4901  ;;  %v3034_v41 = vadd.f32 1.0, %v6880_v25  ;;  %v3037_v11 = vmul.f32 -0.5, %v6880_v25  ;;  %v3040_v22 = vand.u32 2147483647, %v6880_v25 }
 0x3af   : > { %v6890_v9 = vpop.eup %4903  ;;  %v3025_v5 = vadd.f32 1.0, %v6886_v62  ;;  %4919 = vlog2.f32 %v3007_v29  ;;  %v3011_v46 = vadd.f32 1.0, %v3010_v36 }
 0x3b0   : > { %v3052_v58 = vadd.f32 1.0, %v6890_v9  ;;  %4921 = vlog2.f32 %v3034_v41  ;;  %v6917_v50 = vpop.eup %4905  ;;  %v6921_v41 = vadd.f32 -0.6931472, %v6504_v32  ;;  %v6931_v32 = vadd.f32 -0.6931472, %v6544_v34 }
 0x3b1   : > { %4923 = vlog2.f32 %v3025_v5  ;;  %v6924_v6 = vpop.eup %4907  ;;  %v3020_v5 = vadd.f32 1.0, %v3019_v19  ;;  %v3043_v29 = vadd.f32 1.0, %v6917_v50  ;;  %v3038_v34 = vadd.f32 1.0, %v3037_v11 }
 0x3b2   : > { %4925 = vlog2.f32 %v3052_v58  ;;  %7758 = vst [vmem:[#allocation20_spill] sm:$0xff] %v6921_v41  ;;  %v3028_v58 = vmul.f32 -0.5, %v6886_v62  ;;  %7759 = vst [vmem:[#allocation21_spill] sm:$0xff] %v6931_v32  ;;  %v4910_v47 = vpop.eup %4909  ;;  %v3055_v32 = vmul.f32 -0.5, %v6890_v9  ;;  %v3031_v41 = vand.u32 2147483647, %v6886_v62 }
 0x3b3   : > { %4927 = vpow2.f32 %v2995_v51  ;;  %v6938_v19 = vpop.eup %4911  ;;  %v3021_v30 = vmul.f32 %v6845_v4, %v3020_v5  ;;  %v3018_v13 = vmul.f32 0.6931472, %v4910_v47  ;;  %v6956_v16 = vmul.f32 %v6873_v49, %v3011_v46 }
 0x3b4   : > { %4929 = vpow2.f32 %v3001_v17  ;;  %v3013_v17 = vand.u32 2147483647, %v6873_v49  ;;  %v6942_v51 = vpop.eup %4913  ;;  %v3029_v18 = vadd.f32 1.0, %v3028_v58  ;;  %vm6962_vm9 = vcmp.lt.f32.partialorder %v3040_v22, 0.0004427343 }
 0x3b5   : > { %4931 = vpow2.f32 %v2999_v48  ;;  %v3070_v48 = vadd.f32 1.0, %v6924_v6  ;;  %v6950_v61 = vpop.eup %4915  ;;  %v3046_v37 = vmul.f32 -0.5, %v6917_v50  ;;  %v3039_v58 = vmul.f32 %v6880_v25, %v3038_v34 }
 0x3b6   : > { %4933 = vpow2.f32 %v3005_v57  ;;  %v6953_v11 = vpop.eup %4917  ;;  %vm6958_vm8 = vcmp.lt.f32.partialorder %v3013_v17, 0.0004427343  ;;  %v6969_v49 = vmul.f32 %v6886_v62, %v3029_v18  ;;  %vm6971_vm10 = vcmp.lt.f32.partialorder %v3031_v41, 0.0004427343 }
 0x3b7   : > { %4935 = vpow2.f32 %v3003_v14  ;;  %v3058_v14 = vand.u32 2147483647, %v6890_v9  ;;  %v3073_v17 = vmul.f32 -0.5, %v6924_v6  ;;  %v3061_v22 = vadd.f32 1.0, %v6938_v19 }
 0x3b8   : > { %4937 = vlog2.f32 %v3043_v29  ;;  %v3024_v25 = vsel %vm6945_vm7, %v3021_v30, %v3018_v13  ;;  %v3049_v18 = vand.u32 2147483647, %v6917_v50  ;;  %v3047_v41 = vadd.f32 1.0, %v3046_v37 }
 0x3b9   : > { %4939 = vlog2.f32 %v3070_v48  ;;  %v3064_v48 = vmul.f32 -0.5, %v6938_v19  ;;  %vm6980_vm11 = vcmp.lt.f32.partialorder %v3058_v14, 0.0004427343  ;;  %v3088_v34 = vadd.f32 1.0, %v6942_v51 }
 0x3ba   : > { %v3091_v53 = vmul.f32 -0.5, %v6942_v51  ;;  %v3152_v55 = vadd.f32 %v3024_v25, %v7770_v39  ;;  %v3074_v37 = vadd.f32 1.0, %v3073_v17  ;;  %vm7012_vm12 = vcmp.lt.f32.partialorder %v3049_v18, 0.0004427343 }
 0x3bb   : > { %v3065_v44 = vadd.f32 1.0, %v3064_v48  ;;  %v7774_v48 = vmax.f32 %v6802_v15, 0.0  ;;  %v3085_v46 = vand.u32 2147483647, %v6950_v61  ;;  %v7777_v15 = vmax.f32 %v6805_v28, 0.0 }
 0x3bc   : > { %v4920_v47 = vpop.eup %4919  ;;  %v7784_v18 = vmax.f32 %v6818_v24, 0.0 }
 0x3bd   : > { %v4922_v2 = vpop.eup %4921  ;;  %v3009_v36 = vmul.f32 0.6931472, %v4920_v47  ;;  %v3079_v47 = vadd.f32 1.0, %v6950_v61  ;;  %vm7096_vm0 = vcmp.lt.f32.partialorder %v3085_v46, 0.0004427343 }
 0x3be   : > { %v4924_v35 = vpop.eup %4923  ;;  %v3036_v30 = vmul.f32 0.6931472, %v4922_v2  ;;  %v7000_v2 = vmul.f32 %v6917_v50, %v3047_v41 }
 0x3bf   : > { %v3027_v59 = vmul.f32 0.6931472, %v4924_v35  ;;  %v3015_v54 = vsel %vm6958_vm8, %v6956_v16, %v3009_v36  ;;  %v3109_v16 = vmul.f32 -0.5, %v6953_v11 }
 0x3c0   : > { %v3042_v39 = vsel %vm6962_vm9, %v3039_v58, %v3036_v30 }
 0x3c1   : > { %v3033_v4 = vsel %vm6971_vm10, %v6969_v49, %v3027_v59  ;;  %v3154_v25 = vadd.f32 %v3042_v39, %v7774_v48  ;;  %v3106_v59 = vadd.f32 1.0, %v6953_v11 }
 0x3c2   : > { %v3153_v41 = vadd.f32 %v3033_v4, %v7777_v15 }
 0x3fd   : > { %v4416_v57 = vpop.f32.mrf.mxu0 }
 0x3fe   : > { %v2611_v20 = vmax.f32 %v4416_v57, 1e-37  ;;  %v3056_v57 = vadd.f32 1.0, %v3055_v32  ;;  %v3076_v32 = vand.u32 2147483647, %v6924_v6 }
 0x3ff   : > { %v2531_v8 = vpop.f32.mrf.mxu0 }
 0x400   : > { %4941 = vlog2.f32 %v2611_v20  ;;  %v2610_v29 = vmax.f32 %v2531_v8, 1e-37  ;;  %v4926_v8 = vpop.eup %4925  ;;  %v3057_v13 = vmul.f32 %v6890_v9, %v3056_v57  ;;  %v3092_v9 = vadd.f32 1.0, %v3091_v53 }
 0x401   : > { %v6988_v33 = vpop.eup %4927  ;;  %v3054_v52 = vmul.f32 0.6931472, %v4926_v8  ;;  %v3168_v57 = vadd.f32 %v6837_v60, %v3152_v55  ;;  %v7017_v53 = vmul.f32 %v6924_v6, %v3074_v37  ;;  %v7027_v55 = vmul.f32 %v6938_v19, %v3065_v44 }
 0x402   : > { %4943 = vlog2.f32 %v2610_v29  ;;  %v6991_v14 = vpop.eup %4929  ;;  %v3094_v60 = vand.u32 2147483647, %v6942_v51  ;;  %v7773_v6 = vmax.f32 %v6799_v10, 0.0  ;;  %vm7034_vm13 = vcmp.lt.f32.partialorder %v3076_v32, 0.0004427343 }
 0x403   : > { %4945 = vlog2.f32 %v3061_v22  ;;  %v6995_v42 = vpop.eup %4931  ;;  %v3060_v5 = vsel %vm6980_vm11, %v3057_v13, %v3054_v52  ;;  %v3184_v8 = vmul.f32 -2.0, %v3168_v57  ;;  %v7778_v32 = vmax.f32 %v6808_v31, 0.0 }
 0x404   : > { %v4419_v62 = vpop.f32.mrf.mxu0  ;;  %v3151_v22 = vadd.f32 %v3015_v54, %v7773_v6  ;;  %v3097_v28 = vadd.f32 1.0, %v6988_v33  ;;  %vm7071_vm15 = vcmp.lt.f32.partialorder %v3094_v60, 0.0004427343  ;;  %v3100_v6 = vmul.f32 -0.5, %v6988_v33 }
 0x405   : > { %v2613_v29 = vmax.f32 %v4419_v62, 1e-37  ;;  %v6997_v62 = vpop.eup %4933  ;;  %v3115_v46 = vadd.f32 1.0, %v6995_v42 }
 0x406   : > { %v2541_v7 = vpop.f32.mrf.mxu0  ;;  %v7009_v35 = vpop.eup %4935  ;;  %v3101_v24 = vadd.f32 1.0, %v3100_v6 }
 0x407   : > { %4947 = vlog2.f32 %v2613_v29  ;;  %v2612_v23 = vmax.f32 %v2541_v7, 1e-37  ;;  %v3082_v7 = vmul.f32 -0.5, %v6950_v61  ;;  %v4938_v58 = vpop.eup %4937  ;;  %v3110_v29 = vadd.f32 1.0, %v3109_v16 }
 0x408   : > { %4949 = vlog2.f32 %v3088_v34  ;;  %v4940_v52 = vpop.eup %4939  ;;  %v3156_v34 = vadd.f32 %v3060_v5, %v7778_v32  ;;  %v3045_v13 = vmul.f32 0.6931472, %v4938_v58 }
 0x409   : > { %4951 = vlog2.f32 %v2612_v23  ;;  %v3067_v23 = vand.u32 2147483647, %v6938_v19  ;;  %v7040_v19 = vmul.f32 %v6942_v51, %v3092_v9  ;;  %v3083_v49 = vadd.f32 1.0, %v3082_v7  ;;  %v7050_v51 = vld [vmem:[%s7462_s12] ss:$0 sm:$0xff] }
 0x40a   : > { %4953 = vlog2.f32 %v3079_v47  ;;  %v3167_v9 = vadd.f32 %v6842_v3, %v3151_v22  ;;  %v3170_v47 = vadd.f32 %v6852_v40, %v3154_v25  ;;  %v3072_v39 = vmul.f32 0.6931472, %v4940_v52 }
 0x40b   : > { %v3169_v7 = vadd.f32 %v6859_v21, %v3153_v41  ;;  %v3172_v57 = vadd.f32 %v6870_v38, %v3156_v34  ;;  %vm7058_vm14 = vcmp.lt.f32.partialorder %v3067_v23, 0.0004427343  ;;  %v7063_v3 = vmul.f32 %v6950_v61, %v3083_v49 }
 0x40c   : > { %v3112_v40 = vand.u32 2147483647, %v6953_v11  ;;  %v7076_v38 = vmul.f32 %v6953_v11, %v3110_v29  ;;  %v3183_v23 = vmul.f32 -2.0, %v3167_v9  ;;  %v7783_v52 = vmax.f32 %v6815_v43, 0.0 }
 0x40d   : > { %v4422_v17 = vpop.f32.mrf.mxu0  ;;  %v4942_v10 = vpop.eup %4941  ;;  %v3185_v11 = vmul.f32 -2.0, %v3169_v7  ;;  %v3124_v43 = vadd.f32 1.0, %v6991_v14  ;;  %v3103_v9 = vand.u32 2147483647, %v6988_v33  ;;  %v3133_v21 = vadd.f32 1.0, %v7009_v35 }
 0x40e   : > { %v2615_v44 = vmax.f32 %v4422_v17, 1e-37  ;;  %v2629_v36 = vmul.f32 0.6931472, %v4942_v10  ;;  %v3186_v17 = vmul.f32 -2.0, %v3170_v47 }
 0x40f   : > { %v2551_v20 = vpop.f32.mrf.mxu0  ;;  %v4944_v37 = vpop.eup %4943  ;;  %vm7117_vm3 = vcmp.lt.f32.partialorder %v3112_v40, 0.0004427343  ;;  %vm7159_vm4 = vcmp.lt.f32.partialorder %v3103_v9, 0.0004427343 }
 0x410   : > { %4955 = vlog2.f32 %v2615_v44  ;;  %v2614_v30 = vmax.f32 %v2551_v20, 1e-37  ;;  %v2627_v31 = vmul.f32 0.6931472, %v4944_v37  ;;  %v2659_v54 = vadd.f32 %v2629_v36, %v6649_v26  ;;  %v4946_v4 = vpop.eup %4945 }
 0x411   : > { %4957 = vlog2.f32 %v3106_v59  ;;  %v3051_v26 = vsel %vm7012_vm12, %v7000_v2, %v3045_v13  ;;  %v3078_v2 = vsel %vm7034_vm13, %v7017_v53, %v3072_v39  ;;  %v7085_v59 = vmul.f32 -2.0, %v3172_v57 }
 0x412   : > { %4959 = vlog2.f32 %v2614_v30  ;;  %v2681_v5 = vadd.f32 %v7050_v51, %v2659_v54  ;;  %v2658_v58 = vadd.f32 %v2627_v31, %v6653_v1  ;;  %v3155_v44 = vadd.f32 %v3051_v26, %v7783_v52 }
 0x413   : > { %4961 = vlog2.f32 %v3097_v28  ;;  %v3063_v49 = vmul.f32 0.6931472, %v4946_v4  ;;  %v3158_v32 = vadd.f32 %v3078_v2, %v7784_v18  ;;  %v3142_v4 = vadd.f32 1.0, %v6997_v62  ;;  %v7790_v2 = vld [vmem:[#allocation19_spill] sm:$0xff] }
 0x414   : > { %v4948_v61 = vpop.eup %4947  ;;  %v7079_v1 = vadd.f32 %v3184_v8, %v2681_v5  ;;  %v2680_v50 = vadd.f32 %v7050_v51, %v2658_v58  ;;  %v3171_v28 = vadd.f32 %v6883_v56, %v3155_v44  ;;  %v3130_v18 = vand.u32 2147483647, %v6991_v14 }
 0x415   : > { %v4950_v22 = vpop.eup %4949  ;;  %v2633_v48 = vmul.f32 0.6931472, %v4948_v61  ;;  %v3069_v31 = vsel %vm7058_vm14, %v7027_v55, %v3063_v49 }
 0x416   : > { %v4952_v60 = vpop.eup %4951  ;;  %v3244_v8 = vsel %vm1400_vm2, %v7079_v1, -inf  ;;  %v7091_v15 = vadd.f32 %v3183_v23, %v2680_v50  ;;  %v3090_v34 = vmul.f32 0.6931472, %v4950_v22  ;;  %v3174_v50 = vadd.f32 %v6893_v63, %v3158_v32 }
 0x417   : > { %v4425_v25 = vpop.f32.mrf.mxu0  ;;  %v2631_v10 = vmul.f32 0.6931472, %v4952_v60  ;;  %3245 = vmax.xlane.f32.xlu1 %v3244_v8  ;;  %v2661_v53 = vadd.f32 %v2633_v48, %v6657_v45  ;;  %v4954_v36 = vpop.eup %4953  ;;  %v7791_v60 = vmax.f32 %v7790_v2, 0.0  ;;  %v3118_v63 = vmul.f32 -0.5, %v6995_v42 }
 0x418   : > { %v2617_v20 = vmax.f32 %v4425_v25, 1e-37  ;;  %v3241_v13 = vsel %vm1400_vm2, %v7091_v15, -inf  ;;  %v3096_v7 = vsel %vm7071_vm15, %v7040_v19, %v3090_v34  ;;  %v3081_v55 = vmul.f32 0.6931472, %v4954_v36 }
 0x419   : > { %v2561_v41 = vpop.f32.mrf.mxu0  ;;  %v2660_v37 = vadd.f32 %v2631_v10, %v6661_v0  ;;  %3242 = vmax.xlane.f32.xlu0 %v3241_v13  ;;  %v2683_v45 = vadd.f32 %v7050_v51, %v2661_v53  ;;  %v7789_v19 = vmax.f32 %v6823_v27, 0.0  ;;  %v3160_v25 = vadd.f32 %v3096_v7, %v7791_v60 }
 0x41a   : > { %4963 = vlog2.f32 %v2617_v20  ;;  %v2616_v30 = vmax.f32 %v2561_v41, 1e-37  ;;  %v3087_v44 = vsel %vm7096_vm0, %v7063_v3, %v3081_v55  ;;  %v7793_v20 = vld [vmem:[#allocation27_spill] sm:$0xff]  ;;  %v3187_v53 = vmul.f32 -2.0, %v3171_v28  ;;  %v7794_v3 = vld [vmem:[#allocation25_spill] sm:$0xff] }
 0x41b   : > { %v2682_v47 = vadd.f32 %v7050_v51, %v2660_v37  ;;  %v7112_v0 = vadd.f32 %v3186_v17, %v2683_v45  ;;  %v3157_v40 = vadd.f32 %v3069_v31, %v7789_v19  ;;  %v3176_v29 = vadd.f32 %v7794_v3, %v3160_v25 }
 0x41c   : > { %4965 = vlog2.f32 %v2616_v30  ;;  %v7152_v13 = vmul.f32 %v6988_v33, %v3101_v24  ;;  %v3119_v24 = vadd.f32 1.0, %v3118_v63  ;;  %vm7167_vm5 = vcmp.lt.f32.partialorder %v3130_v18, 0.0004427343 }
 0x41d   : > { %v4956_v54 = vpop.eup %4955  ;;  %4967 = vlog2.f32 %v3124_v43  ;;  %v7122_v16 = vadd.f32 %v3185_v11, %v2682_v47  ;;  %v3250_v23 = vsel %vm1400_vm2, %v7112_v0, -inf  ;;  %v7792_v11 = vld [vmem:[#allocation16_spill] sm:$0xff]  ;;  %v3173_v8 = vadd.f32 %v7793_v20, %v3157_v40  ;;  %v7795_v43 = vld [vmem:[#allocation7_spill] sm:$0xff] }
 0x41e   : > { %v4428_v39 = vpop.f32.mrf.mxu0  ;;  %v4958_v56 = vpop.eup %4957  ;;  %v2637_v5 = vmul.f32 0.6931472, %v4956_v54  ;;  %4969 = vlog2.f32 %v3115_v46  ;;  %3251 = vmax.xlane.f32.xlu1 %v3250_v23  ;;  %v7796_v36 = vmax.f32 %v7795_v43, 0.0  ;;  %v3190_v46 = vmul.f32 -2.0, %v3174_v50 }
 0x41f   : > { %v2619_v58 = vmax.f32 %v4428_v39, 1e-37  ;;  %v4960_v26 = vpop.eup %4959  ;;  %v3247_v22 = vsel %vm1400_vm2, %v7122_v16, -inf  ;;  %v3108_v49 = vmul.f32 0.6931472, %v4958_v56  ;;  %v3189_v39 = vmul.f32 -2.0, %v3173_v8 }
 0x420   : > { %v2571_v61 = vpop.f32.mrf.mxu0  ;;  %v2635_v17 = vmul.f32 0.6931472, %v4960_v26  ;;  %3248 = vmax.xlane.f32.xlu0 %v3247_v22  ;;  %v2663_v48 = vadd.f32 %v2637_v5, %v6665_v12  ;;  %v4962_v27 = vpop.eup %4961  ;;  %v3127_v12 = vmul.f32 -0.5, %v6991_v14  ;;  %v3159_v30 = vadd.f32 %v3087_v44, %v7796_v36  ;;  %v7802_v26 = vld [vmem:[#allocation11_spill] sm:$0xff] }
 0x421   : > { %4971 = vlog2.f32 %v2619_v58  ;;  %v2618_v6 = vmax.f32 %v2571_v61, 1e-37  ;;  %v3114_v47 = vsel %vm7117_vm3, %v7076_v38, %v3108_v49  ;;  %v7171_v5 = vmul.f32 -2.0, %v3176_v29  ;;  %v7801_v58 = vld [vmem:[#allocation18_spill] sm:$0xff]  ;;  %v7805_v49 = vld [vmem:[#allocation24_spill] sm:$0xff] }
 0x422   : > { %4973 = vlog2.f32 %v3142_v4  ;;  %v2662_v52 = vadd.f32 %v2635_v17, %v7792_v11  ;;  %v2685_v10 = vadd.f32 %v7050_v51, %v2663_v48  ;;  %v3128_v33 = vadd.f32 1.0, %v3127_v12 }
 0x423   : > { %4975 = vlog2.f32 %v2618_v6  ;;  %v3175_v55 = vadd.f32 %v7801_v58, %v3159_v30  ;;  %v7803_v61 = vmax.f32 %v7802_v26, 0.0  ;;  %v3121_v19 = vand.u32 2147483647, %v6995_v42  ;;  %v7804_v6 = vld [vmem:[#allocation22_spill] sm:$0xff] }
 0x424   : > { %v2684_v41 = vadd.f32 %v7050_v51, %v2662_v52  ;;  %4977 = vlog2.f32 %v3133_v21  ;;  %v7146_v34 = vadd.f32 %v7085_v59, %v2685_v10  ;;  %v3099_v50 = vmul.f32 0.6931472, %v4962_v27  ;;  %v7821_v27 = vld [vmem:[#allocation26_spill] sm:$0xff] }
 0x425   : > { %v3162_v23 = vadd.f32 %v3114_v47, %v7803_v61  ;;  %v3129_v2 = vmul.f32 %v6991_v14, %v3128_v33  ;;  %v7180_v60 = vmul.f32 %v6995_v42, %v3119_v24  ;;  %v3145_v25 = vmul.f32 -0.5, %v6997_v62  ;;  %v7808_v33 = vld [vmem:[#allocation4_spill] sm:$0xff] }
 0x426   : > { %v4431_v32 = vpop.f32.mrf.mxu0  ;;  %v7154_v45 = vadd.f32 %v3187_v53, %v2684_v41  ;;  %v3256_v54 = vsel %vm1400_vm2, %v7146_v34, -inf  ;;  %v3191_v12 = vmul.f32 -2.0, %v3175_v55  ;;  %vm7185_vm6 = vcmp.lt.f32.partialorder %v3121_v19, 0.0004427343  ;;  %v7810_v55 = vld [vmem:[#allocation28_spill] sm:$0xff] }
 0x427   : > { %v2621_v37 = vmax.f32 %v4431_v32, 1e-37  ;;  %v4964_v59 = vpop.eup %4963  ;;  %3257 = vmax.xlane.f32.xlu1 %v3256_v54  ;;  %v3136_v42 = vmul.f32 -0.5, %v7009_v35  ;;  %v3237_v32 = vld [vmem:[%s7465_s15 + $0x8] sm:$0xff]  ;;  %v3105_v36 = vsel %vm7159_vm4, %v7152_v13, %v3099_v50  ;;  %v3146_v30 = vadd.f32 1.0, %v3145_v25  ;;  %v7812_v19 = vld [vmem:[#allocation8_spill] sm:$0xff] }
 0x428   : > { %v2581_v31 = vpop.f32.mrf.mxu0  ;;  %v2641_v7 = vmul.f32 0.6931472, %v4964_v59  ;;  %v3253_v57 = vsel %vm1400_vm2, %v7154_v45, -inf  ;;  %4474 = vmatprep.subr.mxu0 %v3237_v32  ;;  %v7811_v26 = vmax.f32 %v7810_v55, 0.0  ;;  %v3139_v61 = vand.u32 2147483647, %v7009_v35 }
 0x429   : > { %4979 = vlog2.f32 %v2621_v37  ;;  %v2620_v4 = vmax.f32 %v2581_v31, 1e-37  ;;  %v4966_v9 = vpop.eup %4965  ;;  %3254 = vmax.xlane.f32.xlu0 %v3253_v57  ;;  %v3148_v37 = vand.u32 2147483647, %v6997_v62  ;;  %4475 = vmatpush3.msra.mxu0 %v3237_v32  ;;  %v3137_v28 = vadd.f32 1.0, %v3136_v42 }
 0x42a   : > { %v4434_v56 = vpop.f32.mrf.mxu0  ;;  %v4968_v40 = vpop.eup %4967  ;;  %v2639_v21 = vmul.f32 0.6931472, %v4966_v9  ;;  %v2665_v22 = vadd.f32 %v2641_v7, %v7804_v6  ;;  %v7809_v7 = vld [vmem:[#allocation15_spill] sm:$0xff]  ;;  %vm7238_vm8 = vcmp.lt.f32.partialorder %v3139_v61, 0.0004427343 }
 0x42b   : > { %4981 = vlog2.f32 %v2620_v4  ;;  %v2623_v17 = vmax.f32 %v4434_v56, 1e-37  ;;  %v4970_v11 = vpop.eup %4969  ;;  %v3126_v63 = vmul.f32 0.6931472, %v4968_v40  ;;  %v3178_v40 = vadd.f32 %v7812_v19, %v3162_v23 }
 0x42c   : > { %v2591_v48 = vpop.f32.mrf.mxu0  ;;  %v2687_v44 = vadd.f32 %v7050_v51, %v2665_v22  ;;  %v2664_v10 = vadd.f32 %v2639_v21, %v7805_v49  ;;  %v3117_v57 = vmul.f32 0.6931472, %v4970_v11  ;;  %v3147_v21 = vmul.f32 %v6997_v62, %v3146_v30  ;;  %v7817_v49 = vld [vmem:[#allocation14_spill] sm:$0xff] }
 0x42d   : > { %4983 = vlog2.f32 %v2623_v17  ;;  %v2622_v52 = vmax.f32 %v2591_v48, 1e-37  ;;  %v3132_v13 = vsel %vm7167_vm5, %v3129_v2, %v3126_v63  ;;  %v7813_v48 = vld [vmem:[#allocation13_spill] sm:$0xff]  ;;  %vm7222_vm7 = vcmp.lt.f32.partialorder %v3148_v37, 0.0004427343 }
 0x42e   : > { %v4972_v20 = vpop.eup %4971  ;;  %v4437_v8 = vpop.f32.mrf.mxu0  ;;  %v7190_v18 = vadd.f32 %v3190_v46, %v2687_v44  ;;  %v2686_v43 = vadd.f32 %v7050_v51, %v2664_v10  ;;  %v7814_v50 = vmax.f32 %v7813_v48, 0.0  ;;  %v3138_v11 = vmul.f32 %v7009_v35, %v3137_v28 }
 0x42f   : > { %v4974_v14 = vpop.eup %4973  ;;  %v2645_v41 = vmul.f32 0.6931472, %v4972_v20  ;;  %4985 = vlog2.f32 %v2622_v52  ;;  %v2625_v53 = vmax.f32 %v4437_v8, 1e-37  ;;  %v3123_v62 = vsel %vm7185_vm6, %v7180_v60, %v3117_v57  ;;  %v7818_v8 = vld [vmem:[#allocation20_spill] sm:$0xff] }
 0x430   : > { %v4976_v3 = vpop.eup %4975  ;;  %v2601_v29 = vpop.f32.mrf.mxu0  ;;  %v3262_v59 = vsel %vm1400_vm2, %v7190_v18, -inf  ;;  %v7202_v54 = vadd.f32 %v3189_v39, %v2686_v43  ;;  %v3144_v9 = vmul.f32 0.6931472, %v4974_v14  ;;  %v3161_v39 = vadd.f32 %v3105_v36, %v7811_v26  ;;  %v7824_v43 = vld [vmem:[#allocation29_spill] sm:$0xff] }
 0x431   : > { %v2643_v47 = vmul.f32 0.6931472, %v4976_v3  ;;  %4987 = vlog2.f32 %v2625_v53  ;;  %v2624_v46 = vmax.f32 %v2601_v29, 1e-37  ;;  %v4978_v31 = vpop.eup %4977  ;;  %3263 = vmax.xlane.f32.xlu1 %v3262_v59  ;;  %v2667_v24 = vadd.f32 %v2645_v41, %v7808_v33  ;;  %v7822_v53 = vld [vmem:[#allocation5_spill] sm:$0xff] }
 0x432   : > { %v3259_v56 = vsel %vm1400_vm2, %v7202_v54, -inf  ;;  %v3135_v17 = vmul.f32 0.6931472, %v4978_v31  ;;  %v3164_v2 = vadd.f32 %v3132_v13, %v7814_v50  ;;  %v2942_v10 = vmax.f32 %v7817_v49, 0.0  ;;  %v7823_v3 = vld [vmem:[#allocation21_spill] sm:$0xff]  ;;  %v7826_v31 = vld [vmem:[#allocation2_spill] sm:$0xff] }
 0x433   : > { %4989 = vlog2.f32 %v2624_v46  ;;  %v2666_v4 = vadd.f32 %v2643_v47, %v7809_v7  ;;  %v2689_v58 = vadd.f32 %v7050_v51, %v2667_v24  ;;  %3260 = vmax.xlane.f32.xlu0 %v3259_v56  ;;  %v3177_v63 = vadd.f32 %v7818_v8, %v3161_v39  ;;  %v7827_v13 = vld [vmem:[#allocation10_spill] sm:$0xff]  ;;  %v7828_v7 = vld [vmem:[#allocation3_spill] sm:$0xff]  ;;  %v7829_v26 = vld [vmem:[#allocation17_spill] sm:$0xff] }
 0x434   : > { %v3141_v14 = vsel %vm7238_vm8, %v3138_v11, %v3135_v17  ;;  %v2941_v32 = vmax.f32 %v7822_v53, 0.0  ;;  %v3180_v29 = vadd.f32 %v7823_v3, %v3164_v2  ;;  %v7825_v36 = vmax.f32 %v7824_v43, 0.0  ;;  %v7831_v11 = vld [vmem:[#allocation23_spill] sm:$0xff] }
 0x435   : > { %v2688_v38 = vadd.f32 %v7050_v51, %v2666_v4  ;;  %v7218_v22 = vadd.f32 %v7171_v5, %v2689_v58  ;;  %v3150_v5 = vsel %vm7222_vm7, %v3147_v21, %v3144_v9  ;;  %v3194_v59 = vmul.f32 -2.0, %v3178_v40 }
 0x436   : > { %v4980_v6 = vpop.eup %4979  ;;  %v3163_v30 = vadd.f32 %v3123_v62, %v7825_v36  ;;  %v3166_v37 = vadd.f32 %v3150_v5, %v2942_v10  ;;  %v4096_v28 = vadd.f32 -0.6931472, %v7827_v13  ;;  %v4099_v4 = vadd.f32 -0.6931472, %v7828_v7  ;;  %v3236_v5 = vld [vmem:[%s7465_s15] sm:$0xff] }
 0x437   : > { %v2649_v52 = vmul.f32 0.6931472, %v4980_v6  ;;  %v7227_v44 = vadd.f32 %v3191_v12, %v2688_v38  ;;  %v3268_v20 = vsel %vm1400_vm2, %v7218_v22, -inf  ;;  %v3193_v57 = vmul.f32 -2.0, %v3177_v63  ;;  %v7830_v38 = vld [vmem:[#allocation12_spill] sm:$0xff]  ;;  %4476 = vmatprep.subr.mxu0 %v3236_v5 }
 0x438   : > { %v4982_v23 = vpop.eup %4981  ;;  %3269 = vmax.xlane.f32.xlu1 %v3268_v20  ;;  %v3165_v9 = vadd.f32 %v3141_v14, %v2941_v32  ;;  %v4098_v19 = vadd.f32 -0.6931472, %v7830_v38  ;;  %v3196_v40 = vmul.f32 -2.0, %v3180_v29  ;;  %v3179_v21 = vadd.f32 %v4096_v28, %v3163_v30  ;;  %v7832_v20 = vld [vmem:[#allocation6_spill] sm:$0xff]  ;;  %4477 = vmatpush3.msra.mxu0 %v3236_v5 }
 0x439   : > { %v2647_v12 = vmul.f32 0.6931472, %v4982_v23  ;;  %v3265_v60 = vsel %vm1400_vm2, %v7227_v44, -inf  ;;  %v2669_v42 = vadd.f32 %v2649_v52, %v7821_v27  ;;  %v3182_v17 = vadd.f32 %v4099_v4, %v3166_v37 }
 0x43a   : > { %v4984_v41 = vpop.eup %4983  ;;  %3266 = vmax.xlane.f32.xlu0 %v3265_v60  ;;  %v3181_v62 = vadd.f32 %v4098_v19, %v3165_v9  ;;  %v3195_v35 = vmul.f32 -2.0, %v3179_v21 }
 0x43b   : > { %v2653_v47 = vmul.f32 0.6931472, %v4984_v41  ;;  %v2691_v46 = vadd.f32 %v7050_v51, %v2669_v42  ;;  %v2668_v33 = vadd.f32 %v2647_v12, %v7826_v31  ;;  %v3198_v27 = vmul.f32 -2.0, %v3182_v17  ;;  %v7833_v42 = vld [vmem:[#allocation9_spill] sm:$0xff] }
 0x43c   : > { %v4986_v24 = vpop.eup %4985  ;;  %v3197_v3 = vmul.f32 -2.0, %v3181_v62 }
 0x43d   : > { %v2651_v56 = vmul.f32 0.6931472, %v4986_v24  ;;  %v7255_v58 = vadd.f32 %v3194_v59, %v2691_v46  ;;  %v2690_v55 = vadd.f32 %v7050_v51, %v2668_v33  ;;  %v2671_v39 = vadd.f32 %v2653_v47, %v7829_v26 }
 0x43e   : > { %v4988_v61 = vpop.eup %4987 }
 0x43f   : > { %v2657_v6 = vmul.f32 0.6931472, %v4988_v61  ;;  %v3274_v48 = vsel %vm1400_vm2, %v7255_v58, -inf  ;;  %v7262_v50 = vadd.f32 %v3193_v57, %v2690_v55  ;;  %v2693_v2 = vadd.f32 %v7050_v51, %v2671_v39 }
 0x440   : > { %v4990_v25 = vpop.eup %4989  ;;  %3275 = vmax.xlane.f32.xlu1 %v3274_v48  ;;  %v2670_v52 = vadd.f32 %v2651_v56, %v7831_v11 }
 0x441   : > { %v2655_v23 = vmul.f32 0.6931472, %v4990_v25  ;;  %v3271_v49 = vsel %vm1400_vm2, %v7262_v50, -inf  ;;  %v7271_v10 = vadd.f32 %v3196_v40, %v2693_v2  ;;  %v2673_v8 = vadd.f32 %v2657_v6, %v7832_v20 }
 0x442   : > { %3272 = vmax.xlane.f32.xlu0 %v3271_v49  ;;  %v2692_v63 = vadd.f32 %v7050_v51, %v2670_v52 }
 0x443   : > { %v3280_v12 = vsel %vm1400_vm2, %v7271_v10, -inf  ;;  %v2695_v60 = vadd.f32 %v7050_v51, %v2673_v8  ;;  %v2672_v14 = vadd.f32 %v2655_v23, %v7833_v42 }
 0x444   : > { %3281 = vmax.xlane.f32.xlu1 %v3280_v12  ;;  %v7279_v41 = vadd.f32 %v3195_v35, %v2692_v63 }
 0x445   : > { %v7281_v53 = vadd.f32 %v3198_v27, %v2695_v60  ;;  %v2694_v32 = vadd.f32 %v7050_v51, %v2672_v14 }
 0x446   : > { %v3277_v29 = vsel %vm1400_vm2, %v7279_v41, -inf }
 0x447   : > { %3278 = vmax.xlane.f32.xlu0 %v3277_v29  ;;  %v3286_v43 = vsel %vm1400_vm2, %v7281_v53, -inf  ;;  %v7288_v36 = vadd.f32 %v3197_v3, %v2694_v32 }
 0x448   : > { %3287 = vmax.xlane.f32.xlu1 %v3286_v43 }
 0x449   : > { %v3283_v30 = vsel %vm1400_vm2, %v7288_v36, -inf }
 0x44b   : > { %3284 = vmax.xlane.f32.xlu0 %v3283_v30 }
 0x4a0   : > { %v7292_v37 = vpop.xlane.xlu1 %3245 }
 0x4a1   : > { %v3290_v51 = vsub.f32 %v7079_v1, %v7292_v37 }
 0x4a2   : > { %v7296_v47 = vpop.xlane.xlu0 %3242 }
 0x4a3   : > { %v3289_v46 = vsub.f32 %v7091_v15, %v7296_v47  ;;  %v3307_v59 = vmul.f32 1.442695, %v3290_v51 }
 0x4a5   : > { %v3305_v31 = vmul.f32 1.442695, %v3289_v46 }
 0x4a7   : > { %4991 = vpow2.f32 %v3305_v31  ;;  %v7300_v33 = vpop.xlane.xlu1 %3251 }
 0x4a8   : > { %4993 = vpow2.f32 %v3307_v59  ;;  %v3292_v24 = vsub.f32 %v7112_v0, %v7300_v33 }
 0x4a9   : > { %v7304_v13 = vpop.xlane.xlu0 %3248 }
 0x4aa   : > { %v3291_v28 = vsub.f32 %v7122_v16, %v7304_v13  ;;  %v3311_v1 = vmul.f32 1.442695, %v3292_v24 }
 0x4ac   : > { %v3309_v7 = vmul.f32 1.442695, %v3291_v28 }
 0x4ae   : > { %4995 = vpow2.f32 %v3309_v7 }
 0x4af   : > { %4997 = vpow2.f32 %v3311_v1 }
 0x4b0   : > { %v7308_v4 = vpop.xlane.xlu1 %3257 }
 0x4b1   : > { %v3294_v15 = vsub.f32 %v7146_v34, %v7308_v4 }
 0x4b2   : > { %v7312_v57 = vpop.xlane.xlu0 %3254 }
 0x4b3   : > { %v3293_v9 = vsub.f32 %v7154_v45, %v7312_v57  ;;  %v3315_v0 = vmul.f32 1.442695, %v3294_v15 }
 0x4b4   : > { %v4992_v55 = vpop.eup %4991 }
 0x4b5   : > { %v3313_v56 = vmul.f32 1.442695, %v3293_v9  ;;  %v4994_v26 = vpop.eup %4993  ;;  %4478 = vmatprep.mubr.msk.f32.mxu0 %vm1400_vm2, %v4992_v55 }
 0x4b6   : > { %4479 = vmatmul.mubr.msk.f32.vlgmr.msra.gmra.mxu0 %vm1400_vm2, %v4994_v26 }
 0x4b7   : > { %4999 = vpow2.f32 %v3313_v56 }
 0x4b8   : > { %5001 = vpow2.f32 %v3315_v0 }
 0x4ba   : > { %v7318_v16 = vpop.xlane.xlu1 %3263 }
 0x4bb   : > { %v3296_v34 = vsub.f32 %v7190_v18, %v7318_v16  ;;  %v4996_v39 = vpop.eup %4995 }
 0x4bc   : > { %v4998_v61 = vpop.eup %4997  ;;  %v7322_v38 = vpop.xlane.xlu0 %3260  ;;  %4481 = vmatprep.mubr.msk.f32.mxu0 %vm1400_vm2, %v4996_v39  ;;  %v7375_v39 = vld [vmem:[%s7466_s16] ss:$0 sm:$0xff] }
 0x4bd   : > { %v3295_v45 = vsub.f32 %v7202_v54, %v7322_v38  ;;  %4482 = vmatmul.mubr.msk.f32.gmra.mxu0 %vm1400_vm2, %v4998_v61  ;;  %v3319_v19 = vmul.f32 1.442695, %v3296_v34 }
 0x4bf   : > { %v3317_v40 = vmul.f32 1.442695, %v3295_v45 }
 0x4c1   : > { %v7328_v21 = vpop.xlane.xlu1 %3269  ;;  %5003 = vpow2.f32 %v3317_v40 }
 0x4c2   : > { %v3298_v17 = vsub.f32 %v7218_v22, %v7328_v21  ;;  %5005 = vpow2.f32 %v3319_v19 }
 0x4c3   : > { %v7332_v18 = vpop.xlane.xlu0 %3266 }
 0x4c4   : > { %v3297_v6 = vsub.f32 %v7227_v44, %v7332_v18  ;;  %v5000_v48 = vpop.eup %4999  ;;  %v3323_v2 = vmul.f32 1.442695, %v3298_v17 }
 0x4c5   : > { %v5002_v25 = vpop.eup %5001  ;;  %4484 = vmatprep.mubr.msk.f32.mxu0 %vm1400_vm2, %v5000_v48 }
 0x4c6   : > { %v3321_v54 = vmul.f32 1.442695, %v3297_v6  ;;  %4485 = vmatmul.mubr.msk.f32.gmra.mxu0 %vm1400_vm2, %v5002_v25 }
 0x4c8   : > { %5007 = vpow2.f32 %v3321_v54 }
 0x4c9   : > { %5009 = vpow2.f32 %v3323_v2  ;;  %v7338_v11 = vpop.xlane.xlu1 %3275 }
 0x4ca   : > { %v3300_v22 = vsub.f32 %v7255_v58, %v7338_v11 }
 0x4cb   : > { %v7342_v52 = vpop.xlane.xlu0 %3272 }
 0x4cc   : > { %v3299_v44 = vsub.f32 %v7262_v50, %v7342_v52  ;;  %v3327_v62 = vmul.f32 1.442695, %v3300_v22 }
 0x4cd   : > { %v7346_v5 = vpop.xlane.xlu1 %3281 }
 0x4ce   : > { %v3325_v23 = vmul.f32 1.442695, %v3299_v44  ;;  %v3302_v49 = vsub.f32 %v7271_v10, %v7346_v5  ;;  %v5004_v20 = vpop.eup %5003 }
 0x4cf   : > { %v5006_v63 = vpop.eup %5005  ;;  %4487 = vmatprep.mubr.msk.f32.mxu0 %vm1400_vm2, %v5004_v20 }
 0x4d0   : > { %5011 = vpow2.f32 %v3325_v23  ;;  %v7350_v8 = vpop.xlane.xlu0 %3278  ;;  %v3331_v50 = vmul.f32 1.442695, %v3302_v49  ;;  %4488 = vmatmul.mubr.msk.f32.gmra.mxu0 %vm1400_vm2, %v5006_v63 }
 0x4d1   : > { %5013 = vpow2.f32 %v3327_v62  ;;  %v3301_v58 = vsub.f32 %v7279_v41, %v7350_v8  ;;  %v7354_v35 = vpop.xlane.xlu1 %3287 }
 0x4d2   : > { %v3304_v12 = vsub.f32 %v7281_v53, %v7354_v35 }
 0x4d3   : > { %v3329_v10 = vmul.f32 1.442695, %v3301_v58 }
 0x4d4   : > { %v7360_v60 = vpop.xlane.xlu0 %3284  ;;  %v3335_v41 = vmul.f32 1.442695, %v3304_v12 }
 0x4d5   : > { %v5008_v27 = vpop.eup %5007  ;;  %5015 = vpow2.f32 %v3329_v10  ;;  %v3303_v42 = vsub.f32 %v7288_v36, %v7360_v60 }
 0x4d6   : > { %v5010_v14 = vpop.eup %5009  ;;  %5017 = vpow2.f32 %v3331_v50  ;;  %4490 = vmatprep.mubr.msk.f32.mxu0 %vm1400_vm2, %v5008_v27 }
 0x4d7   : > { %v3333_v32 = vmul.f32 1.442695, %v3303_v42  ;;  %4491 = vmatmul.mubr.msk.f32.gmra.mxu0 %vm1400_vm2, %v5010_v14 }
 0x4d9   : > { %5019 = vpow2.f32 %v3333_v32 }
 0x4da   : > { %5021 = vpow2.f32 %v3335_v41 }
 0x4dd   : > { %v5012_v53 = vpop.eup %5011 }
 0x4de   : > { %v5014_v3 = vpop.eup %5013  ;;  %4493 = vmatprep.mubr.msk.f32.mxu0 %vm1400_vm2, %v5012_v53 }
 0x4df   : > { %4494 = vmatmul.mubr.msk.f32.gmra.mxu0 %vm1400_vm2, %v5014_v3 }
 0x4e2   : > { %v5016_v29 = vpop.eup %5015 }
 0x4e3   : > { %v5018_v43 = vpop.eup %5017  ;;  %4496 = vmatprep.mubr.msk.f32.mxu0 %vm1400_vm2, %v5016_v29 }
 0x4e4   : > { %4497 = vmatmul.mubr.msk.f32.gmra.mxu0 %vm1400_vm2, %v5018_v43 }
 0x4e6   : > { %v5020_v36 = vpop.eup %5019 }
 0x4e7   : > { %v5022_v30 = vpop.eup %5021  ;;  %4499 = vmatprep.mubr.msk.f32.mxu0 %vm1400_vm2, %v5020_v36 }
 0x4e8   : > { %4500 = vmatmul.mubr.msk.f32.gmra.mxu0 %vm1400_vm2, %v5022_v30 }
 0x576   : > { %v4480_v51 = vpop.f32.mrf.mxu0 }
 0x577   : > { %v3531_v46 = vmax.f32 %v4480_v51, 1e-37 }
 0x578   : > { %v3451_v59 = vpop.f32.mrf.mxu0 }
 0x579   : > { %5023 = vlog2.f32 %v3531_v46  ;;  %v3530_v31 = vmax.f32 %v3451_v59, 1e-37 }
 0x57b   : > { %5025 = vlog2.f32 %v3530_v31 }
 0x57d   : > { %v4483_v24 = vpop.f32.mrf.mxu0 }
 0x57e   : > { %v3533_v28 = vmax.f32 %v4483_v24, 1e-37 }
 0x57f   : > { %v3461_v1 = vpop.f32.mrf.mxu0 }
 0x580   : > { %5027 = vlog2.f32 %v3533_v28  ;;  %v3532_v7 = vmax.f32 %v3461_v1, 1e-37 }
 0x582   : > { %5029 = vlog2.f32 %v3532_v7 }
 0x586   : > { %v4486_v15 = vpop.f32.mrf.mxu0  ;;  %v5024_v0 = vpop.eup %5023 }
 0x587   : > { %v3535_v9 = vmax.f32 %v4486_v15, 1e-37  ;;  %v3549_v55 = vmul.f32 0.6931472, %v5024_v0 }
 0x588   : > { %v3471_v56 = vpop.f32.mrf.mxu0  ;;  %v5026_v34 = vpop.eup %5025 }
 0x589   : > { %5031 = vlog2.f32 %v3535_v9  ;;  %v3534_v26 = vmax.f32 %v3471_v56, 1e-37  ;;  %v3579_v61 = vadd.f32 %v3549_v55, %v7292_v37  ;;  %v3547_v45 = vmul.f32 0.6931472, %v5026_v34 }
 0x58b   : > { %5033 = vlog2.f32 %v3534_v26  ;;  %v3601_v19 = vadd.f32 %v7375_v39, %v3579_v61  ;;  %v3578_v40 = vadd.f32 %v3547_v45, %v7296_v47 }
 0x58d   : > { %v5028_v17 = vpop.eup %5027  ;;  %3832 = vst.msk [vmem:[%s7382_s0 + $0x8] sm:$0xff] %vm613_vm1, %v3601_v19  ;;  %v3600_v6 = vadd.f32 %v7375_v39, %v3578_v40 }
 0x58e   : > { %v3553_v37 = vmul.f32 0.6931472, %v5028_v17 }
 0x58f   : > { %v5030_v48 = vpop.eup %5029  ;;  %3831 = vst.msk [vmem:[%s7382_s0] sm:$0xff] %vm613_vm1, %v3600_v6 }
 0x590   : > { %v3581_v2 = vadd.f32 %v3553_v37, %v7300_v33  ;;  %v3551_v25 = vmul.f32 0.6931472, %v5030_v48  ;;  %v4489_v54 = vpop.f32.mrf.mxu0 }
 0x591   : > { %v3537_v22 = vmax.f32 %v4489_v54, 1e-37 }
 0x592   : > { %v3603_v44 = vadd.f32 %v7375_v39, %v3581_v2  ;;  %v3580_v47 = vadd.f32 %v3551_v25, %v7304_v13  ;;  %v3481_v62 = vpop.f32.mrf.mxu0 }
 0x593   : > { %5035 = vlog2.f32 %v3537_v22  ;;  %v3536_v23 = vmax.f32 %v3481_v62, 1e-37 }
 0x594   : > { %3834 = vst.msk [vmem:[%s7382_s0 + $0x18] sm:$0xff] %vm613_vm1, %v3603_v44  ;;  %v3602_v49 = vadd.f32 %v7375_v39, %v3580_v47 }
 0x595   : > { %5037 = vlog2.f32 %v3536_v23 }
 0x596   : > { %v5032_v20 = vpop.eup %5031  ;;  %3833 = vst.msk [vmem:[%s7382_s0 + $0x10] sm:$0xff] %vm613_vm1, %v3602_v49 }
 0x597   : > { %v4492_v63 = vpop.f32.mrf.mxu0  ;;  %v3557_v33 = vmul.f32 0.6931472, %v5032_v20 }
 0x598   : > { %v3539_v58 = vmax.f32 %v4492_v63, 1e-37  ;;  %v5034_v50 = vpop.eup %5033 }
 0x599   : > { %v3491_v12 = vpop.f32.mrf.mxu0  ;;  %v3583_v13 = vadd.f32 %v3557_v33, %v7308_v4  ;;  %v3555_v10 = vmul.f32 0.6931472, %v5034_v50 }
 0x59a   : > { %5039 = vlog2.f32 %v3539_v58  ;;  %v3538_v27 = vmax.f32 %v3491_v12, 1e-37 }
 0x59b   : > { %v3605_v42 = vadd.f32 %v7375_v39, %v3583_v13  ;;  %v3582_v14 = vadd.f32 %v3555_v10, %v7312_v57 }
 0x59c   : > { %5041 = vlog2.f32 %v3538_v27 }
 0x59d   : > { %3836 = vst.msk [vmem:[%s7382_s0 + $0x28] sm:$0xff] %vm613_vm1, %v3605_v42  ;;  %v3604_v41 = vadd.f32 %v7375_v39, %v3582_v14 }
 0x59f   : > { %v4495_v32 = vpop.f32.mrf.mxu0  ;;  %3835 = vst.msk [vmem:[%s7382_s0 + $0x20] sm:$0xff] %vm613_vm1, %v3604_v41 }
 0x5a0   : > { %v3541_v53 = vmax.f32 %v4495_v32, 1e-37  ;;  %v5036_v29 = vpop.eup %5035 }
 0x5a1   : > { %v3501_v3 = vpop.f32.mrf.mxu0  ;;  %v3561_v43 = vmul.f32 0.6931472, %v5036_v29 }
 0x5a2   : > { %5043 = vlog2.f32 %v3541_v53  ;;  %v3540_v4 = vmax.f32 %v3501_v3, 1e-37  ;;  %v5038_v36 = vpop.eup %5037 }
 0x5a3   : > { %v3585_v57 = vadd.f32 %v3561_v43, %v7318_v16  ;;  %v3559_v51 = vmul.f32 0.6931472, %v5038_v36 }
 0x5a4   : > { %5045 = vlog2.f32 %v3540_v4  ;;  %v4498_v30 = vpop.f32.mrf.mxu0 }
 0x5a5   : > { %v3543_v46 = vmax.f32 %v4498_v30, 1e-37  ;;  %v3607_v24 = vadd.f32 %v7375_v39, %v3585_v57  ;;  %v3584_v28 = vadd.f32 %v3559_v51, %v7322_v38 }
 0x5a6   : > { %v3511_v59 = vpop.f32.mrf.mxu0 }
 0x5a7   : > { %v5040_v31 = vpop.eup %5039  ;;  %5047 = vlog2.f32 %v3543_v46  ;;  %v3542_v1 = vmax.f32 %v3511_v59, 1e-37  ;;  %3838 = vst.msk [vmem:[%s7382_s0 + $0x38] sm:$0xff] %vm613_vm1, %v3607_v24  ;;  %v3606_v16 = vadd.f32 %v7375_v39, %v3584_v28 }
 0x5a8   : > { %v3565_v7 = vmul.f32 0.6931472, %v5040_v31  ;;  %v4501_v15 = vpop.f32.mrf.mxu0 }
 0x5a9   : > { %v5042_v9 = vpop.eup %5041  ;;  %5049 = vlog2.f32 %v3542_v1  ;;  %v3545_v0 = vmax.f32 %v4501_v15, 1e-37  ;;  %3837 = vst.msk [vmem:[%s7382_s0 + $0x30] sm:$0xff] %vm613_vm1, %v3606_v16 }
 0x5aa   : > { %v3587_v56 = vadd.f32 %v3565_v7, %v7328_v21  ;;  %v3563_v55 = vmul.f32 0.6931472, %v5042_v9  ;;  %v3521_v26 = vpop.f32.mrf.mxu0 }
 0x5ab   : > { %5051 = vlog2.f32 %v3545_v0  ;;  %v3544_v38 = vmax.f32 %v3521_v26, 1e-37 }
 0x5ac   : > { %v3609_v34 = vadd.f32 %v7375_v39, %v3587_v56  ;;  %v3586_v61 = vadd.f32 %v3563_v55, %v7332_v18 }
 0x5ad   : > { %5053 = vlog2.f32 %v3544_v38 }
 0x5ae   : > { %3840 = vst.msk [vmem:[%s7382_s0 + $0x48] sm:$0xff] %vm613_vm1, %v3609_v34  ;;  %v3608_v45 = vadd.f32 %v7375_v39, %v3586_v61 }
 0x5af   : > { %v5044_v19 = vpop.eup %5043 }
 0x5b0   : > { %3839 = vst.msk [vmem:[%s7382_s0 + $0x40] sm:$0xff] %vm613_vm1, %v3608_v45  ;;  %v3569_v21 = vmul.f32 0.6931472, %v5044_v19 }
 0x5b1   : > { %v5046_v40 = vpop.eup %5045 }
 0x5b2   : > { %v3589_v17 = vadd.f32 %v3569_v21, %v7338_v11  ;;  %v3567_v6 = vmul.f32 0.6931472, %v5046_v40 }
 0x5b4   : > { %v5048_v37 = vpop.eup %5047  ;;  %v3611_v48 = vadd.f32 %v7375_v39, %v3589_v17  ;;  %v3588_v18 = vadd.f32 %v3567_v6, %v7342_v52 }
 0x5b5   : > { %v3573_v2 = vmul.f32 0.6931472, %v5048_v37 }
 0x5b6   : > { %v5050_v25 = vpop.eup %5049  ;;  %3842 = vst.msk [vmem:[%s7382_s0 + $0x58] sm:$0xff] %vm613_vm1, %v3611_v48  ;;  %v3610_v54 = vadd.f32 %v7375_v39, %v3588_v18 }
 0x5b7   : > { %v3591_v22 = vadd.f32 %v3573_v2, %v7346_v5  ;;  %v3571_v44 = vmul.f32 0.6931472, %v5050_v25 }
 0x5b8   : > { %v5052_v11 = vpop.eup %5051  ;;  %3841 = vst.msk [vmem:[%s7382_s0 + $0x50] sm:$0xff] %vm613_vm1, %v3610_v54 }
 0x5b9   : > { %v3613_v47 = vadd.f32 %v7375_v39, %v3591_v22  ;;  %v3590_v62 = vadd.f32 %v3571_v44, %v7350_v8  ;;  %v3577_v52 = vmul.f32 0.6931472, %v5052_v11 }
 0x5ba   : > { %v5054_v23 = vpop.eup %5053 }
 0x5bb   : > { %3844 = vst.msk [vmem:[%s7382_s0 + $0x68] sm:$0xff] %vm613_vm1, %v3613_v47  ;;  %v3612_v49 = vadd.f32 %v7375_v39, %v3590_v62  ;;  %v3593_v20 = vadd.f32 %v3577_v52, %v7354_v35  ;;  %v3575_v63 = vmul.f32 0.6931472, %v5054_v23 }
 0x5bd   : > { %3843 = vst.msk [vmem:[%s7382_s0 + $0x60] sm:$0xff] %vm613_vm1, %v3612_v49  ;;  %v3615_v5 = vadd.f32 %v7375_v39, %v3593_v20  ;;  %v3592_v33 = vadd.f32 %v3575_v63, %v7360_v60 }
 0x5bf   : > { %3846 = vst.msk [vmem:[%s7382_s0 + $0x78] sm:$0xff] %vm613_vm1, %v3615_v5  ;;  %v3614_v58 = vadd.f32 %v7375_v39, %v3592_v33 }
 0x5c1   : > { %3845 = vst.msk [vmem:[%s7382_s0 + $0x70] sm:$0xff] %vm613_vm1, %v3614_v58 }
 0x5c2 PF: > { %s29_s27 = sadd.s32 1, %s5061_s27  }
 0x5c3   : > { %p26_p4 = scmp.ge.s32.totalorder %s29_s27, 4  }
 0x5c5   :  { %28 = sbr.rel (!%p26_p4) target bundleno = 4 (0x4), region = 130 }

</bundles_post_ra>
